<compile_context>
chip_gen: v7x
topology: tpu7x:2x2x1
jax: 0.10.0
libtpu: 0.0.40
codegen_flags: <defaults>
</compile_context>

<pallas_src>
import jax
import jax.numpy as jnp
from jax.experimental import pallas as pl
from jax.experimental.pallas import tpu as pltpu

BN_EPS = 1e-5          # nn.BatchNorm2d default eps
LEAKY_SLOPE = 0.01     # nn.LeakyReLU default negative_slope

_VMEM = pl.BlockSpec(memory_space=pltpu.MemorySpace.VMEM)


# ----------------------------- in-kernel helpers -----------------------------

def _batchnorm_rows(y2d, gamma, beta):
    """Training-mode BatchNorm over rows of a (rows, C) matrix (per-channel batch
    stats, biased variance as PyTorch uses for normalization).  gamma is folded
    into a single per-channel scale and rsqrt goes to the EUP."""
    cnt = jnp.float32(y2d.shape[0])
    mean = jnp.sum(y2d, axis=0, keepdims=True) / cnt
    yc = y2d - mean
    var = jnp.sum(yc * yc, axis=0, keepdims=True) / cnt
    scale = gamma * jax.lax.rsqrt(var + BN_EPS)
    return yc * scale + beta


def _avgpool2x2(y4, s_ref):
    """2x2 / stride-2 average pool of an NHWC value.  H pairs are summed via a
    free major-dim split; W pairs via two stride-2 sublane reads from a small
    VMEM scratch.  Returns an (N, H//2, W//2, C) value."""
    n, h, w, c = y4.shape
    h2, w2 = h // 2, w // 2
    yh = y4.reshape(n, h2, 2, w, c)
    s_ref[...] = yh[:, :, 0, :, :] + yh[:, :, 1, :, :]          # sum over H pairs
    return (s_ref[:, :, pl.ds(0, w2, stride=2), :]
            + s_ref[:, :, pl.ds(1, w2, stride=2), :]) * 0.25    # sum over W pairs


def _conv3x3(pad_ref, w_ref):
    """3x3 'same' conv reading a zero-padded NHWC VMEM scratch.  Nine accumulated
    (M, C) @ (C, Cout) MXU matmuls with the weight tensor loaded once (hoisted)."""
    n, hp, wp, cin = pad_ref.shape
    h, w = hp - 2, wp - 2
    wts = w_ref[...].astype(jnp.float32)                         # (3, 3, Cin, Cout)
    acc = None
    for ky in range(3):
        for kx in range(3):
            patch = pad_ref[:, ky:ky + h, kx:kx + w, :].astype(jnp.float32)
            d = jnp.dot(patch.reshape(n * h * w, cin), wts[ky, kx],
                        preferred_element_type=jnp.float32)
            acc = d if acc is None else acc + d
    return acc                                                   # (n*h*w, Cout)


# ------------------------------- fused kernel --------------------------------

def res_down_fused_kernel(x_ref, g1_ref, b1_ref, w1_ref, g2_ref, b2_ref,
                          w2_ref, bc2_ref, wres_ref, bres_ref,
                          o_ref, pool_s, pad1_ref, pad2_ref):
    n, h, w, cin = x_ref.shape
    cout = w1_ref.shape[-1]
    h2, w2 = h // 2, w // 2
    m = n * h2 * w2

    x = x_ref[...].astype(jnp.float32)                           # (N, H, W, Cin)

    # ---- residual branch: pool(conv1x1(x)+b) == conv1x1(pool(x)) + b (linear).
    xp = _avgpool2x2(x, pool_s).reshape(m, cin)
    res = jnp.dot(xp, wres_ref[...].astype(jnp.float32),
                  preferred_element_type=jnp.float32) + bres_ref[...]

    # ---- main branch: BN1 -> LeakyReLU -> AvgPool2x2
    y = _batchnorm_rows(x.reshape(n * h * w, cin), g1_ref[...], b1_ref[...])
    y = jnp.where(y >= 0, y, LEAKY_SLOPE * y)
    hp = _avgpool2x2(y.reshape(n, h, w, cin), pool_s)            # (N, H2, W2, Cin)
    # (pool_s is reused sequentially; the residual's reads above precede this
    #  second store in program order, so the reuse is safe.)

    # conv1: 3x3, pad=1, no bias.  Zero-pad fully inside VMEM.
    pad1_ref[...] = jnp.zeros(pad1_ref.shape, jnp.float32)
    pad1_ref[:, 1:1 + h2, 1:1 + w2, :] = hp
    c1 = _conv3x3(pad1_ref, w1_ref)                              # (M, Cout)

    # BN2
    c1 = _batchnorm_rows(c1, g2_ref[...], b2_ref[...])

    # conv2: 3x3, pad=1, with bias.
    pad2_ref[...] = jnp.zeros(pad2_ref.shape, jnp.float32)
    pad2_ref[:, 1:1 + h2, 1:1 + w2, :] = c1.reshape(n, h2, w2, cout)
    c2 = _conv3x3(pad2_ref, w2_ref) + bc2_ref[...]               # (M, Cout)

    # ---- combine and store lane-dense in NC(H*W) order.
    out_t = (c2 + res).T                                         # (Cout, N*H2*W2)
    hw = h2 * w2
    for i in range(n):
        o_ref[i] = out_t[:, i * hw:(i + 1) * hw]                 # (Cout, H2*W2)


# --------------------------------- wrapper -----------------------------------

def res_down_layer_forward(x_nchw, p):
    n, cin, h, w = x_nchw.shape
    cout = p["w_conv1"].shape[-1]
    h2, w2 = h // 2, w // 2

    # One tiny NCHW -> NHWC relayout at entry; everything else is a single fused
    # Pallas call and the output comes back already NC(H*W)-ordered, so the exit
    # conversion is a free reshape.
    x = jnp.transpose(x_nchw, (0, 2, 3, 1)).astype(jnp.float32)

    out = pl.pallas_call(
        res_down_fused_kernel,
        out_shape=jax.ShapeDtypeStruct((n, cout, h2 * w2), jnp.float32),
        in_specs=[_VMEM] * 10,
        out_specs=_VMEM,
        scratch_shapes=[
            pltpu.VMEM((n, h2, w, cin), jnp.float32),              # pool scratch (shared)
            pltpu.VMEM((n, h2 + 2, w2 + 2, cin), jnp.float32),     # zero-padded conv1 input
            pltpu.VMEM((n, h2 + 2, w2 + 2, cout), jnp.float32),    # zero-padded conv2 input
        ],
    )(x, p["gamma1"], p["beta1"], p["w_conv1"], p["gamma2"], p["beta2"],
      p["w_conv2"], p["b_conv2"], p["w_res"], p["b_res"])

    return out.reshape(n, cout, h2, w2)                            # free reshape to NCHW


# --------------------------- parameters (synthetic) ---------------------------

def spectral_normalize(w_oihw, key, n_iter=50, eps=1e-12):
    """PyTorch spectral_norm: weight / sigma_max(weight.view(O, -1))."""
    # TODO(synk): PyTorch updates u with one power iteration per training forward;
    # here we run a converged power iteration once at parameter-setup time.
    w_mat = w_oihw.reshape(w_oihw.shape[0], -1)
    u = jax.random.normal(key, (w_mat.shape[0],), jnp.float32)
    u = u / (jnp.linalg.norm(u) + eps)
    v = None
    for _ in range(n_iter):
        v = w_mat.T @ u
        v = v / (jnp.linalg.norm(v) + eps)
        u = w_mat @ v
        u = u / (jnp.linalg.norm(u) + eps)
    sigma = u @ (w_mat @ v)
    return w_oihw / sigma


def init_params(key, in_channels, out_channels):
    ks = jax.random.split(key, 10)
    w1 = jax.random.normal(ks[0], (out_channels, in_channels, 3, 3), jnp.float32) * 0.2
    w2 = jax.random.normal(ks[1], (out_channels, out_channels, 3, 3), jnp.float32) * 0.2
    wr = jax.random.normal(ks[2], (out_channels, in_channels, 1, 1), jnp.float32) * 0.2
    w1 = spectral_normalize(w1, ks[3])
    w2 = spectral_normalize(w2, ks[4])
    wr = spectral_normalize(wr, ks[5])
    b_conv2 = jax.random.normal(ks[6], (out_channels,), jnp.float32) * 0.1
    b_res = jax.random.normal(ks[7], (out_channels,), jnp.float32) * 0.1
    gk = jax.random.split(ks[8], 4)
    gamma1 = 1.0 + 0.1 * jax.random.normal(gk[0], (in_channels,), jnp.float32)
    beta1 = 0.1 * jax.random.normal(gk[1], (in_channels,), jnp.float32)
    gamma2 = 1.0 + 0.1 * jax.random.normal(gk[2], (out_channels,), jnp.float32)
    beta2 = 0.1 * jax.random.normal(gk[3], (out_channels,), jnp.float32)
    return {
        # PyTorch-layout (OIHW) weights, kept only for the pure-JAX reference check
        "w1_oihw": w1, "w2_oihw": w2, "wr_oihw": wr,
        # kernel-layout weights: (kh, kw, Cin, Cout) and (Cin, Cout)
        "w_conv1": jnp.transpose(w1, (2, 3, 1, 0)),
        "w_conv2": jnp.transpose(w2, (2, 3, 1, 0)),
        "w_res": jnp.transpose(wr[:, :, 0, 0], (1, 0)),
        "b_conv2": b_conv2.reshape(1, -1),
        "b_res": b_res.reshape(1, -1),
        "gamma1": gamma1.reshape(1, -1),
        "beta1": beta1.reshape(1, -1),
        "gamma2": gamma2.reshape(1, -1),
        "beta2": beta2.reshape(1, -1),
    }


# ----------------------- pure-JAX reference (for check) -----------------------

def reference_forward(x, p):
    def bn(h, g, b):
        mean = jnp.mean(h, axis=(0, 2, 3), keepdims=True)
        var = jnp.mean(jnp.square(h - mean), axis=(0, 2, 3), keepdims=True)
        return (h - mean) / jnp.sqrt(var + BN_EPS) * g.reshape(1, -1, 1, 1) + b.reshape(1, -1, 1, 1)

    def pool(h):
        n, c, hh, ww = h.shape
        return h.reshape(n, c, hh // 2, 2, ww // 2, 2).mean(axis=(3, 5))

    def conv(h, w, pad):
        return jax.lax.conv_general_dilated(
            h, w, window_strides=(1, 1), padding=[(pad, pad), (pad, pad)],
            dimension_numbers=("NCHW", "OIHW", "NCHW"),
            precision=jax.lax.Precision.HIGHEST)

    h = bn(x, p["gamma1"].ravel(), p["beta1"].ravel())
    h = jnp.where(h >= 0, h, LEAKY_SLOPE * h)
    h = pool(h)
    h = conv(h, p["w1_oihw"], 1)
    h = bn(h, p["gamma2"].ravel(), p["beta2"].ravel())
    h = conv(h, p["w2_oihw"], 1) + p["b_conv2"].reshape(1, -1, 1, 1)
    r = conv(x, p["wr_oihw"], 0) + p["b_res"].reshape(1, -1, 1, 1)
    return h + pool(r)


# ----------------------------------- main -------------------------------------

if __name__ == "__main__":
    key = jax.random.PRNGKey(0)
    pkey, xkey = jax.random.split(key)
    in_channels, out_channels = 4, 8
    params = init_params(pkey, in_channels, out_channels)
    x = jax.random.normal(xkey, (2, in_channels, 16, 16), jnp.float32)   # NCHW

    out = jax.jit(res_down_layer_forward)(x, params)
    out = jax.block_until_ready(out)

    ref = reference_forward(x, params)
    assert out.shape == (2, out_channels, 8, 8), out.shape
    max_err = float(jnp.max(jnp.abs(out - ref)))
    assert max_err < 1e-2, f"max abs err {max_err}"
    print("KERNEL_OK")
</pallas_src>

<mosaic_0001>
module attributes {stable_mosaic.version = 11 : i64} {
  func.func @res_down_fused_kernel(%arg0: memref<2x16x16x4xf32, #tpu.memory_space<vmem>>, %arg1: memref<1x4xf32, #tpu.memory_space<vmem>>, %arg2: memref<1x4xf32, #tpu.memory_space<vmem>>, %arg3: memref<3x3x4x8xf32, #tpu.memory_space<vmem>>, %arg4: memref<1x8xf32, #tpu.memory_space<vmem>>, %arg5: memref<1x8xf32, #tpu.memory_space<vmem>>, %arg6: memref<3x3x8x8xf32, #tpu.memory_space<vmem>>, %arg7: memref<1x8xf32, #tpu.memory_space<vmem>>, %arg8: memref<4x8xf32, #tpu.memory_space<vmem>>, %arg9: memref<1x8xf32, #tpu.memory_space<vmem>>, %arg10: memref<2x8x64xf32, #tpu.memory_space<vmem>>, %arg11: memref<2x8x16x4xf32, #tpu.memory_space<vmem>>, %arg12: memref<2x10x10x4xf32, #tpu.memory_space<vmem>>, %arg13: memref<2x10x10x8xf32, #tpu.memory_space<vmem>>) attributes {dimension_semantics = [], scalar_prefetch = 0 : i64, scratch_operands = 3 : i64, tpu.core_type = #tpu.core_type<tc>} {
    %c0 = arith.constant 0 : index
    %c0_0 = arith.constant 0 : index
    %c0_1 = arith.constant 0 : index
    %c0_2 = arith.constant 0 : index
    %0 = vector.load %arg0[%c0, %c0_0, %c0_1, %c0_2] : memref<2x16x16x4xf32, #tpu.memory_space<vmem>>, vector<2x16x16x4xf32>
    %1 = vector.shape_cast %0 : vector<2x16x16x4xf32> to vector<2x8x2x16x4xf32>
    %2 = vector.extract_strided_slice %1 {offsets = [0, 0, 0, 0, 0], sizes = [2, 8, 1, 16, 4], strides = [1, 1, 1, 1, 1]} : vector<2x8x2x16x4xf32> to vector<2x8x1x16x4xf32>
    %3 = vector.shape_cast %2 : vector<2x8x1x16x4xf32> to vector<2x8x16x4xf32>
    %4 = vector.extract_strided_slice %1 {offsets = [0, 0, 1, 0, 0], sizes = [2, 8, 1, 16, 4], strides = [1, 1, 1, 1, 1]} : vector<2x8x2x16x4xf32> to vector<2x8x1x16x4xf32>
    %5 = vector.shape_cast %4 : vector<2x8x1x16x4xf32> to vector<2x8x16x4xf32>
    %6 = arith.addf %3, %5 : vector<2x8x16x4xf32>
    %c0_3 = arith.constant 0 : index
    %c0_4 = arith.constant 0 : index
    %c0_5 = arith.constant 0 : index
    %c0_6 = arith.constant 0 : index
    %7 = vector.load %arg11[%c0_3, %c0_4, %c0_5, %c0_6] : memref<2x8x16x4xf32, #tpu.memory_space<vmem>>, vector<2x8x16x4xf32>
    tpu.vector_store %arg11[%c0_3, %c0_4, %c0_5, %c0_6], %6 {strides = array<i32>} : memref<2x8x16x4xf32, #tpu.memory_space<vmem>>, vector<2x8x16x4xf32>,
    %c0_7 = arith.constant 0 : index
    %c0_8 = arith.constant 0 : index
    %c0_9 = arith.constant 0 : index
    %c0_10 = arith.constant 0 : index
    %8 = tpu.strided_load %arg11[%c0_7, %c0_8, %c0_9, %c0_10] {strides = array<i32: 1, 1, 2, 1>} : memref<2x8x16x4xf32, #tpu.memory_space<vmem>>, vector<2x8x8x4xf32>
    %c0_11 = arith.constant 0 : index
    %c0_12 = arith.constant 0 : index
    %c1 = arith.constant 1 : index
    %c0_13 = arith.constant 0 : index
    %9 = tpu.strided_load %arg11[%c0_11, %c0_12, %c1, %c0_13] {strides = array<i32: 1, 1, 2, 1>} : memref<2x8x16x4xf32, #tpu.memory_space<vmem>>, vector<2x8x8x4xf32>
    %10 = arith.addf %8, %9 : vector<2x8x8x4xf32>
    %cst = arith.constant 2.500000e-01 : f32
    %11 = vector.broadcast %cst : f32 to vector<2x8x8x4xf32>
    %12 = arith.mulf %10, %11 : vector<2x8x8x4xf32>
    %13 = vector.shape_cast %12 : vector<2x8x8x4xf32> to vector<128x4xf32>
    %c0_14 = arith.constant 0 : index
    %c0_15 = arith.constant 0 : index
    %14 = vector.load %arg8[%c0_14, %c0_15] : memref<4x8xf32, #tpu.memory_space<vmem>>, vector<4x8xf32>
    %cst_16 = arith.constant dense<0.000000e+00> : vector<128x8xf32>
    %15 = tpu.matmul %13, %14, %cst_16 {dimension_numbers = #tpu.dot_dimension_numbers<[1], [0], [0], [1], [0, 0, 1, 1], [], []>} : vector<128x4xf32>, vector<4x8xf32>, vector<128x8xf32> -> vector<128x8xf32>
    %c0_17 = arith.constant 0 : index
    %c0_18 = arith.constant 0 : index
    %16 = vector.load %arg9[%c0_17, %c0_18] : memref<1x8xf32, #tpu.memory_space<vmem>>, vector<1x8xf32>
    %17 = vector.broadcast %16 : vector<1x8xf32> to vector<128x8xf32>
    %18 = arith.addf %15, %17 : vector<128x8xf32>
    %19 = vector.shape_cast %0 : vector<2x16x16x4xf32> to vector<512x4xf32>
    %c0_19 = arith.constant 0 : index
    %c0_20 = arith.constant 0 : index
    %20 = vector.load %arg1[%c0_19, %c0_20] : memref<1x4xf32, #tpu.memory_space<vmem>>, vector<1x4xf32>
    %c0_21 = arith.constant 0 : index
    %c0_22 = arith.constant 0 : index
    %21 = vector.load %arg2[%c0_21, %c0_22] : memref<1x4xf32, #tpu.memory_space<vmem>>, vector<1x4xf32>
    %cst_23 = arith.constant dense<0.000000e+00> : vector<4xf32>
    %22 = vector.multi_reduction <add>, %19, %cst_23 [0] : vector<512x4xf32> to vector<4xf32>
    %23 = vector.shape_cast %22 : vector<4xf32> to vector<1x4xf32>
    %cst_24 = arith.constant 5.120000e+02 : f32
    %24 = vector.broadcast %cst_24 : f32 to vector<1x4xf32>
    %25 = arith.divf %23, %24 : vector<1x4xf32>
    %26 = vector.broadcast %25 : vector<1x4xf32> to vector<512x4xf32>
    %27 = arith.subf %19, %26 : vector<512x4xf32>
    %28 = arith.mulf %27, %27 : vector<512x4xf32>
    %cst_25 = arith.constant dense<0.000000e+00> : vector<4xf32>
    %29 = vector.multi_reduction <add>, %28, %cst_25 [0] : vector<512x4xf32> to vector<4xf32>
    %30 = vector.shape_cast %29 : vector<4xf32> to vector<1x4xf32>
    %cst_26 = arith.constant 5.120000e+02 : f32
    %31 = vector.broadcast %cst_26 : f32 to vector<1x4xf32>
    %32 = arith.divf %30, %31 : vector<1x4xf32>
    %cst_27 = arith.constant 9.99999974E-6 : f32
    %33 = vector.broadcast %cst_27 : f32 to vector<1x4xf32>
    %34 = arith.addf %32, %33 : vector<1x4xf32>
    %35 = math.rsqrt %34 : vector<1x4xf32>
    %36 = arith.mulf %20, %35 : vector<1x4xf32>
    %37 = vector.broadcast %36 : vector<1x4xf32> to vector<512x4xf32>
    %38 = arith.mulf %27, %37 : vector<512x4xf32>
    %39 = vector.broadcast %21 : vector<1x4xf32> to vector<512x4xf32>
    %40 = arith.addf %38, %39 : vector<512x4xf32>
    %cst_28 = arith.constant 0.000000e+00 : f32
    %41 = vector.broadcast %cst_28 : f32 to vector<512x4xf32>
    %42 = arith.cmpf oge, %40, %41 : vector<512x4xf32>
    %cst_29 = arith.constant 0.00999999977 : f32
    %43 = vector.broadcast %cst_29 : f32 to vector<512x4xf32>
    %44 = arith.mulf %43, %40 : vector<512x4xf32>
    %45 = arith.select %42, %40, %44 : vector<512x4xi1>, vector<512x4xf32>
    %46 = vector.shape_cast %45 : vector<512x4xf32> to vector<2x16x16x4xf32>
    %47 = vector.shape_cast %46 : vector<2x16x16x4xf32> to vector<2x8x2x16x4xf32>
    %48 = vector.extract_strided_slice %47 {offsets = [0, 0, 0, 0, 0], sizes = [2, 8, 1, 16, 4], strides = [1, 1, 1, 1, 1]} : vector<2x8x2x16x4xf32> to vector<2x8x1x16x4xf32>
    %49 = vector.shape_cast %48 : vector<2x8x1x16x4xf32> to vector<2x8x16x4xf32>
    %50 = vector.extract_strided_slice %47 {offsets = [0, 0, 1, 0, 0], sizes = [2, 8, 1, 16, 4], strides = [1, 1, 1, 1, 1]} : vector<2x8x2x16x4xf32> to vector<2x8x1x16x4xf32>
    %51 = vector.shape_cast %50 : vector<2x8x1x16x4xf32> to vector<2x8x16x4xf32>
    %52 = arith.addf %49, %51 : vector<2x8x16x4xf32>
    %c0_30 = arith.constant 0 : index
    %c0_31 = arith.constant 0 : index
    %c0_32 = arith.constant 0 : index
    %c0_33 = arith.constant 0 : index
    %53 = vector.load %arg11[%c0_30, %c0_31, %c0_32, %c0_33] : memref<2x8x16x4xf32, #tpu.memory_space<vmem>>, vector<2x8x16x4xf32>
    tpu.vector_store %arg11[%c0_30, %c0_31, %c0_32, %c0_33], %52 {strides = array<i32>} : memref<2x8x16x4xf32, #tpu.memory_space<vmem>>, vector<2x8x16x4xf32>,
    %c0_34 = arith.constant 0 : index
    %c0_35 = arith.constant 0 : index
    %c0_36 = arith.constant 0 : index
    %c0_37 = arith.constant 0 : index
    %54 = tpu.strided_load %arg11[%c0_34, %c0_35, %c0_36, %c0_37] {strides = array<i32: 1, 1, 2, 1>} : memref<2x8x16x4xf32, #tpu.memory_space<vmem>>, vector<2x8x8x4xf32>
    %c0_38 = arith.constant 0 : index
    %c0_39 = arith.constant 0 : index
    %c1_40 = arith.constant 1 : index
    %c0_41 = arith.constant 0 : index
    %55 = tpu.strided_load %arg11[%c0_38, %c0_39, %c1_40, %c0_41] {strides = array<i32: 1, 1, 2, 1>} : memref<2x8x16x4xf32, #tpu.memory_space<vmem>>, vector<2x8x8x4xf32>
    %56 = arith.addf %54, %55 : vector<2x8x8x4xf32>
    %cst_42 = arith.constant 2.500000e-01 : f32
    %57 = vector.broadcast %cst_42 : f32 to vector<2x8x8x4xf32>
    %58 = arith.mulf %56, %57 : vector<2x8x8x4xf32>
    %cst_43 = arith.constant 0.000000e+00 : f32
    %59 = vector.broadcast %cst_43 : f32 to vector<2x10x10x4xf32>
    %c0_44 = arith.constant 0 : index
    %c0_45 = arith.constant 0 : index
    %c0_46 = arith.constant 0 : index
    %c0_47 = arith.constant 0 : index
    %60 = vector.load %arg12[%c0_44, %c0_45, %c0_46, %c0_47] : memref<2x10x10x4xf32, #tpu.memory_space<vmem>>, vector<2x10x10x4xf32>
    tpu.vector_store %arg12[%c0_44, %c0_45, %c0_46, %c0_47], %59 {strides = array<i32>} : memref<2x10x10x4xf32, #tpu.memory_space<vmem>>, vector<2x10x10x4xf32>,
    %c0_48 = arith.constant 0 : index
    %c1_49 = arith.constant 1 : index
    %c1_50 = arith.constant 1 : index
    %c0_51 = arith.constant 0 : index
    %61 = vector.load %arg12[%c0_48, %c1_49, %c1_50, %c0_51] : memref<2x10x10x4xf32, #tpu.memory_space<vmem>>, vector<2x8x8x4xf32>
    tpu.vector_store %arg12[%c0_48, %c1_49, %c1_50, %c0_51], %58 {strides = array<i32>} : memref<2x10x10x4xf32, #tpu.memory_space<vmem>>, vector<2x8x8x4xf32>,
    %c0_52 = arith.constant 0 : index
    %c0_53 = arith.constant 0 : index
    %c0_54 = arith.constant 0 : index
    %c0_55 = arith.constant 0 : index
    %62 = vector.load %arg3[%c0_52, %c0_53, %c0_54, %c0_55] : memref<3x3x4x8xf32, #tpu.memory_space<vmem>>, vector<3x3x4x8xf32>
    %c0_56 = arith.constant 0 : index
    %c0_57 = arith.constant 0 : index
    %c0_58 = arith.constant 0 : index
    %c0_59 = arith.constant 0 : index
    %63 = vector.load %arg12[%c0_56, %c0_57, %c0_58, %c0_59] : memref<2x10x10x4xf32, #tpu.memory_space<vmem>>, vector<2x8x8x4xf32>
    %64 = vector.shape_cast %63 : vector<2x8x8x4xf32> to vector<128x4xf32>
    %65 = vector.extract_strided_slice %62 {offsets = [0, 0, 0, 0], sizes = [1, 1, 4, 8], strides = [1, 1, 1, 1]} : vector<3x3x4x8xf32> to vector<1x1x4x8xf32>
    %66 = vector.shape_cast %65 : vector<1x1x4x8xf32> to vector<4x8xf32>
    %cst_60 = arith.constant dense<0.000000e+00> : vector<128x8xf32>
    %67 = tpu.matmul %64, %66, %cst_60 {dimension_numbers = #tpu.dot_dimension_numbers<[1], [0], [0], [1], [0, 0, 1, 1], [], []>} : vector<128x4xf32>, vector<4x8xf32>, vector<128x8xf32> -> vector<128x8xf32>
    %c0_61 = arith.constant 0 : index
    %c0_62 = arith.constant 0 : index
    %c1_63 = arith.constant 1 : index
    %c0_64 = arith.constant 0 : index
    %68 = vector.load %arg12[%c0_61, %c0_62, %c1_63, %c0_64] : memref<2x10x10x4xf32, #tpu.memory_space<vmem>>, vector<2x8x8x4xf32>
    %69 = vector.shape_cast %68 : vector<2x8x8x4xf32> to vector<128x4xf32>
    %70 = vector.extract_strided_slice %62 {offsets = [0, 1, 0, 0], sizes = [1, 1, 4, 8], strides = [1, 1, 1, 1]} : vector<3x3x4x8xf32> to vector<1x1x4x8xf32>
    %71 = vector.shape_cast %70 : vector<1x1x4x8xf32> to vector<4x8xf32>
    %cst_65 = arith.constant dense<0.000000e+00> : vector<128x8xf32>
    %72 = tpu.matmul %69, %71, %cst_65 {dimension_numbers = #tpu.dot_dimension_numbers<[1], [0], [0], [1], [0, 0, 1, 1], [], []>} : vector<128x4xf32>, vector<4x8xf32>, vector<128x8xf32> -> vector<128x8xf32>
    %73 = arith.addf %67, %72 : vector<128x8xf32>
    %c0_66 = arith.constant 0 : index
    %c0_67 = arith.constant 0 : index
    %c2 = arith.constant 2 : index
    %c0_68 = arith.constant 0 : index
    %74 = vector.load %arg12[%c0_66, %c0_67, %c2, %c0_68] : memref<2x10x10x4xf32, #tpu.memory_space<vmem>>, vector<2x8x8x4xf32>
    %75 = vector.shape_cast %74 : vector<2x8x8x4xf32> to vector<128x4xf32>
    %76 = vector.extract_strided_slice %62 {offsets = [0, 2, 0, 0], sizes = [1, 1, 4, 8], strides = [1, 1, 1, 1]} : vector<3x3x4x8xf32> to vector<1x1x4x8xf32>
    %77 = vector.shape_cast %76 : vector<1x1x4x8xf32> to vector<4x8xf32>
    %cst_69 = arith.constant dense<0.000000e+00> : vector<128x8xf32>
    %78 = tpu.matmul %75, %77, %cst_69 {dimension_numbers = #tpu.dot_dimension_numbers<[1], [0], [0], [1], [0, 0, 1, 1], [], []>} : vector<128x4xf32>, vector<4x8xf32>, vector<128x8xf32> -> vector<128x8xf32>
    %79 = arith.addf %73, %78 : vector<128x8xf32>
    %c0_70 = arith.constant 0 : index
    %c1_71 = arith.constant 1 : index
    %c0_72 = arith.constant 0 : index
    %c0_73 = arith.constant 0 : index
    %80 = vector.load %arg12[%c0_70, %c1_71, %c0_72, %c0_73] : memref<2x10x10x4xf32, #tpu.memory_space<vmem>>, vector<2x8x8x4xf32>
    %81 = vector.shape_cast %80 : vector<2x8x8x4xf32> to vector<128x4xf32>
    %82 = vector.extract_strided_slice %62 {offsets = [1, 0, 0, 0], sizes = [1, 1, 4, 8], strides = [1, 1, 1, 1]} : vector<3x3x4x8xf32> to vector<1x1x4x8xf32>
    %83 = vector.shape_cast %82 : vector<1x1x4x8xf32> to vector<4x8xf32>
    %cst_74 = arith.constant dense<0.000000e+00> : vector<128x8xf32>
    %84 = tpu.matmul %81, %83, %cst_74 {dimension_numbers = #tpu.dot_dimension_numbers<[1], [0], [0], [1], [0, 0, 1, 1], [], []>} : vector<128x4xf32>, vector<4x8xf32>, vector<128x8xf32> -> vector<128x8xf32>
    %85 = arith.addf %79, %84 : vector<128x8xf32>
    %c0_75 = arith.constant 0 : index
    %c1_76 = arith.constant 1 : index
    %c1_77 = arith.constant 1 : index
    %c0_78 = arith.constant 0 : index
    %86 = vector.load %arg12[%c0_75, %c1_76, %c1_77, %c0_78] : memref<2x10x10x4xf32, #tpu.memory_space<vmem>>, vector<2x8x8x4xf32>
    %87 = vector.shape_cast %86 : vector<2x8x8x4xf32> to vector<128x4xf32>
    %88 = vector.extract_strided_slice %62 {offsets = [1, 1, 0, 0], sizes = [1, 1, 4, 8], strides = [1, 1, 1, 1]} : vector<3x3x4x8xf32> to vector<1x1x4x8xf32>
    %89 = vector.shape_cast %88 : vector<1x1x4x8xf32> to vector<4x8xf32>
    %cst_79 = arith.constant dense<0.000000e+00> : vector<128x8xf32>
    %90 = tpu.matmul %87, %89, %cst_79 {dimension_numbers = #tpu.dot_dimension_numbers<[1], [0], [0], [1], [0, 0, 1, 1], [], []>} : vector<128x4xf32>, vector<4x8xf32>, vector<128x8xf32> -> vector<128x8xf32>
    %91 = arith.addf %85, %90 : vector<128x8xf32>
    %c0_80 = arith.constant 0 : index
    %c1_81 = arith.constant 1 : index
    %c2_82 = arith.constant 2 : index
    %c0_83 = arith.constant 0 : index
    %92 = vector.load %arg12[%c0_80, %c1_81, %c2_82, %c0_83] : memref<2x10x10x4xf32, #tpu.memory_space<vmem>>, vector<2x8x8x4xf32>
    %93 = vector.shape_cast %92 : vector<2x8x8x4xf32> to vector<128x4xf32>
    %94 = vector.extract_strided_slice %62 {offsets = [1, 2, 0, 0], sizes = [1, 1, 4, 8], strides = [1, 1, 1, 1]} : vector<3x3x4x8xf32> to vector<1x1x4x8xf32>
    %95 = vector.shape_cast %94 : vector<1x1x4x8xf32> to vector<4x8xf32>
    %cst_84 = arith.constant dense<0.000000e+00> : vector<128x8xf32>
    %96 = tpu.matmul %93, %95, %cst_84 {dimension_numbers = #tpu.dot_dimension_numbers<[1], [0], [0], [1], [0, 0, 1, 1], [], []>} : vector<128x4xf32>, vector<4x8xf32>, vector<128x8xf32> -> vector<128x8xf32>
    %97 = arith.addf %91, %96 : vector<128x8xf32>
    %c0_85 = arith.constant 0 : index
    %c2_86 = arith.constant 2 : index
    %c0_87 = arith.constant 0 : index
    %c0_88 = arith.constant 0 : index
    %98 = vector.load %arg12[%c0_85, %c2_86, %c0_87, %c0_88] : memref<2x10x10x4xf32, #tpu.memory_space<vmem>>, vector<2x8x8x4xf32>
    %99 = vector.shape_cast %98 : vector<2x8x8x4xf32> to vector<128x4xf32>
    %100 = vector.extract_strided_slice %62 {offsets = [2, 0, 0, 0], sizes = [1, 1, 4, 8], strides = [1, 1, 1, 1]} : vector<3x3x4x8xf32> to vector<1x1x4x8xf32>
    %101 = vector.shape_cast %100 : vector<1x1x4x8xf32> to vector<4x8xf32>
    %cst_89 = arith.constant dense<0.000000e+00> : vector<128x8xf32>
    %102 = tpu.matmul %99, %101, %cst_89 {dimension_numbers = #tpu.dot_dimension_numbers<[1], [0], [0], [1], [0, 0, 1, 1], [], []>} : vector<128x4xf32>, vector<4x8xf32>, vector<128x8xf32> -> vector<128x8xf32>
    %103 = arith.addf %97, %102 : vector<128x8xf32>
    %c0_90 = arith.constant 0 : index
    %c2_91 = arith.constant 2 : index
    %c1_92 = arith.constant 1 : index
    %c0_93 = arith.constant 0 : index
    %104 = vector.load %arg12[%c0_90, %c2_91, %c1_92, %c0_93] : memref<2x10x10x4xf32, #tpu.memory_space<vmem>>, vector<2x8x8x4xf32>
    %105 = vector.shape_cast %104 : vector<2x8x8x4xf32> to vector<128x4xf32>
    %106 = vector.extract_strided_slice %62 {offsets = [2, 1, 0, 0], sizes = [1, 1, 4, 8], strides = [1, 1, 1, 1]} : vector<3x3x4x8xf32> to vector<1x1x4x8xf32>
    %107 = vector.shape_cast %106 : vector<1x1x4x8xf32> to vector<4x8xf32>
    %cst_94 = arith.constant dense<0.000000e+00> : vector<128x8xf32>
    %108 = tpu.matmul %105, %107, %cst_94 {dimension_numbers = #tpu.dot_dimension_numbers<[1], [0], [0], [1], [0, 0, 1, 1], [], []>} : vector<128x4xf32>, vector<4x8xf32>, vector<128x8xf32> -> vector<128x8xf32>
    %109 = arith.addf %103, %108 : vector<128x8xf32>
    %c0_95 = arith.constant 0 : index
    %c2_96 = arith.constant 2 : index
    %c2_97 = arith.constant 2 : index
    %c0_98 = arith.constant 0 : index
    %110 = vector.load %arg12[%c0_95, %c2_96, %c2_97, %c0_98] : memref<2x10x10x4xf32, #tpu.memory_space<vmem>>, vector<2x8x8x4xf32>
    %111 = vector.shape_cast %110 : vector<2x8x8x4xf32> to vector<128x4xf32>
    %112 = vector.extract_strided_slice %62 {offsets = [2, 2, 0, 0], sizes = [1, 1, 4, 8], strides = [1, 1, 1, 1]} : vector<3x3x4x8xf32> to vector<1x1x4x8xf32>
    %113 = vector.shape_cast %112 : vector<1x1x4x8xf32> to vector<4x8xf32>
    %cst_99 = arith.constant dense<0.000000e+00> : vector<128x8xf32>
    %114 = tpu.matmul %111, %113, %cst_99 {dimension_numbers = #tpu.dot_dimension_numbers<[1], [0], [0], [1], [0, 0, 1, 1], [], []>} : vector<128x4xf32>, vector<4x8xf32>, vector<128x8xf32> -> vector<128x8xf32>
    %115 = arith.addf %109, %114 : vector<128x8xf32>
    %c0_100 = arith.constant 0 : index
    %c0_101 = arith.constant 0 : index
    %116 = vector.load %arg4[%c0_100, %c0_101] : memref<1x8xf32, #tpu.memory_space<vmem>>, vector<1x8xf32>
    %c0_102 = arith.constant 0 : index
    %c0_103 = arith.constant 0 : index
    %117 = vector.load %arg5[%c0_102, %c0_103] : memref<1x8xf32, #tpu.memory_space<vmem>>, vector<1x8xf32>
    %cst_104 = arith.constant dense<0.000000e+00> : vector<8xf32>
    %118 = vector.multi_reduction <add>, %115, %cst_104 [0] : vector<128x8xf32> to vector<8xf32>
    %119 = vector.shape_cast %118 : vector<8xf32> to vector<1x8xf32>
    %cst_105 = arith.constant 1.280000e+02 : f32
    %120 = vector.broadcast %cst_105 : f32 to vector<1x8xf32>
    %121 = arith.divf %119, %120 : vector<1x8xf32>
    %122 = vector.broadcast %121 : vector<1x8xf32> to vector<128x8xf32>
    %123 = arith.subf %115, %122 : vector<128x8xf32>
    %124 = arith.mulf %123, %123 : vector<128x8xf32>
    %cst_106 = arith.constant dense<0.000000e+00> : vector<8xf32>
    %125 = vector.multi_reduction <add>, %124, %cst_106 [0] : vector<128x8xf32> to vector<8xf32>
    %126 = vector.shape_cast %125 : vector<8xf32> to vector<1x8xf32>
    %cst_107 = arith.constant 1.280000e+02 : f32
    %127 = vector.broadcast %cst_107 : f32 to vector<1x8xf32>
    %128 = arith.divf %126, %127 : vector<1x8xf32>
    %cst_108 = arith.constant 9.99999974E-6 : f32
    %129 = vector.broadcast %cst_108 : f32 to vector<1x8xf32>
    %130 = arith.addf %128, %129 : vector<1x8xf32>
    %131 = math.rsqrt %130 : vector<1x8xf32>
    %132 = arith.mulf %116, %131 : vector<1x8xf32>
    %133 = vector.broadcast %132 : vector<1x8xf32> to vector<128x8xf32>
    %134 = arith.mulf %123, %133 : vector<128x8xf32>
    %135 = vector.broadcast %117 : vector<1x8xf32> to vector<128x8xf32>
    %136 = arith.addf %134, %135 : vector<128x8xf32>
    %cst_109 = arith.constant 0.000000e+00 : f32
    %137 = vector.broadcast %cst_109 : f32 to vector<2x10x10x8xf32>
    %c0_110 = arith.constant 0 : index
    %c0_111 = arith.constant 0 : index
    %c0_112 = arith.constant 0 : index
    %c0_113 = arith.constant 0 : index
    %138 = vector.load %arg13[%c0_110, %c0_111, %c0_112, %c0_113] : memref<2x10x10x8xf32, #tpu.memory_space<vmem>>, vector<2x10x10x8xf32>
    tpu.vector_store %arg13[%c0_110, %c0_111, %c0_112, %c0_113], %137 {strides = array<i32>} : memref<2x10x10x8xf32, #tpu.memory_space<vmem>>, vector<2x10x10x8xf32>,
    %139 = vector.shape_cast %136 : vector<128x8xf32> to vector<2x8x8x8xf32>
    %c0_114 = arith.constant 0 : index
    %c1_115 = arith.constant 1 : index
    %c1_116 = arith.constant 1 : index
    %c0_117 = arith.constant 0 : index
    %140 = vector.load %arg13[%c0_114, %c1_115, %c1_116, %c0_117] : memref<2x10x10x8xf32, #tpu.memory_space<vmem>>, vector<2x8x8x8xf32>
    tpu.vector_store %arg13[%c0_114, %c1_115, %c1_116, %c0_117], %139 {strides = array<i32>} : memref<2x10x10x8xf32, #tpu.memory_space<vmem>>, vector<2x8x8x8xf32>,
    %c0_118 = arith.constant 0 : index
    %c0_119 = arith.constant 0 : index
    %c0_120 = arith.constant 0 : index
    %c0_121 = arith.constant 0 : index
    %141 = vector.load %arg6[%c0_118, %c0_119, %c0_120, %c0_121] : memref<3x3x8x8xf32, #tpu.memory_space<vmem>>, vector<3x3x8x8xf32>
    %c0_122 = arith.constant 0 : index
    %c0_123 = arith.constant 0 : index
    %c0_124 = arith.constant 0 : index
    %c0_125 = arith.constant 0 : index
    %142 = vector.load %arg13[%c0_122, %c0_123, %c0_124, %c0_125] : memref<2x10x10x8xf32, #tpu.memory_space<vmem>>, vector<2x8x8x8xf32>
    %143 = vector.shape_cast %142 : vector<2x8x8x8xf32> to vector<128x8xf32>
    %144 = vector.extract_strided_slice %141 {offsets = [0, 0, 0, 0], sizes = [1, 1, 8, 8], strides = [1, 1, 1, 1]} : vector<3x3x8x8xf32> to vector<1x1x8x8xf32>
    %145 = vector.shape_cast %144 : vector<1x1x8x8xf32> to vector<8x8xf32>
    %cst_126 = arith.constant dense<0.000000e+00> : vector<128x8xf32>
    %146 = tpu.matmul %143, %145, %cst_126 {dimension_numbers = #tpu.dot_dimension_numbers<[1], [0], [0], [1], [0, 0, 1, 1], [], []>} : vector<128x8xf32>, vector<8x8xf32>, vector<128x8xf32> -> vector<128x8xf32>
    %c0_127 = arith.constant 0 : index
    %c0_128 = arith.constant 0 : index
    %c1_129 = arith.constant 1 : index
    %c0_130 = arith.constant 0 : index
    %147 = vector.load %arg13[%c0_127, %c0_128, %c1_129, %c0_130] : memref<2x10x10x8xf32, #tpu.memory_space<vmem>>, vector<2x8x8x8xf32>
    %148 = vector.shape_cast %147 : vector<2x8x8x8xf32> to vector<128x8xf32>
    %149 = vector.extract_strided_slice %141 {offsets = [0, 1, 0, 0], sizes = [1, 1, 8, 8], strides = [1, 1, 1, 1]} : vector<3x3x8x8xf32> to vector<1x1x8x8xf32>
    %150 = vector.shape_cast %149 : vector<1x1x8x8xf32> to vector<8x8xf32>
    %cst_131 = arith.constant dense<0.000000e+00> : vector<128x8xf32>
    %151 = tpu.matmul %148, %150, %cst_131 {dimension_numbers = #tpu.dot_dimension_numbers<[1], [0], [0], [1], [0, 0, 1, 1], [], []>} : vector<128x8xf32>, vector<8x8xf32>, vector<128x8xf32> -> vector<128x8xf32>
    %152 = arith.addf %146, %151 : vector<128x8xf32>
    %c0_132 = arith.constant 0 : index
    %c0_133 = arith.constant 0 : index
    %c2_134 = arith.constant 2 : index
    %c0_135 = arith.constant 0 : index
    %153 = vector.load %arg13[%c0_132, %c0_133, %c2_134, %c0_135] : memref<2x10x10x8xf32, #tpu.memory_space<vmem>>, vector<2x8x8x8xf32>
    %154 = vector.shape_cast %153 : vector<2x8x8x8xf32> to vector<128x8xf32>
    %155 = vector.extract_strided_slice %141 {offsets = [0, 2, 0, 0], sizes = [1, 1, 8, 8], strides = [1, 1, 1, 1]} : vector<3x3x8x8xf32> to vector<1x1x8x8xf32>
    %156 = vector.shape_cast %155 : vector<1x1x8x8xf32> to vector<8x8xf32>
    %cst_136 = arith.constant dense<0.000000e+00> : vector<128x8xf32>
    %157 = tpu.matmul %154, %156, %cst_136 {dimension_numbers = #tpu.dot_dimension_numbers<[1], [0], [0], [1], [0, 0, 1, 1], [], []>} : vector<128x8xf32>, vector<8x8xf32>, vector<128x8xf32> -> vector<128x8xf32>
    %158 = arith.addf %152, %157 : vector<128x8xf32>
    %c0_137 = arith.constant 0 : index
    %c1_138 = arith.constant 1 : index
    %c0_139 = arith.constant 0 : index
    %c0_140 = arith.constant 0 : index
    %159 = vector.load %arg13[%c0_137, %c1_138, %c0_139, %c0_140] : memref<2x10x10x8xf32, #tpu.memory_space<vmem>>, vector<2x8x8x8xf32>
    %160 = vector.shape_cast %159 : vector<2x8x8x8xf32> to vector<128x8xf32>
    %161 = vector.extract_strided_slice %141 {offsets = [1, 0, 0, 0], sizes = [1, 1, 8, 8], strides = [1, 1, 1, 1]} : vector<3x3x8x8xf32> to vector<1x1x8x8xf32>
    %162 = vector.shape_cast %161 : vector<1x1x8x8xf32> to vector<8x8xf32>
    %cst_141 = arith.constant dense<0.000000e+00> : vector<128x8xf32>
    %163 = tpu.matmul %160, %162, %cst_141 {dimension_numbers = #tpu.dot_dimension_numbers<[1], [0], [0], [1], [0, 0, 1, 1], [], []>} : vector<128x8xf32>, vector<8x8xf32>, vector<128x8xf32> -> vector<128x8xf32>
    %164 = arith.addf %158, %163 : vector<128x8xf32>
    %c0_142 = arith.constant 0 : index
    %c1_143 = arith.constant 1 : index
    %c1_144 = arith.constant 1 : index
    %c0_145 = arith.constant 0 : index
    %165 = vector.load %arg13[%c0_142, %c1_143, %c1_144, %c0_145] : memref<2x10x10x8xf32, #tpu.memory_space<vmem>>, vector<2x8x8x8xf32>
    %166 = vector.shape_cast %165 : vector<2x8x8x8xf32> to vector<128x8xf32>
    %167 = vector.extract_strided_slice %141 {offsets = [1, 1, 0, 0], sizes = [1, 1, 8, 8], strides = [1, 1, 1, 1]} : vector<3x3x8x8xf32> to vector<1x1x8x8xf32>
    %168 = vector.shape_cast %167 : vector<1x1x8x8xf32> to vector<8x8xf32>
    %cst_146 = arith.constant dense<0.000000e+00> : vector<128x8xf32>
    %169 = tpu.matmul %166, %168, %cst_146 {dimension_numbers = #tpu.dot_dimension_numbers<[1], [0], [0], [1], [0, 0, 1, 1], [], []>} : vector<128x8xf32>, vector<8x8xf32>, vector<128x8xf32> -> vector<128x8xf32>
    %170 = arith.addf %164, %169 : vector<128x8xf32>
    %c0_147 = arith.constant 0 : index
    %c1_148 = arith.constant 1 : index
    %c2_149 = arith.constant 2 : index
    %c0_150 = arith.constant 0 : index
    %171 = vector.load %arg13[%c0_147, %c1_148, %c2_149, %c0_150] : memref<2x10x10x8xf32, #tpu.memory_space<vmem>>, vector<2x8x8x8xf32>
    %172 = vector.shape_cast %171 : vector<2x8x8x8xf32> to vector<128x8xf32>
    %173 = vector.extract_strided_slice %141 {offsets = [1, 2, 0, 0], sizes = [1, 1, 8, 8], strides = [1, 1, 1, 1]} : vector<3x3x8x8xf32> to vector<1x1x8x8xf32>
    %174 = vector.shape_cast %173 : vector<1x1x8x8xf32> to vector<8x8xf32>
    %cst_151 = arith.constant dense<0.000000e+00> : vector<128x8xf32>
    %175 = tpu.matmul %172, %174, %cst_151 {dimension_numbers = #tpu.dot_dimension_numbers<[1], [0], [0], [1], [0, 0, 1, 1], [], []>} : vector<128x8xf32>, vector<8x8xf32>, vector<128x8xf32> -> vector<128x8xf32>
    %176 = arith.addf %170, %175 : vector<128x8xf32>
    %c0_152 = arith.constant 0 : index
    %c2_153 = arith.constant 2 : index
    %c0_154 = arith.constant 0 : index
    %c0_155 = arith.constant 0 : index
    %177 = vector.load %arg13[%c0_152, %c2_153, %c0_154, %c0_155] : memref<2x10x10x8xf32, #tpu.memory_space<vmem>>, vector<2x8x8x8xf32>
    %178 = vector.shape_cast %177 : vector<2x8x8x8xf32> to vector<128x8xf32>
    %179 = vector.extract_strided_slice %141 {offsets = [2, 0, 0, 0], sizes = [1, 1, 8, 8], strides = [1, 1, 1, 1]} : vector<3x3x8x8xf32> to vector<1x1x8x8xf32>
    %180 = vector.shape_cast %179 : vector<1x1x8x8xf32> to vector<8x8xf32>
    %cst_156 = arith.constant dense<0.000000e+00> : vector<128x8xf32>
    %181 = tpu.matmul %178, %180, %cst_156 {dimension_numbers = #tpu.dot_dimension_numbers<[1], [0], [0], [1], [0, 0, 1, 1], [], []>} : vector<128x8xf32>, vector<8x8xf32>, vector<128x8xf32> -> vector<128x8xf32>
    %182 = arith.addf %176, %181 : vector<128x8xf32>
    %c0_157 = arith.constant 0 : index
    %c2_158 = arith.constant 2 : index
    %c1_159 = arith.constant 1 : index
    %c0_160 = arith.constant 0 : index
    %183 = vector.load %arg13[%c0_157, %c2_158, %c1_159, %c0_160] : memref<2x10x10x8xf32, #tpu.memory_space<vmem>>, vector<2x8x8x8xf32>
    %184 = vector.shape_cast %183 : vector<2x8x8x8xf32> to vector<128x8xf32>
    %185 = vector.extract_strided_slice %141 {offsets = [2, 1, 0, 0], sizes = [1, 1, 8, 8], strides = [1, 1, 1, 1]} : vector<3x3x8x8xf32> to vector<1x1x8x8xf32>
    %186 = vector.shape_cast %185 : vector<1x1x8x8xf32> to vector<8x8xf32>
    %cst_161 = arith.constant dense<0.000000e+00> : vector<128x8xf32>
    %187 = tpu.matmul %184, %186, %cst_161 {dimension_numbers = #tpu.dot_dimension_numbers<[1], [0], [0], [1], [0, 0, 1, 1], [], []>} : vector<128x8xf32>, vector<8x8xf32>, vector<128x8xf32> -> vector<128x8xf32>
    %188 = arith.addf %182, %187 : vector<128x8xf32>
    %c0_162 = arith.constant 0 : index
    %c2_163 = arith.constant 2 : index
    %c2_164 = arith.constant 2 : index
    %c0_165 = arith.constant 0 : index
    %189 = vector.load %arg13[%c0_162, %c2_163, %c2_164, %c0_165] : memref<2x10x10x8xf32, #tpu.memory_space<vmem>>, vector<2x8x8x8xf32>
    %190 = vector.shape_cast %189 : vector<2x8x8x8xf32> to vector<128x8xf32>
    %191 = vector.extract_strided_slice %141 {offsets = [2, 2, 0, 0], sizes = [1, 1, 8, 8], strides = [1, 1, 1, 1]} : vector<3x3x8x8xf32> to vector<1x1x8x8xf32>
    %192 = vector.shape_cast %191 : vector<1x1x8x8xf32> to vector<8x8xf32>
    %cst_166 = arith.constant dense<0.000000e+00> : vector<128x8xf32>
    %193 = tpu.matmul %190, %192, %cst_166 {dimension_numbers = #tpu.dot_dimension_numbers<[1], [0], [0], [1], [0, 0, 1, 1], [], []>} : vector<128x8xf32>, vector<8x8xf32>, vector<128x8xf32> -> vector<128x8xf32>
    %194 = arith.addf %188, %193 : vector<128x8xf32>
    %c0_167 = arith.constant 0 : index
    %c0_168 = arith.constant 0 : index
    %195 = vector.load %arg7[%c0_167, %c0_168] : memref<1x8xf32, #tpu.memory_space<vmem>>, vector<1x8xf32>
    %196 = vector.broadcast %195 : vector<1x8xf32> to vector<128x8xf32>
    %197 = arith.addf %194, %196 : vector<128x8xf32>
    %198 = arith.addf %197, %18 : vector<128x8xf32>
    %199 = tpu.transpose %198, [1, 0] : vector<128x8xf32> -> vector<8x128xf32>
    %200 = vector.extract_strided_slice %199 {offsets = [0, 0], sizes = [8, 64], strides = [1, 1]} : vector<8x128xf32> to vector<8x64xf32>
    %c0_169 = arith.constant 0 : index
    %c0_170 = arith.constant 0 : index
    %c0_171 = arith.constant 0 : index
    %201 = vector.load %arg10[%c0_169, %c0_170, %c0_171] : memref<2x8x64xf32, #tpu.memory_space<vmem>>, vector<1x8x64xf32>
    %202 = vector.shape_cast %201 : vector<1x8x64xf32> to vector<8x64xf32>
    %203 = vector.shape_cast %200 : vector<8x64xf32> to vector<1x8x64xf32>
    tpu.vector_store %arg10[%c0_169, %c0_170, %c0_171], %203 {strides = array<i32>} : memref<2x8x64xf32, #tpu.memory_space<vmem>>, vector<1x8x64xf32>,
    %204 = vector.extract_strided_slice %199 {offsets = [0, 64], sizes = [8, 64], strides = [1, 1]} : vector<8x128xf32> to vector<8x64xf32>
    %c1_172 = arith.constant 1 : index
    %c0_173 = arith.constant 0 : index
    %c0_174 = arith.constant 0 : index
    %205 = vector.load %arg10[%c1_172, %c0_173, %c0_174] : memref<2x8x64xf32, #tpu.memory_space<vmem>>, vector<1x8x64xf32>
    %206 = vector.shape_cast %205 : vector<1x8x64xf32> to vector<8x64xf32>
    %207 = vector.shape_cast %204 : vector<8x64xf32> to vector<1x8x64xf32>
    tpu.vector_store %arg10[%c1_172, %c0_173, %c0_174], %207 {strides = array<i32>} : memref<2x8x64xf32, #tpu.memory_space<vmem>>, vector<1x8x64xf32>,
    return
  }
}

</mosaic_0001>

<bundles_post_ra>
// kernel: res_down_layer_forward.1
= control target key start
LH: loop header
LB: loop body
LE: loop exit
PB: predicated region body
PF: predicated region fallthrough
CT: control target
= control target key end

     0   :  { %vm10019_vm0 = vcmask 1043456   ;;  %vm10020_vm1 = vcmask 31744   ;;  %vm1327_vm2 = vcmask 25600   ;;  %s7166_s13 = smov 64   ;;  %s9955_s8 = inlined_call_operand.vmem [shape: f32[4,8], index: 8, kind: input, shape index: {}]   ;;  %s9956_s0 = inlined_call_operand.vmem [shape: f32[2,16,16,4], index: 0, kind: input, shape index: {}]   ;;  %s9957_s3 = inlined_call_operand.vmem [shape: f32[3,3,4,8], index: 3, kind: input, shape index: {}]   ;;  %s9958_s1 = inlined_call_operand.vmem [shape: f32[1,4], index: 1, kind: input, shape index: {}]   ;;  %s9959_s2 = inlined_call_operand.vmem [shape: f32[1,4], index: 2, kind: input, shape index: {}]   ;;  %s9960_s6 = inlined_call_operand.vmem [shape: f32[3,3,8,8], index: 6, kind: input, shape index: {}]   ;;  %s9961_s4 = inlined_call_operand.vmem [shape: f32[1,8], index: 4, kind: input, shape index: {}]   ;;  %s9962_s5 = inlined_call_operand.vmem [shape: f32[1,8], index: 5, kind: input, shape index: {}]   ;;  %s9963_s9 = inlined_call_operand.vmem [shape: f32[1,8], index: 9, kind: input, shape index: {}]   ;;  %s9964_s7 = inlined_call_operand.vmem [shape: f32[1,8], index: 7, kind: input, shape index: {}]   ;;  %s9965_s10 = inlined_call_operand.vmem [shape: f32[2,8,64], index: 10, kind: output, shape index: {}]  }
   0x1   :  { %v259_v0 = vld [vmem:[%s9955_s8] sm:$0xf]  ;;  %v7233_v2 = vld [vmem:[%s9956_s0 + $0x8] sm:$0xff]  ;;  %v7239_v3 = vld [vmem:[%s9956_s0 + $0x10] sm:$0xff] }
   0x2   :  { %v7228_v1 = vld [vmem:[%s9956_s0] sm:$0xff]  ;;  %6853 = vmatprep.subr.msk.mxu1 %vm10019_vm0, %v259_v0  ;;  %v7244_v4 = vld [vmem:[%s9956_s0 + $0x18] sm:$0xff]  ;;  %v467_v7 = vsel %vm10020_vm1, %v7233_v2, 0.0  ;;  %6359 = vmatprep.subr.msk.mxu0 %vm10019_vm0, %v259_v0  ;;  %v7260_v8 = vld [vmem:[%s9956_s0 + $0x28] sm:$0xff]  ;;  %v469_v14 = vsel %vm10020_vm1, %v7239_v3, 0.0 }
   0x3   :  { %v7249_v5 = vld [vmem:[%s9956_s0 + $0x20] sm:$0xff]  ;;  %v466_v6 = vsel %vm10020_vm1, %v7228_v1, 0.0  ;;  %6854 = vmatpush3.msk.msra.mxu1 %vm10019_vm0, %v259_v0  ;;  %v7265_v9 = vld [vmem:[%s9956_s0 + $0x30] sm:$0xff]  ;;  %v7270_v10 = vld [vmem:[%s9956_s0 + $0x38] sm:$0xff]  ;;  %v99_v11 = vadd.f32 %v7239_v3, %v7228_v1  ;;  %v100_v12 = vadd.f32 %v7244_v4, %v7233_v2  ;;  %6360 = vmatpush3.msk.msra.mxu0 %vm10019_vm0, %v259_v0  ;;  %v471_v20 = vsel %vm10020_vm1, %v7244_v4, 0.0 }
   0x4   :  { %v468_v13 = vadd.f32 %v467_v7, %v466_v6  ;;  %v7282_v15 = vld [vmem:[%s9956_s0 + $0x40] sm:$0xff]  ;;  %v7287_v16 = vld [vmem:[%s9956_s0 + $0x48] sm:$0xff]  ;;  %v7292_v17 = vld [vmem:[%s9956_s0 + $0x50] sm:$0xff]  ;;  %v101_v18 = vadd.f32 %v7265_v9, %v7249_v5  ;;  %v102_v19 = vadd.f32 %v7270_v10, %v7260_v8  ;;  %v473_v30 = vsel %vm10020_vm1, %v7249_v5, 0.0 }
   0x5   :  { %v7303_v21 = vld [vmem:[%s9956_s0 + $0x58] sm:$0xff]  ;;  %v7308_v22 = vld [vmem:[%s9956_s0 + $0x60] sm:$0xff]  ;;  %v7313_v23 = vld [vmem:[%s9956_s0 + $0x68] sm:$0xff]  ;;  %v103_v24 = vadd.f32 %v7292_v17, %v7282_v15  ;;  %132 = vst.msk [vmem:[#allocation2] sm:$0xff] %vm10020_vm1, %v99_v11  ;;  %v475_v42 = vsel %vm10020_vm1, %v7260_v8, 0.0  ;;  %v477_v52 = vsel %vm10020_vm1, %v7265_v9, 0.0 }
   0x6   :  { %v470_v25 = vadd.f32 %v469_v14, %v468_v13  ;;  %133 = vst.msk [vmem:[#allocation2 + $0x8] sm:$0xff] %vm10020_vm1, %v100_v12  ;;  %v7322_v26 = vld [vmem:[%s9956_s0 + $0x70] sm:$0xff]  ;;  %v7327_v27 = vld [vmem:[%s9956_s0 + $0x78] sm:$0xff]  ;;  %v7332_v28 = vld [vmem:[%s9956_s0 + $0x80] sm:$0xff]  ;;  %v104_v29 = vadd.f32 %v7303_v21, %v7287_v16  ;;  %v479_v63 = vsel %vm10020_vm1, %v7270_v10, 0.0  ;;  %v481_v13 = vsel %vm10020_vm1, %v7282_v15, 0.0 }
   0x7   :  { %135 = vst.msk [vmem:[#allocation2 + $0x18] sm:$0xff] %vm10020_vm1, %v102_v19  ;;  %134 = vst.msk [vmem:[#allocation2 + $0x10] sm:$0xff] %vm10020_vm1, %v101_v18  ;;  %v7343_v31 = vld [vmem:[%s9956_s0 + $0x88] sm:$0xff]  ;;  %v7348_v32 = vld [vmem:[%s9956_s0 + $0x90] sm:$0xff]  ;;  %v105_v34 = vadd.f32 %v7322_v26, %v7308_v22  ;;  %v106_v35 = vadd.f32 %v7327_v27, %v7313_v23  ;;  %v483_v18 = vsel %vm10020_vm1, %v7287_v16, 0.0 }
   0x8   :  { %v7353_v33 = vld [vmem:[%s9956_s0 + $0x98] sm:$0xff]  ;;  %136 = vst.msk [vmem:[#allocation2 + $0x20] sm:$0xff] %vm10020_vm1, %v103_v24  ;;  %v472_v36 = vadd.f32 %v471_v20, %v470_v25  ;;  %v7363_v37 = vld [vmem:[%s9956_s0 + $0xa0] sm:$0xff]  ;;  %v7368_v38 = vld [vmem:[%s9956_s0 + $0xa8] sm:$0xff]  ;;  %v107_v40 = vadd.f32 %v7348_v32, %v7332_v28  ;;  %v485_v20 = vsel %vm10020_vm1, %v7292_v17, 0.0  ;;  %v487_v25 = vsel %vm10020_vm1, %v7303_v21, 0.0 }
   0x9   :  { %v7373_v39 = vld [vmem:[%s9956_s0 + $0xb0] sm:$0xff]  ;;  %v108_v41 = vadd.f32 %v7353_v33, %v7343_v31  ;;  %137 = vst.msk [vmem:[#allocation2 + $0x28] sm:$0xff] %vm10020_vm1, %v104_v29  ;;  %v7385_v43 = vld [vmem:[%s9956_s0 + $0xb8] sm:$0xff]  ;;  %v7390_v44 = vld [vmem:[%s9956_s0 + $0xc0] sm:$0xff] }
   0xa   :  { %v7395_v45 = vld [vmem:[%s9956_s0 + $0xc8] sm:$0xff]  ;;  %v109_v46 = vadd.f32 %v7373_v39, %v7363_v37  ;;  %138 = vst.msk [vmem:[#allocation2 + $0x30] sm:$0xff] %vm10020_vm1, %v105_v34  ;;  %139 = vst.msk [vmem:[#allocation2 + $0x38] sm:$0xff] %vm10020_vm1, %v106_v35  ;;  %v474_v47 = vadd.f32 %v473_v30, %v472_v36  ;;  %v7404_v48 = vld [vmem:[%s9956_s0 + $0xd0] sm:$0xff]  ;;  %v110_v51 = vadd.f32 %v7385_v43, %v7368_v38  ;;  %v489_v30 = vsel %vm10020_vm1, %v7308_v22, 0.0 }
   0xb   :  { %v7409_v49 = vld [vmem:[%s9956_s0 + $0xd8] sm:$0xff]  ;;  %v7414_v50 = vld [vmem:[%s9956_s0 + $0xe0] sm:$0xff]  ;;  %140 = vst.msk [vmem:[#allocation2 + $0x40] sm:$0xff] %vm10020_vm1, %v107_v40  ;;  %141 = vst.msk [vmem:[#allocation2 + $0x48] sm:$0xff] %vm10020_vm1, %v108_v41  ;;  %v111_v56 = vadd.f32 %v7404_v48, %v7390_v44  ;;  %v491_v36 = vsel %vm10020_vm1, %v7313_v23, 0.0 }
   0xc   :  { %v7425_v53 = vld [vmem:[%s9956_s0 + $0xe8] sm:$0xff]  ;;  %v7430_v54 = vld [vmem:[%s9956_s0 + $0xf0] sm:$0xff]  ;;  %v7435_v55 = vld [vmem:[%s9956_s0 + $0xf8] sm:$0xff]  ;;  %v112_v57 = vadd.f32 %v7409_v49, %v7395_v45  ;;  %142 = vst.msk [vmem:[#allocation2 + $0x50] sm:$0xff] %vm10020_vm1, %v109_v46  ;;  %v476_v58 = vadd.f32 %v475_v42, %v474_v47  ;;  %v493_v42 = vsel %vm10020_vm1, %v7322_v26, 0.0 }
   0xd   :  { %v7445_v59 = vld [vmem:[%s9956_s0 + $0x100] sm:$0xff]  ;;  %v7450_v60 = vld [vmem:[%s9956_s0 + $0x110] sm:$0xff]  ;;  %v113_v61 = vadd.f32 %v7430_v54, %v7414_v50  ;;  %v114_v62 = vadd.f32 %v7435_v55, %v7425_v53  ;;  %143 = vst.msk [vmem:[#allocation2 + $0x58] sm:$0xff] %vm10020_vm1, %v110_v51  ;;  %v7462_v0 = vld [vmem:[%s9956_s0 + $0x108] sm:$0xff]  ;;  %v495_v51 = vsel %vm10020_vm1, %v7327_v27, 0.0 }
   0xe   :  { %v7467_v6 = vld [vmem:[%s9956_s0 + $0x118] sm:$0xff]  ;;  %v115_v7 = vadd.f32 %v7450_v60, %v7445_v59  ;;  %144 = vst.msk [vmem:[#allocation2 + $0x60] sm:$0xff] %vm10020_vm1, %v111_v56  ;;  %145 = vst.msk [vmem:[#allocation2 + $0x68] sm:$0xff] %vm10020_vm1, %v112_v57  ;;  %v478_v11 = vadd.f32 %v477_v52, %v476_v58  ;;  %v497_v57 = vsel %vm10020_vm1, %v7332_v28, 0.0 }
   0xf   :  { %v116_v12 = vadd.f32 %v7467_v6, %v7462_v0  ;;  %146 = vst.msk [vmem:[#allocation2 + $0x70] sm:$0xff] %vm10020_vm1, %v113_v61  ;;  %147 = vst.msk [vmem:[#allocation2 + $0x78] sm:$0xff] %vm10020_vm1, %v114_v62  ;;  %v499_v61 = vsel %vm10020_vm1, %v7343_v31, 0.0 }
  0x10   :  { %148 = vst.msk [vmem:[#allocation2 + $0x80] sm:$0xff] %vm10020_vm1, %v115_v7  ;;  %v480_v14 = vadd.f32 %v479_v63, %v478_v11  ;;  %v501_v63 = vsel %vm10020_vm1, %v7348_v32, 0.0  ;;  %v503_v11 = vsel %vm10020_vm1, %v7353_v33, 0.0 }
  0x11   :  { %149 = vst.msk [vmem:[#allocation2 + $0x88] sm:$0xff] %vm10020_vm1, %v116_v12 }
  0x12   :  { %v482_v19 = vadd.f32 %v481_v13, %v480_v14  ;;  %v505_v13 = vsel %vm10020_vm1, %v7363_v37, 0.0 }
  0x14   :  { %v484_v24 = vadd.f32 %v483_v18, %v482_v19  ;;  %v507_v18 = vsel %vm10020_vm1, %v7368_v38, 0.0 }
  0x16   :  { %v486_v29 = vadd.f32 %v485_v20, %v484_v24  ;;  %v509_v20 = vsel %vm10020_vm1, %v7373_v39, 0.0 }
  0x18   :  { %v488_v34 = vadd.f32 %v487_v25, %v486_v29  ;;  %v180_v35 = vld [vmem:[#allocation2 + $0x80] ss:$2 sm:$0xff]  ;;  %v212_v41 = vld [vmem:[#allocation2 + $0x81] ss:$2 sm:$0xff]  ;;  %v511_v25 = vsel %vm10020_vm1, %v7385_v43, 0.0 }
  0x19   :  { %v235_v46 = vadd.f32 %v212_v41, %v180_v35  ;;  %v515_v35 = vsel %vm10020_vm1, %v7395_v45, 0.0 }
  0x1a   :  { %v490_v40 = vadd.f32 %v489_v30, %v488_v34  ;;  %v513_v30 = vsel %vm10020_vm1, %v7390_v44, 0.0 }
  0x1b   :  { %v251_v52 = vmul.f32 0.25, %v235_v46 }
  0x1c   :  { %v492_v47 = vadd.f32 %v491_v36, %v490_v40  ;;  %v517_v40 = vsel %vm10020_vm1, %v7404_v48, 0.0 }
  0x1d   :  { %6373 = vmatprep.mubr.msk.f32.mxu1 %vm10020_vm1, %v251_v52  ;;  %v523_v52 = vsel %vm10020_vm1, %v7425_v53, 0.0 }
  0x1e   :  { %v494_v56 = vadd.f32 %v493_v42, %v492_v47  ;;  %v519_v42 = vsel %vm10020_vm1, %v7409_v49, 0.0  ;;  %v521_v47 = vsel %vm10020_vm1, %v7414_v50, 0.0 }
  0x20   :  { %v496_v58 = vadd.f32 %v495_v51, %v494_v56 }
  0x22   :  { %v498_v62 = vadd.f32 %v497_v57, %v496_v58  ;;  %v525_v57 = vsel %vm10020_vm1, %v7430_v54, 0.0 }
  0x24   :  { %v500_v7 = vadd.f32 %v499_v61, %v498_v62  ;;  %v527_v61 = vsel %vm10020_vm1, %v7435_v55, 0.0 }
  0x26   :  { %v502_v12 = vadd.f32 %v501_v63, %v500_v7  ;;  %v529_v63 = vsel %vm10020_vm1, %v7445_v59, 0.0 }
  0x28   :  { %v504_v14 = vadd.f32 %v503_v11, %v502_v12  ;;  %v531_v11 = vsel %vm10020_vm1, %v7462_v0, 0.0 }
  0x2a   :  { %v506_v19 = vadd.f32 %v505_v13, %v504_v14  ;;  %v533_v13 = vsel %vm10020_vm1, %v7450_v60, 0.0  ;;  %v7537_v14 = vld [vmem:[%s9956_s0 + $0x120] sm:$0xff] }
  0x2c   :  { %v508_v24 = vadd.f32 %v507_v18, %v506_v19  ;;  %v535_v19 = vsel %vm10020_vm1, %v7467_v6, 0.0 }
  0x2e   :  { %v510_v29 = vadd.f32 %v509_v20, %v508_v24  ;;  %v7544_v20 = vld [vmem:[%s9956_s0 + $0x128] sm:$0xff] }
  0x30   :  { %v512_v34 = vadd.f32 %v511_v25, %v510_v29  ;;  %v537_v25 = vsel %vm10020_vm1, %v7537_v14, 0.0  ;;  %v7551_v29 = vld [vmem:[%s9956_s0 + $0x130] sm:$0xff] }
  0x32   :  { %v514_v36 = vadd.f32 %v513_v30, %v512_v34  ;;  %v539_v34 = vsel %vm10020_vm1, %v7544_v20, 0.0 }
  0x34   :  { %v516_v41 = vadd.f32 %v515_v35, %v514_v36  ;;  %v7558_v35 = vld [vmem:[%s9956_s0 + $0x138] sm:$0xff] }
  0x36   :  { %v518_v46 = vadd.f32 %v517_v40, %v516_v41  ;;  %v541_v40 = vsel %vm10020_vm1, %v7551_v29, 0.0  ;;  %v7565_v41 = vld [vmem:[%s9956_s0 + $0x140] sm:$0xff] }
  0x38   :  { %v520_v51 = vadd.f32 %v519_v42, %v518_v46  ;;  %v543_v46 = vsel %vm10020_vm1, %v7558_v35, 0.0 }
  0x3a   :  { %v522_v56 = vadd.f32 %v521_v47, %v520_v51  ;;  %v7572_v47 = vld [vmem:[%s9956_s0 + $0x148] sm:$0xff] }
  0x3c   :  { %v524_v58 = vadd.f32 %v523_v52, %v522_v56  ;;  %v545_v52 = vsel %vm10020_vm1, %v7565_v41, 0.0  ;;  %v7579_v56 = vld [vmem:[%s9956_s0 + $0x150] sm:$0xff] }
  0x3e   :  { %v526_v62 = vadd.f32 %v525_v57, %v524_v58  ;;  %v547_v58 = vsel %vm10020_vm1, %v7572_v47, 0.0 }
  0x40   :  { %v528_v7 = vadd.f32 %v527_v61, %v526_v62  ;;  %v7586_v61 = vld [vmem:[%s9956_s0 + $0x158] sm:$0xff] }
  0x42   :  { %v530_v12 = vadd.f32 %v529_v63, %v528_v7  ;;  %v549_v63 = vsel %vm10020_vm1, %v7579_v56, 0.0  ;;  %v7593_v7 = vld [vmem:[%s9956_s0 + $0x160] sm:$0xff] }
  0x44   :  { %v532_v18 = vadd.f32 %v531_v11, %v530_v12  ;;  %v551_v12 = vsel %vm10020_vm1, %v7586_v61, 0.0 }
  0x46   :  { %v534_v24 = vadd.f32 %v533_v13, %v532_v18  ;;  %v7600_v13 = vld [vmem:[%s9956_s0 + $0x168] sm:$0xff] }
  0x48   :  { %v536_v30 = vadd.f32 %v535_v19, %v534_v24  ;;  %v553_v19 = vsel %vm10020_vm1, %v7593_v7, 0.0  ;;  %v7607_v24 = vld [vmem:[%s9956_s0 + $0x170] sm:$0xff] }
  0x4a   :  { %v538_v36 = vadd.f32 %v537_v25, %v536_v30  ;;  %v555_v30 = vsel %vm10020_vm1, %v7600_v13, 0.0 }
  0x4c   :  { %v540_v42 = vadd.f32 %v539_v34, %v538_v36  ;;  %v7614_v34 = vld [vmem:[%s9956_s0 + $0x178] sm:$0xff] }
  0x4e   :  { %v542_v51 = vadd.f32 %v541_v40, %v540_v42  ;;  %v557_v40 = vsel %vm10020_vm1, %v7607_v24, 0.0  ;;  %v7621_v42 = vld [vmem:[%s9956_s0 + $0x180] sm:$0xff] }
  0x50   :  { %v544_v57 = vadd.f32 %v543_v46, %v542_v51  ;;  %v559_v51 = vsel %vm10020_vm1, %v7614_v34, 0.0 }
  0x52   :  { %v546_v62 = vadd.f32 %v545_v52, %v544_v57  ;;  %v7628_v52 = vld [vmem:[%s9956_s0 + $0x188] sm:$0xff] }
  0x53   :  { %10045 = vst [vmem:[#allocation5_spill] sm:$0xff] %v7628_v52 }
  0x54   :  { %v548_v11 = vadd.f32 %v547_v58, %v546_v62  ;;  %v561_v58 = vsel %vm10020_vm1, %v7621_v42, 0.0  ;;  %v7635_v62 = vld [vmem:[%s9956_s0 + $0x190] sm:$0xff] }
  0x55   :  { %10046 = vst [vmem:[#allocation6_spill] sm:$0xff] %v7635_v62 }
  0x56   :  { %v550_v18 = vadd.f32 %v549_v63, %v548_v11  ;;  %v563_v11 = vsel %vm10020_vm1, %v7628_v52, 0.0 }
  0x58   :  { %v552_v25 = vadd.f32 %v551_v12, %v550_v18  ;;  %v7642_v12 = vld [vmem:[%s9956_s0 + $0x198] sm:$0xff] }
  0x59   :  { %10047 = vst [vmem:[#allocation7_spill] sm:$0xff] %v7642_v12 }
  0x5a   :  { %v554_v36 = vadd.f32 %v553_v19, %v552_v25  ;;  %v565_v19 = vsel %vm10020_vm1, %v7635_v62, 0.0  ;;  %v7649_v25 = vld [vmem:[%s9956_s0 + $0x1a0] sm:$0xff] }
  0x5b   :  { %10048 = vst [vmem:[#allocation8_spill] sm:$0xff] %v7649_v25 }
  0x5c   :  { %v556_v46 = vadd.f32 %v555_v30, %v554_v36  ;;  %v567_v36 = vsel %vm10020_vm1, %v7642_v12, 0.0 }
  0x5e   :  { %v558_v57 = vadd.f32 %v557_v40, %v556_v46  ;;  %v7656_v40 = vld [vmem:[%s9956_s0 + $0x1a8] sm:$0xff] }
  0x5f   :  { %10049 = vst [vmem:[#allocation9_spill] sm:$0xff] %v7656_v40 }
  0x60   :  { %v560_v63 = vadd.f32 %v559_v51, %v558_v57  ;;  %v569_v51 = vsel %vm10020_vm1, %v7649_v25, 0.0  ;;  %v7663_v57 = vld [vmem:[%s9956_s0 + $0x1b0] sm:$0xff] }
  0x61   :  { %10050 = vst [vmem:[#allocation10_spill] sm:$0xff] %v7663_v57 }
  0x62   :  { %v562_v18 = vadd.f32 %v561_v58, %v560_v63  ;;  %v571_v63 = vsel %vm10020_vm1, %v7656_v40, 0.0 }
  0x64   :  { %v564_v30 = vadd.f32 %v563_v11, %v562_v18  ;;  %v7670_v11 = vld [vmem:[%s9956_s0 + $0x1b8] sm:$0xff] }
  0x65   :  { %10051 = vst [vmem:[#allocation11_spill] sm:$0xff] %v7670_v11 }
  0x66   :  { %v566_v46 = vadd.f32 %v565_v19, %v564_v30  ;;  %v573_v19 = vsel %vm10020_vm1, %v7663_v57, 0.0  ;;  %v7677_v30 = vld [vmem:[%s9956_s0 + $0x1c0] sm:$0xff] }
  0x67   :  { %10052 = vst [vmem:[#allocation12_spill] sm:$0xff] %v7677_v30 }
  0x68   :  { %v568_v58 = vadd.f32 %v567_v36, %v566_v46  ;;  %v575_v36 = vsel %vm10020_vm1, %v7670_v11, 0.0  ;;  %v7684_v46 = vld [vmem:[%s9956_s0 + $0x1c8] sm:$0xff] }
  0x69   :  { %10053 = vst [vmem:[#allocation13_spill] sm:$0xff] %v7684_v46 }
  0x6a   :  { %v570_v18 = vadd.f32 %v569_v51, %v568_v58  ;;  %v577_v51 = vsel %vm10020_vm1, %v7677_v30, 0.0  ;;  %v7691_v58 = vld [vmem:[%s9956_s0 + $0x1d0] sm:$0xff] }
  0x6b   :  { %10054 = vst [vmem:[#allocation14_spill] sm:$0xff] %v7691_v58 }
  0x6c   :  { %v572_v25 = vadd.f32 %v571_v63, %v570_v18  ;;  %v579_v63 = vsel %vm10020_vm1, %v7684_v46, 0.0  ;;  %v7698_v18 = vld [vmem:[%s9956_s0 + $0x1d8] sm:$0xff] }
  0x6d   :  { %10055 = vst [vmem:[#allocation15_spill] sm:$0xff] %v7698_v18  ;;  %v583_v30 = vsel %vm10020_vm1, %v7698_v18, 0.0 }
  0x6e   :  { %v574_v40 = vadd.f32 %v573_v19, %v572_v25  ;;  %v581_v25 = vsel %vm10020_vm1, %v7691_v58, 0.0 }
  0x70   :  { %v576_v57 = vadd.f32 %v575_v36, %v574_v40  ;;  %v7707_v40 = vld [vmem:[%s9956_s0 + $0x1e0] sm:$0xff] }
  0x71   :  { %10056 = vst [vmem:[#allocation16_spill] sm:$0xff] %v7707_v40  ;;  %v585_v12 = vsel %vm10020_vm1, %v7707_v40, 0.0 }
  0x72   :  { %v578_v11 = vadd.f32 %v577_v51, %v576_v57  ;;  %v7714_v57 = vld [vmem:[%s9956_s0 + $0x1e8] sm:$0xff] }
  0x73   :  { %10057 = vst [vmem:[#allocation17_spill] sm:$0xff] %v7714_v57 }
  0x74   :  { %v580_v19 = vadd.f32 %v579_v63, %v578_v11  ;;  %v587_v11 = vsel %vm10020_vm1, %v7714_v57, 0.0  ;;  %v7721_v63 = vld [vmem:[%s9956_s0 + $0x1f0] sm:$0xff] }
  0x75   :  { %10058 = vst [vmem:[#allocation18_spill] sm:$0xff] %v7721_v63 }
  0x76   :  { %v582_v36 = vadd.f32 %v581_v25, %v580_v19  ;;  %v7728_v25 = vld [vmem:[%s9956_s0 + $0x1f8] sm:$0xff] }
  0x78   :  { %v584_v46 = vadd.f32 %v583_v30, %v582_v36  ;;  %v589_v30 = vsel %vm10020_vm1, %v7721_v63, 0.0 }
  0x7a   :  { %v586_v51 = vadd.f32 %v585_v12, %v584_v46  ;;  %v591_v12 = vsel %vm10020_vm1, %v7728_v25, 0.0 }
  0x7c   :  { %v588_v18 = vadd.f32 %v587_v11, %v586_v51 }
  0x7e   :  { %v590_v19 = vadd.f32 %v589_v30, %v588_v18 }
  0x80   :  { %v592_v46 = vadd.f32 %v591_v12, %v590_v19 }
  0x82   :  { %v593_v36 = vrot.slane %v592_v46, 4 }
  0x84   :  { %v594_v57 = vadd.f32 %v593_v36, %v592_v46 }
  0x86   :  { %v595_v40 = vrot.slane %v594_v57, 2 }
  0x88   :  { %v596_v58 = vadd.f32 %v595_v40, %v594_v57 }
  0x8a   :  { %v597_v52 = vrot.slane %v596_v58, 1 }
  0x8c   :  { %v598_v62 = vadd.f32 %v597_v52, %v596_v58 }
  0x8e   :  { %v7732_v51 = vmul.f32 0.001953125, %v598_v62 }
  0x90   :  { %v7736_v11 = vsub.f32 %v7228_v1, %v7732_v51  ;;  %v7740_v63 = vsub.f32 %v7233_v2, %v7732_v51  ;;  %v7744_v18 = vsub.f32 %v7239_v3, %v7732_v51  ;;  %v7748_v30 = vsub.f32 %v7244_v4, %v7732_v51 }
  0x91   :  { %v7752_v52 = vsub.f32 %v7249_v5, %v7732_v51  ;;  %v7762_v3 = vsub.f32 %v7260_v8, %v7732_v51  ;;  %v7768_v5 = vsub.f32 %v7265_v9, %v7732_v51  ;;  %v7777_v8 = vsub.f32 %v7270_v10, %v7732_v51 }
  0x92   :  { %v665_v1 = vmul.f32 %v7736_v11, %v7736_v11  ;;  %v666_v62 = vmul.f32 %v7740_v63, %v7740_v63  ;;  %v667_v2 = vmul.f32 %v7744_v18, %v7744_v18  ;;  %v668_v4 = vmul.f32 %v7748_v30, %v7748_v30 }
  0x93   :  { %10059 = vst [vmem:[#allocation19_spill] sm:$0xff] %v7752_v52  ;;  %v669_v58 = vmul.f32 %v7752_v52, %v7752_v52  ;;  %v670_v46 = vmul.f32 %v7762_v3, %v7762_v3  ;;  %v7784_v52 = vsub.f32 %v7282_v15, %v7732_v51  ;;  %v7791_v10 = vsub.f32 %v7287_v16, %v7732_v51 }
  0x94   :  { %v729_v40 = vsel %vm10020_vm1, %v665_v1, 0.0  ;;  %v730_v57 = vsel %vm10020_vm1, %v666_v62, 0.0  ;;  %v732_v19 = vsel %vm10020_vm1, %v667_v2, 0.0  ;;  %v734_v9 = vsel %vm10020_vm1, %v668_v4, 0.0 }
  0x95   :  { %v731_v12 = vadd.f32 %v730_v57, %v729_v40  ;;  %v671_v1 = vmul.f32 %v7768_v5, %v7768_v5  ;;  %v736_v62 = vsel %vm10020_vm1, %v669_v58, 0.0  ;;  %v672_v40 = vmul.f32 %v7777_v8, %v7777_v8 }
  0x96   :  { %v738_v4 = vsel %vm10020_vm1, %v670_v46, 0.0  ;;  %v7798_v15 = vsub.f32 %v7292_v17, %v7732_v51  ;;  %v7805_v16 = vsub.f32 %v7303_v21, %v7732_v51  ;;  %v7812_v17 = vsub.f32 %v7308_v22, %v7732_v51 }
  0x97   :  { %v733_v36 = vadd.f32 %v732_v19, %v731_v12  ;;  %v673_v19 = vmul.f32 %v7784_v52, %v7784_v52  ;;  %v740_v58 = vsel %vm10020_vm1, %v671_v1, 0.0  ;;  %v742_v46 = vsel %vm10020_vm1, %v672_v40, 0.0 }
  0x98   :  { %v7819_v21 = vsub.f32 %v7313_v23, %v7732_v51  ;;  %v7826_v22 = vsub.f32 %v7322_v26, %v7732_v51  ;;  %v7833_v23 = vsub.f32 %v7327_v27, %v7732_v51  ;;  %v7840_v26 = vsub.f32 %v7332_v28, %v7732_v51 }
  0x99   :  { %v735_v2 = vadd.f32 %v734_v9, %v733_v36  ;;  %v674_v9 = vmul.f32 %v7791_v10, %v7791_v10  ;;  %v744_v1 = vsel %vm10020_vm1, %v673_v19, 0.0  ;;  %v7847_v27 = vsub.f32 %v7343_v31, %v7732_v51 }
  0x9a   :  { %v7854_v28 = vsub.f32 %v7348_v32, %v7732_v51  ;;  %v7861_v31 = vsub.f32 %v7353_v33, %v7732_v51  ;;  %v7868_v32 = vsub.f32 %v7363_v37, %v7732_v51  ;;  %v7875_v33 = vsub.f32 %v7368_v38, %v7732_v51 }
  0x9b   :  { %v737_v57 = vadd.f32 %v736_v62, %v735_v2  ;;  %v675_v62 = vmul.f32 %v7798_v15, %v7798_v15  ;;  %v746_v40 = vsel %vm10020_vm1, %v674_v9, 0.0  ;;  %v7882_v37 = vsub.f32 %v7373_v39, %v7732_v51 }
  0x9c   :  { %v7889_v38 = vsub.f32 %v7385_v43, %v7732_v51  ;;  %v7896_v39 = vsub.f32 %v7390_v44, %v7732_v51  ;;  %v7903_v43 = vsub.f32 %v7395_v45, %v7732_v51  ;;  %v7910_v44 = vsub.f32 %v7404_v48, %v7732_v51 }
  0x9d   :  { %v739_v12 = vadd.f32 %v738_v4, %v737_v57  ;;  %v676_v4 = vmul.f32 %v7805_v16, %v7805_v16  ;;  %v748_v19 = vsel %vm10020_vm1, %v675_v62, 0.0  ;;  %v7917_v45 = vsub.f32 %v7409_v49, %v7732_v51 }
  0x9e   :  { %v7924_v48 = vsub.f32 %v7414_v50, %v7732_v51  ;;  %v7931_v49 = vsub.f32 %v7425_v53, %v7732_v51  ;;  %v7938_v50 = vsub.f32 %v7430_v54, %v7732_v51  ;;  %v7945_v53 = vsub.f32 %v7435_v55, %v7732_v51 }
  0x9f   :  { %v741_v36 = vadd.f32 %v740_v58, %v739_v12  ;;  %v677_v58 = vmul.f32 %v7812_v17, %v7812_v17  ;;  %v750_v9 = vsel %vm10020_vm1, %v676_v4, 0.0  ;;  %v7952_v54 = vsub.f32 %v7445_v59, %v7732_v51 }
  0xa0   :  { %10060 = vst [vmem:[#allocation20_spill] sm:$0xff] %v7931_v49  ;;  %10061 = vst [vmem:[#allocation21_spill] sm:$0xff] %v7938_v50  ;;  %v7959_v55 = vsub.f32 %v7462_v0, %v7732_v51  ;;  %v7966_v59 = vsub.f32 %v7450_v60, %v7732_v51  ;;  %v7973_v0 = vsub.f32 %v7467_v6, %v7732_v51 }
  0xa1   :  { %v743_v2 = vadd.f32 %v742_v46, %v741_v36  ;;  %v678_v46 = vmul.f32 %v7819_v21, %v7819_v21  ;;  %v752_v62 = vsel %vm10020_vm1, %v677_v58, 0.0  ;;  %10062 = vst [vmem:[#allocation22_spill] sm:$0xff] %v7945_v53  ;;  %10063 = vst [vmem:[#allocation23_spill] sm:$0xff] %v7952_v54  ;;  %v7980_v60 = vsub.f32 %v7537_v14, %v7732_v51 }
  0xa2   :  { %10064 = vst [vmem:[#allocation24_spill] sm:$0xff] %v7959_v55  ;;  %10065 = vst [vmem:[#allocation25_spill] sm:$0xff] %v7966_v59  ;;  %v117_v6 = vadd.f32 %v7551_v29, %v7537_v14 }
  0xa3   :  { %v745_v57 = vadd.f32 %v744_v1, %v743_v2  ;;  %v679_v1 = vmul.f32 %v7826_v22, %v7826_v22  ;;  %v754_v4 = vsel %vm10020_vm1, %v678_v46, 0.0  ;;  %10066 = vst [vmem:[#allocation26_spill] sm:$0xff] %v7973_v0  ;;  %10067 = vst [vmem:[#allocation27_spill] sm:$0xff] %v7980_v60  ;;  %v701_v14 = vmul.f32 %v7980_v60, %v7980_v60 }
  0xa4   :  { %150 = vst.msk [vmem:[#allocation2 + $0x90] sm:$0xff] %vm10020_vm1, %v117_v6 }
  0xa5   :  { %v747_v12 = vadd.f32 %v746_v40, %v745_v57  ;;  %v680_v40 = vmul.f32 %v7833_v23, %v7833_v23  ;;  %v756_v58 = vsel %vm10020_vm1, %v679_v1, 0.0 }
  0xa7   :  { %v749_v36 = vadd.f32 %v748_v19, %v747_v12  ;;  %v681_v19 = vmul.f32 %v7840_v26, %v7840_v26  ;;  %v758_v46 = vsel %vm10020_vm1, %v680_v40, 0.0 }
  0xa9   :  { %v751_v2 = vadd.f32 %v750_v9, %v749_v36  ;;  %v682_v9 = vmul.f32 %v7847_v27, %v7847_v27  ;;  %v760_v1 = vsel %vm10020_vm1, %v681_v19, 0.0 }
  0xab   :  { %v753_v57 = vadd.f32 %v752_v62, %v751_v2  ;;  %v683_v62 = vmul.f32 %v7854_v28, %v7854_v28  ;;  %v762_v40 = vsel %vm10020_vm1, %v682_v9, 0.0 }
  0xad   :  { %v755_v12 = vadd.f32 %v754_v4, %v753_v57  ;;  %v684_v4 = vmul.f32 %v7861_v31, %v7861_v31  ;;  %v764_v19 = vsel %vm10020_vm1, %v683_v62, 0.0 }
  0xaf   :  { %v757_v36 = vadd.f32 %v756_v58, %v755_v12  ;;  %v685_v58 = vmul.f32 %v7868_v32, %v7868_v32  ;;  %v766_v9 = vsel %vm10020_vm1, %v684_v4, 0.0 }
  0xb1   :  { %v759_v2 = vadd.f32 %v758_v46, %v757_v36  ;;  %v686_v46 = vmul.f32 %v7875_v33, %v7875_v33  ;;  %v768_v62 = vsel %vm10020_vm1, %v685_v58, 0.0 }
  0xb3   :  { %v761_v57 = vadd.f32 %v760_v1, %v759_v2  ;;  %v687_v1 = vmul.f32 %v7882_v37, %v7882_v37  ;;  %v770_v4 = vsel %vm10020_vm1, %v686_v46, 0.0 }
  0xb5   :  { %v763_v12 = vadd.f32 %v762_v40, %v761_v57  ;;  %v688_v40 = vmul.f32 %v7889_v38, %v7889_v38  ;;  %v772_v58 = vsel %vm10020_vm1, %v687_v1, 0.0 }
  0xb7   :  { %v765_v36 = vadd.f32 %v764_v19, %v763_v12  ;;  %v689_v19 = vmul.f32 %v7896_v39, %v7896_v39  ;;  %v774_v46 = vsel %vm10020_vm1, %v688_v40, 0.0 }
  0xb9   :  { %v767_v2 = vadd.f32 %v766_v9, %v765_v36  ;;  %v690_v9 = vmul.f32 %v7903_v43, %v7903_v43  ;;  %v776_v1 = vsel %vm10020_vm1, %v689_v19, 0.0 }
  0xbb   :  { %v769_v57 = vadd.f32 %v768_v62, %v767_v2  ;;  %v691_v62 = vmul.f32 %v7910_v44, %v7910_v44  ;;  %v778_v40 = vsel %vm10020_vm1, %v690_v9, 0.0 }
  0xbd   :  { %v771_v12 = vadd.f32 %v770_v4, %v769_v57  ;;  %v692_v4 = vmul.f32 %v7917_v45, %v7917_v45  ;;  %v780_v19 = vsel %vm10020_vm1, %v691_v62, 0.0 }
  0xbf   :  { %v773_v36 = vadd.f32 %v772_v58, %v771_v12  ;;  %v693_v58 = vmul.f32 %v7924_v48, %v7924_v48  ;;  %v782_v9 = vsel %vm10020_vm1, %v692_v4, 0.0 }
  0xc1   :  { %v775_v2 = vadd.f32 %v774_v46, %v773_v36  ;;  %v694_v46 = vmul.f32 %v7931_v49, %v7931_v49  ;;  %v784_v62 = vsel %vm10020_vm1, %v693_v58, 0.0 }
  0xc3   :  { %v777_v57 = vadd.f32 %v776_v1, %v775_v2  ;;  %v695_v1 = vmul.f32 %v7938_v50, %v7938_v50  ;;  %v786_v4 = vsel %vm10020_vm1, %v694_v46, 0.0 }
  0xc5   :  { %v779_v12 = vadd.f32 %v778_v40, %v777_v57  ;;  %v696_v40 = vmul.f32 %v7945_v53, %v7945_v53  ;;  %v788_v58 = vsel %vm10020_vm1, %v695_v1, 0.0  ;;  %v10081_v53 = vld [vmem:[#allocation11_spill] sm:$0xff] }
  0xc7   :  { %v781_v36 = vadd.f32 %v780_v19, %v779_v12  ;;  %v697_v19 = vmul.f32 %v7952_v54, %v7952_v54  ;;  %v790_v46 = vsel %vm10020_vm1, %v696_v40, 0.0  ;;  %v7991_v40 = vsub.f32 %v7544_v20, %v7732_v51 }
  0xc9   :  { %v783_v2 = vadd.f32 %v782_v9, %v781_v36  ;;  %v698_v9 = vmul.f32 %v7959_v55, %v7959_v55  ;;  %v792_v1 = vsel %vm10020_vm1, %v697_v19, 0.0  ;;  %10068 = vst [vmem:[#allocation28_spill] sm:$0xff] %v7991_v40  ;;  %v10078_v55 = vld [vmem:[#allocation8_spill] sm:$0xff] }
  0xcb   :  { %v785_v57 = vadd.f32 %v784_v62, %v783_v2  ;;  %v699_v62 = vmul.f32 %v7966_v59, %v7966_v59 }
  0xcd   :  { %v787_v12 = vadd.f32 %v786_v4, %v785_v57  ;;  %v118_v4 = vadd.f32 %v7558_v35, %v7544_v20  ;;  %v700_v57 = vmul.f32 %v7973_v0, %v7973_v0  ;;  %v796_v20 = vsel %vm10020_vm1, %v699_v62, 0.0 }
  0xce   :  { %v702_v62 = vmul.f32 %v7991_v40, %v7991_v40 }
  0xcf   :  { %v789_v36 = vadd.f32 %v788_v58, %v787_v12  ;;  %v794_v58 = vsel %vm10020_vm1, %v698_v9, 0.0  ;;  %v7998_v12 = vsub.f32 %v7551_v29, %v7732_v51  ;;  %151 = vst.msk [vmem:[#allocation2 + $0x98] sm:$0xff] %vm10020_vm1, %v118_v4  ;;  %v120_v9 = vadd.f32 %v7586_v61, %v7572_v47 }
  0xd0   :  { %v121_v29 = vadd.f32 %v7607_v24, %v7593_v7  ;;  %v798_v6 = vsel %vm10020_vm1, %v700_v57, 0.0  ;;  %v8033_v57 = vsub.f32 %v7572_v47, %v7732_v51  ;;  %v802_v40 = vsel %vm10020_vm1, %v702_v62, 0.0 }
  0xd1   :  { %v791_v2 = vadd.f32 %v790_v46, %v789_v36  ;;  %10069 = vst [vmem:[#allocation29_spill] sm:$0xff] %v7998_v12  ;;  %v119_v46 = vadd.f32 %v7579_v56, %v7565_v41  ;;  %153 = vst.msk [vmem:[#allocation2 + $0xa8] sm:$0xff] %vm10020_vm1, %v120_v9  ;;  %v8046_v47 = vsub.f32 %v7579_v56, %v7732_v51 }
  0xd2   :  { %154 = vst.msk [vmem:[#allocation2 + $0xb0] sm:$0xff] %vm10020_vm1, %v121_v29  ;;  %10072 = vst [vmem:[#allocation32_spill] sm:$0xff] %v8033_v57  ;;  %v10075_v29 = vld [vmem:[#allocation7_spill] sm:$0xff]  ;;  %v8053_v62 = vsub.f32 %v7586_v61, %v7732_v51 }
  0xd3   :  { %v793_v19 = vadd.f32 %v792_v1, %v791_v2  ;;  %v122_v1 = vadd.f32 %v7614_v34, %v7600_v13  ;;  %v8015_v2 = vsub.f32 %v7558_v35, %v7732_v51  ;;  %152 = vst.msk [vmem:[#allocation2 + $0xa0] sm:$0xff] %vm10020_vm1, %v119_v46  ;;  %v703_v35 = vmul.f32 %v7998_v12, %v7998_v12 }
  0xd5   :  { %v795_v36 = vadd.f32 %v794_v58, %v793_v19  ;;  %10070 = vst [vmem:[#allocation30_spill] sm:$0xff] %v8015_v2  ;;  %155 = vst.msk [vmem:[#allocation2 + $0xb8] sm:$0xff] %vm10020_vm1, %v122_v1  ;;  %v8026_v58 = vsub.f32 %v7565_v41, %v7732_v51  ;;  %v800_v19 = vsel %vm10020_vm1, %v701_v14, 0.0  ;;  %v704_v41 = vmul.f32 %v8015_v2, %v8015_v2 }
  0xd6   :  { %v182_v60 = vld [vmem:[#allocation2 + $0x90] ss:$2 sm:$0xff]  ;;  %v214_v12 = vld [vmem:[#allocation2 + $0x91] ss:$2 sm:$0xff] }
  0xd7   :  { %v797_v4 = vadd.f32 %v796_v20, %v795_v36  ;;  %10071 = vst [vmem:[#allocation31_spill] sm:$0xff] %v8026_v58  ;;  %v10073_v20 = vld [vmem:[#allocation6_spill] sm:$0xff]  ;;  %v10074_v36 = vld [vmem:[#allocation5_spill] sm:$0xff]  ;;  %v236_v14 = vadd.f32 %v214_v12, %v182_v60  ;;  %v706_v60 = vmul.f32 %v8033_v57, %v8033_v57 }
  0xd8   :  { %v123_v9 = vadd.f32 %v10073_v20, %v7621_v42  ;;  %v124_v1 = vadd.f32 %v10075_v29, %v10074_v36  ;;  %10076 = vst [vmem:[#allocation6_spill] sm:$0xff] %v8046_v47  ;;  %10077 = vst [vmem:[#allocation5_spill] sm:$0xff] %v8053_v62 }
  0xd9   :  { %v799_v46 = vadd.f32 %v798_v6, %v797_v4  ;;  %v705_v6 = vmul.f32 %v8026_v58, %v8026_v58  ;;  %v804_v4 = vsel %vm10020_vm1, %v703_v35, 0.0  ;;  %v10079_v58 = vld [vmem:[#allocation10_spill] sm:$0xff]  ;;  %v10080_v35 = vld [vmem:[#allocation9_spill] sm:$0xff] }
  0xda   :  { %156 = vst.msk [vmem:[#allocation2 + $0xc0] sm:$0xff] %vm10020_vm1, %v123_v9  ;;  %157 = vst.msk [vmem:[#allocation2 + $0xc8] sm:$0xff] %vm10020_vm1, %v124_v1  ;;  %v216_v9 = vld [vmem:[#allocation2 + $0xa1] ss:$2 sm:$0xff]  ;;  %v806_v1 = vsel %vm10020_vm1, %v704_v41, 0.0  ;;  %v125_v54 = vadd.f32 %v10079_v58, %v10078_v55  ;;  %v126_v50 = vadd.f32 %v10081_v53, %v10080_v35 }
  0xdb   :  { %v801_v0 = vadd.f32 %v800_v19, %v799_v46  ;;  %v252_v19 = vmul.f32 0.25, %v236_v14  ;;  %v184_v46 = vld [vmem:[#allocation2 + $0xa0] ss:$2 sm:$0xff]  ;;  %v808_v41 = vsel %vm10020_vm1, %v705_v6, 0.0 }
  0xdc   :  { %v237_v56 = vadd.f32 %v216_v9, %v184_v46  ;;  %v186_v2 = vld [vmem:[#allocation2 + $0xb0] ss:$2 sm:$0xff]  ;;  %v218_v59 = vld [vmem:[#allocation2 + $0xb1] ss:$2 sm:$0xff]  ;;  %158 = vst.msk [vmem:[#allocation2 + $0xd0] sm:$0xff] %vm10020_vm1, %v125_v54  ;;  %159 = vst.msk [vmem:[#allocation2 + $0xd8] sm:$0xff] %vm10020_vm1, %v126_v50  ;;  %v8082_v54 = vsub.f32 %v7607_v24, %v7732_v51  ;;  %v8094_v24 = vsub.f32 %v7614_v34, %v7732_v51 }
  0xdd   :  { %v803_v12 = vadd.f32 %v802_v40, %v801_v0  ;;  %6374 = vmatmul.mubr.msk.f32.vlgmr.msra.gmra.mrb[0].mxu1 %vm10020_vm1, %v252_v19  ;;  %v238_v49 = vadd.f32 %v218_v59, %v186_v2  ;;  %v8065_v0 = vsub.f32 %v7593_v7, %v7732_v51  ;;  %v707_v40 = vmul.f32 %v8046_v47, %v8046_v47  ;;  %v10085_v19 = vld [vmem:[#allocation12_spill] sm:$0xff] }
  0xde   :  { %v253_v14 = vmul.f32 0.25, %v237_v56  ;;  %v708_v7 = vmul.f32 %v8053_v62, %v8053_v62  ;;  %v810_v59 = vsel %vm10020_vm1, %v706_v60, 0.0  ;;  %10084 = vst [vmem:[#allocation10_spill] sm:$0xff] %v8082_v54  ;;  %v10087_v56 = vld [vmem:[#allocation13_spill] sm:$0xff]  ;;  %10089 = vst [vmem:[#allocation9_spill] sm:$0xff] %v8094_v24  ;;  %v711_v34 = vmul.f32 %v8082_v54, %v8082_v54 }
  0xdf   :  { %v805_v61 = vadd.f32 %v804_v4, %v803_v12  ;;  %10082 = vst [vmem:[#allocation7_spill] sm:$0xff] %v8065_v0  ;;  %v254_v9 = vmul.f32 0.25, %v238_v49  ;;  %v8074_v4 = vsub.f32 %v7600_v13, %v7732_v51  ;;  %v709_v13 = vmul.f32 %v8065_v0, %v8065_v0 }
  0xe0   :  { %6376 = vmatprep.mubr.msk.f32.mxu1 %vm10020_vm1, %v253_v14  ;;  %v812_v12 = vsel %vm10020_vm1, %v707_v40, 0.0 }
  0xe1   :  { %v807_v46 = vadd.f32 %v806_v1, %v805_v61  ;;  %10083 = vst [vmem:[#allocation8_spill] sm:$0xff] %v8074_v4  ;;  %v188_v2 = vld [vmem:[#allocation2 + $0xc0] ss:$2 sm:$0xff]  ;;  %v220_v6 = vld [vmem:[#allocation2 + $0xc1] ss:$2 sm:$0xff]  ;;  %6377 = vmatmul.mubr.msk.f32.gmra.mrb[2].mxu1 %vm10020_vm1, %v254_v9  ;;  %v10088_v61 = vld [vmem:[#allocation15_spill] sm:$0xff] }
  0xe2   :  { %v239_v49 = vadd.f32 %v220_v6, %v188_v2  ;;  %v10086_v1 = vld [vmem:[#allocation14_spill] sm:$0xff]  ;;  %v128_v14 = vadd.f32 %v10088_v61, %v10087_v56  ;;  %v816_v6 = vsel %vm10020_vm1, %v709_v13, 0.0  ;;  %v1385_v13 = vld [vmem:[%s9957_s3 + $0x4] sm:$0xf] }
  0xe3   :  { %v809_v50 = vadd.f32 %v808_v41, %v807_v46  ;;  %v127_v60 = vadd.f32 %v10086_v1, %v10085_v19  ;;  %v710_v41 = vmul.f32 %v8074_v4, %v8074_v4  ;;  %v814_v46 = vsel %vm10020_vm1, %v708_v7, 0.0  ;;  %v190_v9 = vld [vmem:[#allocation2 + $0xd0] ss:$2 sm:$0xff]  ;;  %v222_v2 = vld [vmem:[#allocation2 + $0xd1] ss:$2 sm:$0xff]  ;;  %6385 = vmatprep.subr.msk.mxu1 %vm10019_vm0, %v1385_v13 }
  0xe4   :  { %v255_v47 = vmul.f32 0.25, %v239_v49  ;;  %161 = vst.msk [vmem:[#allocation2 + $0xe8] sm:$0xff] %vm10020_vm1, %v128_v14  ;;  %v8111_v7 = vsub.f32 %v10074_v36, %v7732_v51  ;;  %v8127_v36 = vsub.f32 %v10073_v20, %v7732_v51  ;;  %6386 = vmatpush3.msk.msra.mxu1 %vm10019_vm0, %v1385_v13  ;;  %v8139_v20 = vsub.f32 %v10075_v29, %v7732_v51 }
  0xe5   :  { %v811_v62 = vadd.f32 %v810_v59, %v809_v50  ;;  %160 = vst.msk [vmem:[#allocation2 + $0xe0] sm:$0xff] %vm10020_vm1, %v127_v60  ;;  %v8104_v59 = vsub.f32 %v7621_v42, %v7732_v51  ;;  %v240_v50 = vadd.f32 %v222_v2, %v190_v9  ;;  %v10094_v60 = vld [vmem:[#allocation17_spill] sm:$0xff]  ;;  %v712_v42 = vmul.f32 %v8094_v24, %v8094_v24 }
  0xe6   :  { %6379 = vmatprep.mubr.msk.f32.mxu1 %vm10020_vm1, %v255_v47  ;;  %10091 = vst [vmem:[#allocation12_spill] sm:$0xff] %v8111_v7  ;;  %v130_v14 = vadd.f32 %v7728_v25, %v10094_v60  ;;  %v818_v4 = vsel %vm10020_vm1, %v710_v41, 0.0  ;;  %10095 = vst [vmem:[#allocation14_spill] sm:$0xff] %v8127_v36  ;;  %v714_v41 = vmul.f32 %v8111_v7, %v8111_v7 }
  0xe7   :  { %v813_v40 = vadd.f32 %v812_v12, %v811_v62  ;;  %10090 = vst [vmem:[#allocation11_spill] sm:$0xff] %v8104_v59  ;;  %v10092_v62 = vld [vmem:[#allocation16_spill] sm:$0xff]  ;;  %v10093_v12 = vld [vmem:[#allocation18_spill] sm:$0xff]  ;;  %v256_v54 = vmul.f32 0.25, %v240_v50  ;;  %10096 = vst [vmem:[#allocation13_spill] sm:$0xff] %v8139_v20  ;;  %v822_v50 = vsel %vm10020_vm1, %v712_v42, 0.0  ;;  %v8152_v29 = vsub.f32 %v10080_v35, %v7732_v51 }
  0xe8   :  { %v129_v47 = vadd.f32 %v10093_v12, %v10092_v62  ;;  %163 = vst.msk [vmem:[#allocation2 + $0xf8] sm:$0xff] %vm10020_vm1, %v130_v14  ;;  %v826_v13 = vsel %vm10020_vm1, %v714_v41, 0.0  ;;  %v716_v42 = vmul.f32 %v8139_v20, %v8139_v20  ;;  %v8239_v35 = vsub.f32 %v10079_v58, %v7732_v51 }
  0xe9   :  { %v815_v49 = vadd.f32 %v814_v46, %v813_v40  ;;  %v713_v46 = vmul.f32 %v8104_v59, %v8104_v59  ;;  %v820_v40 = vsel %vm10020_vm1, %v711_v34, 0.0  ;;  %6380 = vmatmul.mubr.msk.f32.gmra.mrb[4].mxu1 %vm10020_vm1, %v256_v54  ;;  %v715_v54 = vmul.f32 %v8127_v36, %v8127_v36  ;;  %10098 = vst [vmem:[#allocation16_spill] sm:$0xff] %v8152_v29 }
  0xea   :  { %162 = vst.msk [vmem:[#allocation2 + $0xf0] sm:$0xff] %vm10020_vm1, %v129_v47  ;;  %v8144_v47 = vsub.f32 %v10078_v55, %v7732_v51  ;;  %10099 = vst [vmem:[#allocation18_spill] sm:$0xff] %v8239_v35  ;;  %v8254_v58 = vsub.f32 %v10085_v19, %v7732_v51  ;;  %v8269_v19 = vsub.f32 %v10086_v1, %v7732_v51 }
  0xeb   :  { %v817_v0 = vadd.f32 %v816_v6, %v815_v49  ;;  %v828_v41 = vsel %vm10020_vm1, %v715_v54, 0.0  ;;  %v719_v54 = vmul.f32 %v8239_v35, %v8239_v35  ;;  %v8283_v1 = vsub.f32 %v10092_v62, %v7732_v51 }
  0xec   :  { %v192_v2 = vld [vmem:[#allocation2 + $0xe0] ss:$2 sm:$0xff]  ;;  %v224_v6 = vld [vmem:[#allocation2 + $0xe1] ss:$2 sm:$0xff]  ;;  %10097 = vst [vmem:[#allocation15_spill] sm:$0xff] %v8144_v47  ;;  %10101 = vst [vmem:[#allocation33_spill] sm:$0xff] %v8254_v58  ;;  %v8297_v62 = vsub.f32 %v10093_v12, %v7732_v51 }
  0xed   :  { %v819_v9 = vadd.f32 %v818_v4, %v817_v0  ;;  %v241_v49 = vadd.f32 %v224_v6, %v192_v2  ;;  %v824_v0 = vsel %vm10020_vm1, %v713_v46, 0.0  ;;  %v10012_v6 = vmov 0.0   ;;  %10103 = vst [vmem:[#allocation35_spill] sm:$0xff] %v8269_v19  ;;  %10105 = vst [vmem:[#allocation37_spill] sm:$0xff] %v8283_v1 }
  0xee   :  { %1326 = vst.msk [vmem:[#allocation3] sm:$0xff] %vm10020_vm1, %v10012_v6  ;;  %1329 = vst.msk [vmem:[#allocation3 + $0x10] sm:$0xff] %vm10020_vm1, %v10012_v6  ;;  %v717_v46 = vmul.f32 %v8144_v47, %v8144_v47  ;;  %v727_v12 = vmul.f32 %v8297_v62, %v8297_v62 }
  0xef   :  { %v821_v34 = vadd.f32 %v820_v40, %v819_v9  ;;  %v257_v4 = vmul.f32 0.25, %v241_v49  ;;  %1328 = vst.msk [vmem:[#allocation3 + $0x8] sm:$0x3] %vm1327_vm2, %v10012_v6  ;;  %1330 = vst.msk [vmem:[#allocation3 + $0x18] sm:$0x3] %vm1327_vm2, %v10012_v6 }
  0xf0   :  { %1331 = vst.msk [vmem:[#allocation3 + $0x20] sm:$0xff] %vm10020_vm1, %v10012_v6  ;;  %1333 = vst.msk [vmem:[#allocation3 + $0x30] sm:$0xff] %vm10020_vm1, %v10012_v6 }
  0xf1   :  { %v823_v14 = vadd.f32 %v822_v50, %v821_v34  ;;  %6382 = vmatprep.mubr.msk.f32.mxu1 %vm10020_vm1, %v257_v4  ;;  %v194_v55 = vld [vmem:[#allocation2 + $0xf0] ss:$2 sm:$0xff]  ;;  %v226_v40 = vld [vmem:[#allocation2 + $0xf1] ss:$2 sm:$0xff]  ;;  %1332 = vst.msk [vmem:[#allocation3 + $0x28] sm:$0x3] %vm1327_vm2, %v10012_v6  ;;  %v8246_v34 = vsub.f32 %v10081_v53, %v7732_v51  ;;  %v8261_v53 = vsub.f32 %v10087_v56, %v7732_v51 }
  0xf2   :  { %v242_v2 = vadd.f32 %v226_v40, %v194_v55  ;;  %1334 = vst.msk [vmem:[#allocation3 + $0x38] sm:$0x3] %vm1327_vm2, %v10012_v6  ;;  %1336 = vst.msk [vmem:[#allocation3 + $0x48] sm:$0x3] %vm1327_vm2, %v10012_v6  ;;  %v830_v4 = vsel %vm10020_vm1, %v716_v42, 0.0 }
  0xf3   :  { %v825_v9 = vadd.f32 %v824_v0, %v823_v14  ;;  %1335 = vst.msk [vmem:[#allocation3 + $0x40] sm:$0xff] %vm10020_vm1, %v10012_v6  ;;  %1337 = vst.msk [vmem:[#allocation3 + $0x50] sm:$0xff] %vm10020_vm1, %v10012_v6  ;;  %v718_v0 = vmul.f32 %v8152_v29, %v8152_v29  ;;  %v720_v42 = vmul.f32 %v8246_v34, %v8246_v34 }
  0xf4   :  { %1338 = vst.msk [vmem:[#allocation3 + $0x58] sm:$0x3] %vm1327_vm2, %v10012_v6  ;;  %1340 = vst.msk [vmem:[#allocation3 + $0x68] sm:$0x3] %vm1327_vm2, %v10012_v6  ;;  %v258_v49 = vmul.f32 0.25, %v242_v2 }
  0xf5   :  { %1339 = vst.msk [vmem:[#allocation3 + $0x60] sm:$0xff] %vm10020_vm1, %v10012_v6  ;;  %1341 = vst.msk [vmem:[#allocation3 + $0x70] sm:$0xff] %vm10020_vm1, %v10012_v6  ;;  %v827_v50 = vadd.f32 %v826_v13, %v825_v9  ;;  %v832_v13 = vsel %vm10020_vm1, %v717_v46, 0.0  ;;  %v834_v40 = vsel %vm10020_vm1, %v718_v0, 0.0  ;;  %v721_v46 = vmul.f32 %v8254_v58, %v8254_v58 }
  0xf6   :  { %1342 = vst.msk [vmem:[#allocation3 + $0x78] sm:$0x3] %vm1327_vm2, %v10012_v6  ;;  %1344 = vst.msk [vmem:[#allocation3 + $0x88] sm:$0x3] %vm1327_vm2, %v10012_v6  ;;  %6383 = vmatmul.mubr.msk.f32.gmra.mrb[6].mxu1 %vm10020_vm1, %v258_v49  ;;  %v1409_v9 = vld [vmem:[#allocation3 + $0x1] sm:$0xff]  ;;  %v722_v49 = vmul.f32 %v8261_v53, %v8261_v53  ;;  %v838_v0 = vsel %vm10020_vm1, %v720_v42, 0.0 }
  0xf7   :  { %1343 = vst.msk [vmem:[#allocation3 + $0x80] sm:$0xff] %vm10020_vm1, %v10012_v6  ;;  %1345 = vst.msk [vmem:[#allocation3 + $0x90] sm:$0xff] %vm10020_vm1, %v10012_v6  ;;  %v829_v14 = vadd.f32 %v828_v41, %v827_v50  ;;  %6387 = vmatprep.mubr.msk.f32.mxu1 %vm10020_vm1, %v1409_v9  ;;  %v836_v41 = vsel %vm10020_vm1, %v719_v54, 0.0  ;;  %v8276_v50 = vsub.f32 %v10088_v61, %v7732_v51  ;;  %v840_v54 = vsel %vm10020_vm1, %v721_v46, 0.0 }
  0xf8   :  { %1346 = vst.msk [vmem:[#allocation3 + $0x98] sm:$0x3] %vm1327_vm2, %v10012_v6  ;;  %1348 = vst.msk [vmem:[#allocation3 + $0xa8] sm:$0x3] %vm1327_vm2, %v10012_v6  ;;  %v8290_v61 = vsub.f32 %v10094_v60, %v7732_v51  ;;  %v842_v42 = vsel %vm10020_vm1, %v722_v49, 0.0  ;;  %v725_v9 = vmul.f32 %v8283_v1, %v8283_v1  ;;  %v8304_v60 = vsub.f32 %v7728_v25, %v7732_v51 }
  0xf9   :  { %1347 = vst.msk [vmem:[#allocation3 + $0xa0] sm:$0xff] %vm10020_vm1, %v10012_v6  ;;  %1349 = vst.msk [vmem:[#allocation3 + $0xb0] sm:$0xff] %vm10020_vm1, %v10012_v6  ;;  %v831_v55 = vadd.f32 %v830_v4, %v829_v14  ;;  %v723_v14 = vmul.f32 %v8269_v19, %v8269_v19  ;;  %v8318_v25 = vld [vmem:[%s9957_s3] sm:$0xf] }
  0xfa   :  { %1350 = vst.msk [vmem:[#allocation3 + $0xb8] sm:$0x3] %vm1327_vm2, %v10012_v6  ;;  %1352 = vst.msk [vmem:[#allocation3 + $0xc8] sm:$0x3] %vm1327_vm2, %v10012_v6  ;;  %6411 = vmatprep.subr.msk.mxu1 %vm10019_vm0, %v8318_v25 }
  0xfb   :  { %1351 = vst.msk [vmem:[#allocation3 + $0xc0] sm:$0xff] %vm10020_vm1, %v10012_v6  ;;  %1353 = vst.msk [vmem:[#allocation3 + $0xd0] sm:$0xff] %vm10020_vm1, %v10012_v6  ;;  %v833_v2 = vadd.f32 %v832_v13, %v831_v55  ;;  %v724_v55 = vmul.f32 %v8276_v50, %v8276_v50 }
  0xfc   :  { %1354 = vst.msk [vmem:[#allocation3 + $0xd8] sm:$0x3] %vm1327_vm2, %v10012_v6  ;;  %1356 = vst.msk [vmem:[#allocation3 + $0xe8] sm:$0x3] %vm1327_vm2, %v10012_v6 }
  0xfd   :  { %1355 = vst.msk [vmem:[#allocation3 + $0xe0] sm:$0xff] %vm10020_vm1, %v10012_v6  ;;  %1357 = vst.msk [vmem:[#allocation3 + $0xf0] sm:$0xff] %vm10020_vm1, %v10012_v6  ;;  %v835_v56 = vadd.f32 %v834_v40, %v833_v2  ;;  %v844_v2 = vsel %vm10020_vm1, %v723_v14, 0.0  ;;  %v728_v14 = vmul.f32 %v8304_v60, %v8304_v60 }
  0xfe   :  { %1358 = vst.msk [vmem:[#allocation3 + $0xf8] sm:$0x3] %vm1327_vm2, %v10012_v6  ;;  %1360 = vst.msk [vmem:[#allocation3 + $0x108] sm:$0x3] %vm1327_vm2, %v10012_v6 }
  0xff   :  { %1359 = vst.msk [vmem:[#allocation3 + $0x100] sm:$0xff] %vm10020_vm1, %v10012_v6  ;;  %1361 = vst.msk [vmem:[#allocation3 + $0x110] sm:$0xff] %vm10020_vm1, %v10012_v6  ;;  %v837_v4 = vadd.f32 %v836_v41, %v835_v56  ;;  %v726_v41 = vmul.f32 %v8290_v61, %v8290_v61  ;;  %v846_v56 = vsel %vm10020_vm1, %v724_v55, 0.0 }
 0x100   :  { %1362 = vst.msk [vmem:[#allocation3 + $0x118] sm:$0x3] %vm1327_vm2, %v10012_v6  ;;  %1364 = vst.msk [vmem:[#allocation3 + $0x128] sm:$0x3] %vm1327_vm2, %v10012_v6 }
 0x101   :  { %1363 = vst.msk [vmem:[#allocation3 + $0x120] sm:$0xff] %vm10020_vm1, %v10012_v6  ;;  %1365 = vst.msk [vmem:[#allocation3 + $0x130] sm:$0xff] %vm10020_vm1, %v10012_v6  ;;  %v839_v13 = vadd.f32 %v838_v0, %v837_v4  ;;  %v848_v0 = vsel %vm10020_vm1, %v725_v9, 0.0 }
 0x102   :  { %1366 = vst.msk [vmem:[#allocation3 + $0x138] sm:$0x3] %vm1327_vm2, %v10012_v6  ;;  %10100 = vst [vmem:[#allocation17_spill] sm:$0xff] %v8246_v34 }
 0x103   :  { %10102 = vst [vmem:[#allocation34_spill] sm:$0xff] %v8261_v53  ;;  %10104 = vst [vmem:[#allocation36_spill] sm:$0xff] %v8276_v50  ;;  %v841_v40 = vadd.f32 %v840_v54, %v839_v13  ;;  %v850_v54 = vsel %vm10020_vm1, %v726_v41, 0.0  ;;  %v852_v13 = vsel %vm10020_vm1, %v727_v12, 0.0  ;;  %v464_v12 = vld [vmem:[%s9958_s1] sm:$0x1] }
 0x104   :  { %10106 = vst [vmem:[#allocation38_spill] sm:$0xff] %v8290_v61  ;;  %10107 = vst [vmem:[#allocation39_spill] sm:$0xff] %v8297_v62 }
 0x105   :  { %v843_v46 = vadd.f32 %v842_v42, %v841_v40  ;;  %10108 = vst [vmem:[#allocation40_spill] sm:$0xff] %v8304_v60  ;;  %10109 = vst [vmem:[#allocation41_spill] sm:$0xff] %v8318_v25  ;;  %v854_v42 = vsel %vm10020_vm1, %v728_v14, 0.0 }
 0x107   :  { %v845_v49 = vadd.f32 %v844_v2, %v843_v46 }
 0x109   :  { %v847_v4 = vadd.f32 %v846_v56, %v845_v49 }
 0x10b   :  { %v849_v51 = vadd.f32 %v848_v0, %v847_v4  ;;  %v867_v0 = vlaneseq }
 0x10d   :  { %v851_v55 = vadd.f32 %v850_v54, %v849_v51  ;;  %v8324_v4 = vshrl.u32 %v867_v0, 7 }
 0x10f   :  { %v853_v40 = vadd.f32 %v852_v13, %v851_v55  ;;  %10110 = vst [vmem:[#allocation42_spill] sm:$0xff] %v8324_v4  ;;  %v10016_v51 = vsub.s32 0, %v8324_v4  ;;  %v10129_v4 = vld [vmem:[#allocation29_spill] sm:$0xff] }
 0x111   :  { %v855_v9 = vadd.f32 %v854_v42, %v853_v40  ;;  %v10111_v42 = vld [vmem:[#allocation19_spill] sm:$0xff] }
 0x113   :  { %v856_v2 = vrot.slane %v855_v9, 4 }
 0x115   :  { %v857_v46 = vadd.f32 %v856_v2, %v855_v9 }
 0x117   :  { %v858_v56 = vrot.slane %v857_v46, 2 }
 0x119   :  { %v859_v41 = vadd.f32 %v858_v56, %v857_v46  ;;  %v10113_v56 = vld [vmem:[#allocation21_spill] sm:$0xff] }
 0x11b   :  { %v860_v49 = vrot.slane %v859_v41, 1 }
 0x11d   :  { %v861_v6 = vadd.f32 %v860_v49, %v859_v41  ;;  %v10114_v49 = vld [vmem:[#allocation22_spill] sm:$0xff] }
 0x11f   :  { %v862_v60 = vmul.f32 0.001953125, %v861_v6 }
 0x121   :  { %v863_v62 = vadd.f32 1e-05, %v862_v60 }
 0x123   :  { %7161 = vrsqrt.f32 %v863_v62 }
 0x12d   :  { %v7162_v54 = vpop.eup %7161 }
 0x12e   :  { %v865_v14 = vmul.f32 %v7162_v54, %v464_v12  ;;  %v10115_v12 = vld [vmem:[#allocation23_spill] sm:$0xff]  ;;  %v10116_v54 = vld [vmem:[#allocation24_spill] sm:$0xff] }
 0x130   :  { %v8332_v13 = vrot.slane %v865_v14, %v10016_v51  ;;  %v10117_v14 = vld [vmem:[#allocation25_spill] sm:$0xff]  ;;  %v10119_v51 = vld [vmem:[#allocation27_spill] sm:$0xff] }
 0x132   :  { %v872_v6 = vmul.f32 %v8332_v13, %v7736_v11  ;;  %v873_v62 = vmul.f32 %v8332_v13, %v7740_v63  ;;  %v874_v60 = vmul.f32 %v8332_v13, %v7744_v18  ;;  %v875_v55 = vmul.f32 %v8332_v13, %v7748_v30 }
 0x133   :  { %v876_v40 = vmul.f32 %v8332_v13, %v10111_v42  ;;  %v877_v9 = vmul.f32 %v8332_v13, %v7762_v3  ;;  %v878_v2 = vmul.f32 %v8332_v13, %v7768_v5  ;;  %v879_v11 = vmul.f32 %v8332_v13, %v7777_v8  ;;  %v10118_v42 = vld [vmem:[#allocation26_spill] sm:$0xff] }
 0x134   :  { %v880_v63 = vmul.f32 %v8332_v13, %v7784_v52  ;;  %v881_v18 = vmul.f32 %v8332_v13, %v7791_v10  ;;  %v882_v30 = vmul.f32 %v8332_v13, %v7798_v15  ;;  %v883_v46 = vmul.f32 %v8332_v13, %v7805_v16 }
 0x135   :  { %v884_v3 = vmul.f32 %v8332_v13, %v7812_v17  ;;  %v885_v5 = vmul.f32 %v8332_v13, %v7819_v21  ;;  %v886_v8 = vmul.f32 %v8332_v13, %v7826_v22  ;;  %v887_v52 = vmul.f32 %v8332_v13, %v7833_v23 }
 0x136   :  { %v888_v10 = vmul.f32 %v8332_v13, %v7840_v26  ;;  %v889_v15 = vmul.f32 %v8332_v13, %v7847_v27  ;;  %v890_v16 = vmul.f32 %v8332_v13, %v7854_v28  ;;  %v891_v17 = vmul.f32 %v8332_v13, %v7861_v31  ;;  %v8387_v28 = vld [vmem:[%s9959_s2] ss:$0 sm:$0xff] }
 0x137   :  { %v892_v21 = vmul.f32 %v8332_v13, %v7868_v32  ;;  %v893_v22 = vmul.f32 %v8332_v13, %v7875_v33  ;;  %v894_v23 = vmul.f32 %v8332_v13, %v7882_v37  ;;  %v895_v26 = vmul.f32 %v8332_v13, %v7889_v38  ;;  %v10112_v38 = vld [vmem:[#allocation20_spill] sm:$0xff] }
 0x138   :  { %v896_v27 = vmul.f32 %v8332_v13, %v7896_v39  ;;  %v897_v31 = vmul.f32 %v8332_v13, %v7903_v43  ;;  %v898_v32 = vmul.f32 %v8332_v13, %v7910_v44  ;;  %v899_v33 = vmul.f32 %v8332_v13, %v7917_v45 }
 0x139   :  { %v900_v37 = vmul.f32 %v8332_v13, %v7924_v48  ;;  %v901_v39 = vmul.f32 %v8332_v13, %v10112_v38  ;;  %v902_v41 = vmul.f32 %v8332_v13, %v10113_v56  ;;  %v903_v0 = vmul.f32 %v8332_v13, %v10114_v49 }
 0x13a   :  { %v904_v43 = vmul.f32 %v8332_v13, %v10115_v12  ;;  %v905_v44 = vmul.f32 %v8332_v13, %v10116_v54  ;;  %v906_v45 = vmul.f32 %v8332_v13, %v10117_v14  ;;  %v907_v48 = vmul.f32 %v8332_v13, %v10118_v42 }
 0x13b   :  { %v8413_v38 = vmul.f32 %v8332_v13, %v10119_v51  ;;  %v8416_v56 = vadd.f32 %v8387_v28, %v872_v6  ;;  %v8419_v49 = vadd.f32 %v8387_v28, %v873_v62  ;;  %v8422_v12 = vadd.f32 %v8387_v28, %v874_v60 }
 0x13c   :  { %v8425_v54 = vadd.f32 %v8387_v28, %v875_v55  ;;  %v8428_v14 = vadd.f32 %v8387_v28, %v876_v40  ;;  %v8431_v42 = vadd.f32 %v8387_v28, %v877_v9  ;;  %v8434_v51 = vadd.f32 %v8387_v28, %v878_v2 }
 0x13d   :  { %10120 = vst [vmem:[#allocation19_spill] sm:$0xff] %v8416_v56  ;;  %10121 = vst [vmem:[#allocation20_spill] sm:$0xff] %v8419_v49  ;;  %v8437_v6 = vadd.f32 %v8387_v28, %v879_v11  ;;  %v8440_v62 = vadd.f32 %v8387_v28, %v880_v63  ;;  %v8443_v60 = vadd.f32 %v8387_v28, %v881_v18 }
 0x13e   :  { %10122 = vst [vmem:[#allocation21_spill] sm:$0xff] %v8422_v12  ;;  %10123 = vst [vmem:[#allocation22_spill] sm:$0xff] %v8425_v54  ;;  %v8446_v55 = vadd.f32 %v8387_v28, %v882_v30  ;;  %v8449_v40 = vadd.f32 %v8387_v28, %v883_v46  ;;  %v8452_v9 = vadd.f32 %v8387_v28, %v884_v3  ;;  %vm1011_vm3 = vcmp.ge.f32.partialorder %v8431_v42, 0.0 }
 0x13f   :  { %10124 = vst [vmem:[#allocation23_spill] sm:$0xff] %v8428_v14  ;;  %v8455_v2 = vadd.f32 %v8387_v28, %v885_v5  ;;  %v8458_v11 = vadd.f32 %v8387_v28, %v886_v8  ;;  %v8461_v63 = vadd.f32 %v8387_v28, %v887_v52  ;;  %v8464_v18 = vadd.f32 %v8387_v28, %v888_v10 }
 0x140   :  { %v8467_v30 = vadd.f32 %v8387_v28, %v889_v15  ;;  %v8470_v46 = vadd.f32 %v8387_v28, %v890_v16  ;;  %v8473_v3 = vadd.f32 %v8387_v28, %v891_v17  ;;  %v8476_v5 = vadd.f32 %v8387_v28, %v892_v21 }
 0x141   :  { %v8479_v8 = vadd.f32 %v8387_v28, %v893_v22  ;;  %v8482_v52 = vadd.f32 %v8387_v28, %v894_v23  ;;  %v8485_v10 = vadd.f32 %v8387_v28, %v895_v26  ;;  %v8488_v15 = vadd.f32 %v8387_v28, %v896_v27 }
 0x142   :  { %v8491_v16 = vadd.f32 %v8387_v28, %v897_v31  ;;  %v8494_v17 = vadd.f32 %v8387_v28, %v898_v32  ;;  %v8497_v21 = vadd.f32 %v8387_v28, %v899_v33  ;;  %v8500_v22 = vadd.f32 %v8387_v28, %v900_v37 }
 0x143   :  { %v8503_v23 = vadd.f32 %v8387_v28, %v901_v39  ;;  %v8506_v26 = vadd.f32 %v8387_v28, %v902_v41  ;;  %v8509_v27 = vadd.f32 %v8387_v28, %v903_v0  ;;  %v8512_v31 = vadd.f32 %v8387_v28, %v904_v43  ;;  %v10127_v0 = vld [vmem:[#allocation28_spill] sm:$0xff] }
 0x144   :  { %v8515_v32 = vadd.f32 %v8387_v28, %v905_v44  ;;  %v8518_v33 = vadd.f32 %v8387_v28, %v906_v45  ;;  %v8521_v37 = vadd.f32 %v8387_v28, %v907_v48  ;;  %vm1012_vm4 = vcmp.ge.f32.partialorder %v8434_v51, 0.0 }
 0x145   :  { %vm1013_vm5 = vcmp.ge.f32.partialorder %v8437_v6, 0.0  ;;  %vm1014_vm6 = vcmp.ge.f32.partialorder %v8440_v62, 0.0  ;;  %vm1015_vm7 = vcmp.ge.f32.partialorder %v8443_v60, 0.0  ;;  %vm1016_vm8 = vcmp.ge.f32.partialorder %v8446_v55, 0.0 }
 0x146   :  { %vm1017_vm9 = vcmp.ge.f32.partialorder %v8449_v40, 0.0  ;;  %vm1018_vm10 = vcmp.ge.f32.partialorder %v8452_v9, 0.0  ;;  %vm1019_vm11 = vcmp.ge.f32.partialorder %v8455_v2, 0.0  ;;  %vm1020_vm12 = vcmp.ge.f32.partialorder %v8458_v11, 0.0 }
 0x147   :  { %v8534_v39 = vmul.f32 0.01, %v8422_v12  ;;  %v8537_v41 = vmul.f32 0.01, %v8425_v54  ;;  %v8541_v43 = vmul.f32 %v8332_v13, %v10127_v0  ;;  %vm1021_vm13 = vcmp.ge.f32.partialorder %v8461_v63, 0.0 }
 0x148   :  { %v8548_v44 = vmul.f32 0.01, %v8428_v14  ;;  %v1075_v45 = vmul.f32 0.01, %v8431_v42  ;;  %v1076_v48 = vmul.f32 0.01, %v8434_v51  ;;  %v8554_v25 = vmul.f32 %v8332_v13, %v10129_v4 }
 0x149   :  { %10125 = vst [vmem:[#allocation24_spill] sm:$0xff] %v8534_v39  ;;  %10126 = vst [vmem:[#allocation25_spill] sm:$0xff] %v8537_v41  ;;  %v1077_v0 = vmul.f32 0.01, %v8437_v6  ;;  %v1079_v14 = vmul.f32 0.01, %v8443_v60 }
 0x14a   :  { %10128 = vst [vmem:[#allocation26_spill] sm:$0xff] %v8548_v44  ;;  %v1078_v44 = vmul.f32 0.01, %v8440_v62  ;;  %v10130_v41 = vld [vmem:[#allocation30_spill] sm:$0xff]  ;;  %vm1032_vm14 = vcmp.ge.f32.partialorder %v8494_v17, 0.0  ;;  %v8577_v56 = vsel %vm1011_vm3, %v8431_v42, %v1075_v45  ;;  %vm1036_vm1 = vcmp.ge.f32.partialorder %v8506_v26, 0.0 }
 0x14b   :  { %v8565_v39 = vmul.f32 %v8332_v13, %v10130_v41  ;;  %v1080_v4 = vmul.f32 0.01, %v8446_v55  ;;  %v1081_v12 = vmul.f32 0.01, %v8449_v40  ;;  %v1082_v49 = vmul.f32 0.01, %v8452_v9 }
 0x14c   :  { %v1083_v41 = vmul.f32 0.01, %v8455_v2  ;;  %v1084_v61 = vmul.f32 0.01, %v8458_v11  ;;  %v1085_v1 = vmul.f32 0.01, %v8461_v63  ;;  %v8589_v54 = vsel %vm1012_vm4, %v8434_v51, %v1076_v48 }
 0x14d   :  { %10131 = vst [vmem:[#allocation27_spill] sm:$0xff] %v8589_v54  ;;  %vm1037_vm3 = vcmp.ge.f32.partialorder %v8509_v27, 0.0  ;;  %vm1038_vm15 = vcmp.ge.f32.partialorder %v8512_v31, 0.0  ;;  %vm1039_vm2 = vcmp.ge.f32.partialorder %v8515_v32, 0.0  ;;  %vm1040_vm0 = vcmp.ge.f32.partialorder %v8518_v33, 0.0 }
 0x14e   :  { %v1086_v42 = vmul.f32 0.01, %v8464_v18  ;;  %v1087_v45 = vmul.f32 0.01, %v8467_v30  ;;  %v1088_v50 = vmul.f32 0.01, %v8470_v46  ;;  %v1141_v19 = vsel %vm1013_vm5, %v8437_v6, %v1077_v0 }
 0x14f   :  { %vm1041_vm4 = vcmp.ge.f32.partialorder %v8521_v37, 0.0  ;;  %v1089_v51 = vmul.f32 0.01, %v8473_v3  ;;  %v1090_v48 = vmul.f32 0.01, %v8476_v5  ;;  %v1142_v53 = vsel %vm1014_vm6, %v8440_v62, %v1078_v44 }
 0x150   :  { %v1091_v54 = vmul.f32 0.01, %v8479_v8  ;;  %v1092_v58 = vmul.f32 0.01, %v8482_v52  ;;  %v1093_v34 = vmul.f32 0.01, %v8485_v10  ;;  %v1143_v6 = vsel %vm1015_vm7, %v8443_v60, %v1079_v14 }
 0x151   :  { %v1094_v35 = vmul.f32 0.01, %v8488_v15  ;;  %v1095_v0 = vmul.f32 0.01, %v8491_v16  ;;  %v1096_v29 = vmul.f32 0.01, %v8494_v17  ;;  %v1144_v62 = vsel %vm1016_vm8, %v8446_v55, %v1080_v4 }
 0x152   :  { %v1097_v47 = vmul.f32 0.01, %v8497_v21  ;;  %v1098_v44 = vmul.f32 0.01, %v8500_v22  ;;  %v1099_v20 = vmul.f32 0.01, %v8503_v23  ;;  %v1145_v14 = vsel %vm1017_vm9, %v8449_v40, %v1081_v12 }
 0x153   :  { %v1100_v36 = vmul.f32 0.01, %v8506_v26  ;;  %v1101_v60 = vmul.f32 0.01, %v8509_v27  ;;  %v1102_v7 = vmul.f32 0.01, %v8512_v31  ;;  %v1146_v55 = vsel %vm1018_vm10, %v8452_v9, %v1082_v49 }
 0x154   :  { %v1103_v59 = vmul.f32 0.01, %v8515_v32  ;;  %v1104_v4 = vmul.f32 0.01, %v8518_v33  ;;  %v1105_v24 = vmul.f32 0.01, %v8521_v37  ;;  %v1147_v57 = vsel %vm1019_vm11, %v8455_v2, %v1083_v41 }
 0x155   :  { %v1148_v12 = vsel %vm1020_vm12, %v8458_v11, %v1084_v61  ;;  %v1149_v40 = vsel %vm1021_vm13, %v8461_v63, %v1085_v1  ;;  %vm10132_vm5 = vcmp.ge.f32.partialorder %v8464_v18, 0.0  ;;  %vm10133_vm6 = vcmp.ge.f32.partialorder %v8467_v30, 0.0 }
 0x156   :  { %v1150_v49 = vsel %vm10132_vm5, %v8464_v18, %v1086_v42  ;;  %v1151_v9 = vsel %vm10133_vm6, %v8467_v30, %v1087_v45  ;;  %vm10134_vm7 = vcmp.ge.f32.partialorder %v8470_v46, 0.0  ;;  %vm10135_vm8 = vcmp.ge.f32.partialorder %v8473_v3, 0.0  ;;  %v8728_v45 = vld [vmem:[#allocation2 + $0x70] ss:$2 sm:$0xff] }
 0x157   :  { %v1152_v2 = vsel %vm10134_vm7, %v8470_v46, %v1088_v50  ;;  %v1153_v61 = vsel %vm10135_vm8, %v8473_v3, %v1089_v51  ;;  %vm10136_vm9 = vcmp.ge.f32.partialorder %v8476_v5, 0.0  ;;  %vm10137_vm10 = vcmp.ge.f32.partialorder %v8479_v8, 0.0  ;;  %v8676_v46 = vld [vmem:[#allocation2 + $0x30] ss:$2 sm:$0xff]  ;;  %v8678_v3 = vld [vmem:[#allocation2 + $0x40] ss:$2 sm:$0xff] }
 0x158   :  { %v1154_v1 = vsel %vm10136_vm9, %v8476_v5, %v1090_v48  ;;  %v1155_v11 = vsel %vm10137_vm10, %v8479_v8, %v1091_v54  ;;  %vm10138_vm11 = vcmp.ge.f32.partialorder %v8482_v52, 0.0  ;;  %vm10139_vm12 = vcmp.ge.f32.partialorder %v8485_v10, 0.0  ;;  %v8692_v5 = vld [vmem:[#allocation2 + $0x10] ss:$2 sm:$0xff]  ;;  %v8730_v51 = vld [vmem:[#allocation2 + $0x71] ss:$2 sm:$0xff] }
 0x159   :  { %v1156_v63 = vsel %vm10138_vm11, %v8482_v52, %v1092_v58  ;;  %v1157_v50 = vsel %vm10139_vm12, %v8485_v10, %v1093_v34  ;;  %vm10140_vm13 = vcmp.ge.f32.partialorder %v8488_v15, 0.0  ;;  %vm10141_vm5 = vcmp.ge.f32.partialorder %v8491_v16, 0.0  ;;  %v8706_v10 = vld [vmem:[#allocation2 + $0x11] ss:$2 sm:$0xff] }
 0x15a   :  { %v1158_v18 = vsel %vm10140_vm13, %v8488_v15, %v1094_v35  ;;  %v1159_v30 = vsel %vm10141_vm5, %v8491_v16, %v1095_v0  ;;  %v1160_v54 = vsel %vm1032_vm14, %v8494_v17, %v1096_v29  ;;  %vm10142_vm6 = vcmp.ge.f32.partialorder %v8497_v21, 0.0  ;;  %v8710_v15 = vld [vmem:[#allocation2 + $0x21] ss:$2 sm:$0xff]  ;;  %v8712_v16 = vld [vmem:[#allocation2 + $0x50] ss:$2 sm:$0xff] }
 0x15b   :  { %v1161_v34 = vsel %vm10142_vm6, %v8497_v21, %v1097_v47  ;;  %vm10143_vm7 = vcmp.ge.f32.partialorder %v8500_v22, 0.0  ;;  %vm10144_vm8 = vcmp.ge.f32.partialorder %v8503_v23, 0.0  ;;  %v1164_v29 = vsel %vm1036_vm1, %v8506_v26, %v1100_v36  ;;  %v8708_v36 = vld [vmem:[#allocation2 + $0x20] ss:$2 sm:$0xff]  ;;  %v8714_v17 = vld [vmem:[#allocation2 + $0x31] ss:$2 sm:$0xff] }
 0x15c   :  { %v1162_v35 = vsel %vm10143_vm7, %v8500_v22, %v1098_v44  ;;  %v1163_v58 = vsel %vm10144_vm8, %v8503_v23, %v1099_v20  ;;  %v1165_v8 = vsel %vm1037_vm3, %v8509_v27, %v1101_v60  ;;  %v1166_v47 = vsel %vm1038_vm15, %v8512_v31, %v1102_v7  ;;  %v8716_v21 = vld [vmem:[#allocation2 + $0x41] ss:$2 sm:$0xff]  ;;  %v8722_v26 = vld [vmem:[#allocation2 + $0x60] ss:$2 sm:$0xff]  ;;  %v8724_v27 = vld [vmem:[#allocation2 + $0x51] ss:$2 sm:$0xff] }
 0x15d   :  { %v1167_v52 = vsel %vm1039_vm2, %v8515_v32, %v1103_v59  ;;  %v1168_v20 = vsel %vm1040_vm0, %v8518_v33, %v1104_v4  ;;  %v1169_v59 = vsel %vm1041_vm4, %v8521_v37, %v1105_v24  ;;  %v1201_v7 = vadd.f32 %v1141_v19, %v8577_v56  ;;  %v8726_v31 = vld [vmem:[#allocation2 + $0x61] ss:$2 sm:$0xff]  ;;  %v10160_v60 = vld [vmem:[#allocation31_spill] sm:$0xff] }
 0x15e   :  { %v1202_v22 = vadd.f32 %v1144_v62, %v1142_v53  ;;  %v1203_v23 = vadd.f32 %v1145_v14, %v1143_v6  ;;  %v1204_v32 = vadd.f32 %v1148_v12, %v1146_v55  ;;  %v1205_v33 = vadd.f32 %v1149_v40, %v1147_v57  ;;  %v10161_v55 = vld [vmem:[#allocation32_spill] sm:$0xff]  ;;  %v10162_v4 = vld [vmem:[#allocation6_spill] sm:$0xff]  ;;  %v10163_v12 = vld [vmem:[#allocation5_spill] sm:$0xff] }
 0x15f   :  { %v1206_v41 = vadd.f32 %v1152_v2, %v1150_v49  ;;  %v1207_v42 = vadd.f32 %v1153_v61, %v1151_v9  ;;  %v1208_v48 = vadd.f32 %v1156_v63, %v1154_v1  ;;  %v1209_v24 = vadd.f32 %v1157_v50, %v1155_v11 }
 0x160   :  { %v1210_v37 = vadd.f32 %v1160_v54, %v1158_v18  ;;  %v1211_v19 = vadd.f32 %v1161_v34, %v1159_v30  ;;  %vm10145_vm0 = vcmask 31744   ;;  %v1212_v53 = vadd.f32 %v1164_v29, %v1162_v35 }
 0x161   :  { %1233 = vst.msk [vmem:[#allocation2 + $0x18] sm:$0xff] %vm10145_vm0, %v1201_v7  ;;  %vm10146_vm1 = vmmov %vm10145_vm0  ;;  %v1213_v56 = vadd.f32 %v1165_v8, %v1163_v58  ;;  %v1214_v6 = vadd.f32 %v1168_v20, %v1166_v47  ;;  %v1215_v57 = vadd.f32 %v1169_v59, %v1167_v52  ;;  %v978_v0 = vadd.f32 %v8387_v28, %v8413_v38  ;;  %v10165_v20 = vld [vmem:[#allocation7_spill] sm:$0xff]  ;;  %v10166_v7 = vld [vmem:[#allocation8_spill] sm:$0xff] }
 0x162   :  { %1234 = vst.msk [vmem:[#allocation2 + $0x20] sm:$0xff] %vm10146_vm1, %v1202_v22  ;;  %vm10147_vm14 = vmmov %vm10145_vm0  ;;  %v979_v62 = vadd.f32 %v8387_v28, %v8541_v43  ;;  %v980_v44 = vadd.f32 %v8387_v28, %v8554_v25  ;;  %v981_v14 = vadd.f32 %v8387_v28, %v8565_v39  ;;  %v912_v38 = vmul.f32 %v8332_v13, %v10160_v60 }
 0x163   :  { %1235 = vst.msk [vmem:[#allocation2 + $0x28] sm:$0xff] %vm10147_vm14, %v1203_v23  ;;  %vm10148_vm15 = vmmov %vm10145_vm0  ;;  %v913_v43 = vmul.f32 %v8332_v13, %v10161_v55  ;;  %v914_v25 = vmul.f32 %v8332_v13, %v10162_v4  ;;  %v915_v39 = vmul.f32 %v8332_v13, %v10163_v12  ;;  %vm1042_vm8 = vcmp.ge.f32.partialorder %v978_v0, 0.0  ;;  %v10167_v23 = vld [vmem:[#allocation10_spill] sm:$0xff] }
 0x164   :  { %1236 = vst.msk [vmem:[#allocation2 + $0x30] sm:$0xff] %vm10148_vm15, %v1204_v32  ;;  %vm10149_vm2 = vmmov %vm10145_vm0  ;;  %vm1044_vm1 = vcmp.ge.f32.partialorder %v980_v44, 0.0  ;;  %vm1045_vm14 = vcmp.ge.f32.partialorder %v981_v14, 0.0  ;;  %v1106_v40 = vmul.f32 0.01, %v978_v0  ;;  %v982_v2 = vadd.f32 %v8387_v28, %v912_v38 }
 0x165   :  { %1237 = vst.msk [vmem:[#allocation2 + $0x38] sm:$0xff] %vm10149_vm2, %v1205_v33  ;;  %vm10150_vm3 = vmmov %vm10145_vm0  ;;  %v1107_v49 = vmul.f32 0.01, %v979_v62  ;;  %v1108_v9 = vmul.f32 0.01, %v980_v44  ;;  %v983_v1 = vadd.f32 %v8387_v28, %v913_v43  ;;  %v984_v11 = vadd.f32 %v8387_v28, %v914_v25  ;;  %v10172_v43 = vld [vmem:[#allocation12_spill] sm:$0xff] }
 0x166   :  { %1238 = vst.msk [vmem:[#allocation2 + $0x40] sm:$0xff] %vm10150_vm3, %v1206_v41  ;;  %vm10151_vm4 = vmmov %vm10145_vm0  ;;  %v1109_v61 = vmul.f32 0.01, %v981_v14  ;;  %v985_v63 = vadd.f32 %v8387_v28, %v915_v39  ;;  %v1170_v50 = vsel %vm1042_vm8, %v978_v0, %v1106_v40  ;;  %vm1046_vm15 = vcmp.ge.f32.partialorder %v982_v2, 0.0  ;;  %v10173_v39 = vld [vmem:[#allocation14_spill] sm:$0xff] }
 0x167   :  { %1239 = vst.msk [vmem:[#allocation2 + $0x48] sm:$0xff] %vm10151_vm4, %v1207_v42  ;;  %vm10152_vm9 = vmmov %vm10145_vm0  ;;  %v1172_v30 = vsel %vm1044_vm1, %v980_v44, %v1108_v9  ;;  %vm1047_vm2 = vcmp.ge.f32.partialorder %v983_v1, 0.0  ;;  %vm1048_vm3 = vcmp.ge.f32.partialorder %v984_v11, 0.0  ;;  %v1110_v58 = vmul.f32 0.01, %v982_v2 }
 0x168   :  { %1240 = vst.msk [vmem:[#allocation2 + $0x50] sm:$0xff] %vm10152_vm9, %v1208_v48  ;;  %vm10153_vm10 = vmmov %vm10145_vm0  ;;  %v1173_v54 = vsel %vm1045_vm14, %v981_v14, %v1109_v61  ;;  %v1216_v34 = vadd.f32 %v1172_v30, %v1170_v50  ;;  %vm1049_vm4 = vcmp.ge.f32.partialorder %v985_v63, 0.0  ;;  %v1111_v29 = vmul.f32 0.01, %v983_v1 }
 0x169   :  { %1241 = vst.msk [vmem:[#allocation2 + $0x58] sm:$0xff] %vm10153_vm10, %v1209_v24  ;;  %vm10154_vm11 = vmmov %vm10145_vm0  ;;  %v1112_v52 = vmul.f32 0.01, %v984_v11  ;;  %v916_v59 = vmul.f32 %v8332_v13, %v10165_v20  ;;  %v917_v22 = vmul.f32 %v8332_v13, %v10166_v7  ;;  %v918_v32 = vmul.f32 %v8332_v13, %v10167_v23  ;;  %v10178_v7 = vld [vmem:[#allocation16_spill] sm:$0xff]  ;;  %v10179_v23 = vld [vmem:[#allocation18_spill] sm:$0xff] }
 0x16a   :  { %1242 = vst.msk [vmem:[#allocation2 + $0x60] sm:$0xff] %vm10154_vm11, %v1210_v37  ;;  %vm10155_vm12 = vmmov %vm10145_vm0  ;;  %v1113_v41 = vmul.f32 0.01, %v985_v63  ;;  %v1174_v42 = vsel %vm1046_vm15, %v982_v2, %v1110_v58  ;;  %v1175_v48 = vsel %vm1047_vm2, %v983_v1, %v1111_v29  ;;  %v10169_v37 = vld [vmem:[#allocation9_spill] sm:$0xff]  ;;  %v921_v4 = vmul.f32 %v8332_v13, %v10172_v43  ;;  %v10184_v43 = vld [vmem:[#allocation34_spill] sm:$0xff] }
 0x16b   :  { %1243 = vst.msk [vmem:[#allocation2 + $0x68] sm:$0xff] %vm10155_vm12, %v1211_v19  ;;  %vm10156_vm13 = vmmov %vm10145_vm0  ;;  %v1176_v24 = vsel %vm1048_vm3, %v984_v11, %v1112_v52  ;;  %v919_v19 = vmul.f32 %v8332_v13, %v10169_v37  ;;  %v988_v0 = vadd.f32 %v8387_v28, %v918_v32  ;;  %v922_v40 = vmul.f32 %v8332_v13, %v10173_v39  ;;  %v10174_v2 = vld [vmem:[#allocation13_spill] sm:$0xff]  ;;  %v10185_v39 = vld [vmem:[#allocation35_spill] sm:$0xff] }
 0x16c   :  { %1244 = vst.msk [vmem:[#allocation2 + $0x70] sm:$0xff] %vm10156_vm13, %v1212_v53  ;;  %vm10157_vm5 = vmmov %vm10145_vm0  ;;  %v986_v53 = vadd.f32 %v8387_v28, %v916_v59  ;;  %v923_v61 = vmul.f32 %v8332_v13, %v10174_v2  ;;  %v991_v50 = vadd.f32 %v8387_v28, %v921_v4  ;;  %v926_v32 = vmul.f32 %v8332_v13, %v10179_v23 }
 0x16d   :  { %1245 = vst.msk [vmem:[#allocation2 + $0x78] sm:$0xff] %vm10157_vm5, %v1213_v56  ;;  %vm10158_vm6 = vmmov %vm10145_vm0  ;;  %v987_v56 = vadd.f32 %v8387_v28, %v917_v22  ;;  %v989_v60 = vadd.f32 %v8387_v28, %v919_v19  ;;  %v1116_v25 = vmul.f32 0.01, %v988_v0  ;;  %v925_v22 = vmul.f32 %v8332_v13, %v10178_v7  ;;  %v10192_v7 = vld [vmem:[#allocation39_spill] sm:$0xff] }
 0x16e   :  { %1246 = vst.msk [vmem:[#allocation2 + $0x80] sm:$0xff] %vm10158_vm6, %v1214_v6  ;;  %vm10159_vm7 = vmmov %vm10145_vm0  ;;  %vm1043_vm0 = vcmp.ge.f32.partialorder %v979_v62, 0.0  ;;  %v1177_v6 = vsel %vm1049_vm4, %v985_v63, %v1113_v41  ;;  %vm1050_vm11 = vcmp.ge.f32.partialorder %v986_v53, 0.0  ;;  %v1114_v38 = vmul.f32 0.01, %v986_v53 }
 0x16f   :  { %1247 = vst.msk [vmem:[#allocation2 + $0x88] sm:$0xff] %vm10159_vm7, %v1215_v57  ;;  %v1171_v18 = vsel %vm1043_vm0, %v979_v62, %v1107_v49  ;;  %vm10164_vm9 = vmmov %vm10157_vm5  ;;  %v1218_v57 = vadd.f32 %v1176_v24, %v1174_v42  ;;  %v10170_v62 = vld [vmem:[#allocation11_spill] sm:$0xff]  ;;  %v1219_v14 = vadd.f32 %v1177_v6, %v1175_v48  ;;  %vm1051_vm12 = vcmp.ge.f32.partialorder %v987_v56, 0.0  ;;  %v10180_v48 = vld [vmem:[#allocation17_spill] sm:$0xff] }
 0x170   :  { %v1217_v35 = vadd.f32 %v1173_v54, %v1171_v18  ;;  %1248 = vst.msk [vmem:[#allocation2 + $0x90] sm:$0xff] %vm10164_vm9, %v1216_v34  ;;  %vm10168_vm10 = vmmov %vm10157_vm5  ;;  %v920_v44 = vmul.f32 %v8332_v13, %v10170_v62  ;;  %v1115_v55 = vmul.f32 0.01, %v987_v56  ;;  %vm1053_vm7 = vcmp.ge.f32.partialorder %v989_v60, 0.0  ;;  %v10181_v62 = vld [vmem:[#allocation33_spill] sm:$0xff] }
 0x171   :  { %vm10171_vm13 = vmmov %vm10157_vm5  ;;  %vm1052_vm5 = vcmp.ge.f32.partialorder %v988_v0, 0.0  ;;  %1251 = vst.msk [vmem:[#allocation2 + $0xa8] sm:$0xff] %vm10158_vm6, %v1219_v14  ;;  %v1117_v12 = vmul.f32 0.01, %v989_v60  ;;  %v1178_v49 = vsel %vm1050_vm11, %v986_v53, %v1114_v38  ;;  %v992_v18 = vadd.f32 %v8387_v28, %v922_v40 }
 0x172   :  { %1249 = vst.msk [vmem:[#allocation2 + $0x98] sm:$0xff] %vm10168_vm10, %v1217_v35  ;;  %v1179_v9 = vsel %vm1051_vm12, %v987_v56, %v1115_v55  ;;  %v990_v1 = vadd.f32 %v8387_v28, %v920_v44  ;;  %v1180_v11 = vsel %vm1052_vm5, %v988_v0, %v1116_v25  ;;  %v993_v34 = vadd.f32 %v8387_v28, %v923_v61  ;;  %vm10175_vm14 = vmmov %vm10158_vm6 }
 0x173   :  { %1250 = vst.msk [vmem:[#allocation2 + $0xa0] sm:$0xff] %vm10171_vm13, %v1218_v57  ;;  %v1181_v63 = vsel %vm1053_vm7, %v989_v60, %v1117_v12  ;;  %v1220_v30 = vadd.f32 %v1180_v11, %v1178_v49  ;;  %vm1055_vm0 = vcmp.ge.f32.partialorder %v991_v50, 0.0  ;;  %vm1056_vm1 = vcmp.ge.f32.partialorder %v992_v18, 0.0  ;;  %vm10176_vm15 = vmmov %vm10158_vm6  ;;  %v10186_v49 = vld [vmem:[#allocation36_spill] sm:$0xff] }
 0x174   :  { %v1221_v54 = vadd.f32 %v1181_v63, %v1179_v9  ;;  %vm1054_vm8 = vcmp.ge.f32.partialorder %v990_v1, 0.0  ;;  %v1118_v35 = vmul.f32 0.01, %v990_v1  ;;  %v1119_v58 = vmul.f32 0.01, %v991_v50  ;;  %vm10182_vm4 = vmmov %vm10158_vm6  ;;  %v10187_v63 = vld [vmem:[#allocation22_spill] sm:$0xff] }
 0x175   :  { %1252 = vst.msk [vmem:[#allocation2 + $0xb0] sm:$0xff] %vm10175_vm14, %v1220_v30  ;;  %vm1057_vm2 = vcmp.ge.f32.partialorder %v993_v34, 0.0  ;;  %v1120_v29 = vmul.f32 0.01, %v992_v18  ;;  %v927_v24 = vmul.f32 %v8332_v13, %v10180_v48  ;;  %v995_v56 = vadd.f32 %v8387_v28, %v925_v22  ;;  %vm10183_vm9 = vmmov %vm10182_vm4 }
 0x176   :  { %v1270_v8 = vld [vmem:[#allocation2 + $0x80] ss:$2 sm:$0xff]  ;;  %v1286_v47 = vld [vmem:[#allocation2 + $0x81] ss:$2 sm:$0xff]  ;;  %1253 = vst.msk [vmem:[#allocation2 + $0xb8] sm:$0xff] %vm10176_vm15, %v1221_v54  ;;  %v1182_v20 = vsel %vm1054_vm8, %v990_v1, %v1118_v35  ;;  %v1183_v59 = vsel %vm1055_vm0, %v991_v50, %v1119_v58  ;;  %v996_v6 = vadd.f32 %v8387_v28, %v926_v32  ;;  %v928_v44 = vmul.f32 %v8332_v13, %v10181_v62  ;;  %vm10189_vm5 = vmmov %vm10182_vm4 }
 0x177   :  { %v8774_v33 = vadd.f32 %v1286_v47, %v1270_v8  ;;  %v1121_v8 = vmul.f32 0.01, %v993_v34  ;;  %v10177_v47 = vld [vmem:[#allocation15_spill] sm:$0xff]  ;;  %v1184_v41 = vsel %vm1056_vm1, %v992_v18, %v1120_v29  ;;  %v997_v57 = vadd.f32 %v8387_v28, %v927_v24  ;;  %v10188_v54 = vld [vmem:[#allocation37_spill] sm:$0xff]  ;;  %vm10190_vm8 = vmmov %vm10182_vm4 }
 0x178   :  { %v924_v52 = vmul.f32 %v8332_v13, %v10177_v47  ;;  %v1222_v19 = vadd.f32 %v1184_v41, %v1182_v20  ;;  %vm1059_vm10 = vcmp.ge.f32.partialorder %v995_v56, 0.0  ;;  %vm1060_vm11 = vcmp.ge.f32.partialorder %v996_v6, 0.0  ;;  %v10191_v20 = vld [vmem:[#allocation38_spill] sm:$0xff]  ;;  %v10193_v41 = vld [vmem:[#allocation40_spill] sm:$0xff] }
 0x179   :  { %v1185_v42 = vsel %vm1057_vm2, %v993_v34, %v1121_v8  ;;  %v1123_v14 = vmul.f32 0.01, %v995_v56  ;;  %v1124_v60 = vmul.f32 0.01, %v996_v6  ;;  %vm1061_vm12 = vcmp.ge.f32.partialorder %v997_v57, 0.0  ;;  %vm10195_vm2 = vmmov %vm10182_vm4 }
 0x17a   :  { %v994_v37 = vadd.f32 %v8387_v28, %v924_v52  ;;  %v1223_v53 = vadd.f32 %v1185_v42, %v1183_v59  ;;  %1254 = vst.msk [vmem:[#allocation2 + $0xc0] sm:$0xff] %vm10182_vm4, %v1222_v19  ;;  %v1125_v38 = vmul.f32 0.01, %v997_v57  ;;  %v929_v4 = vmul.f32 %v8332_v13, %v10184_v43  ;;  %v1264_v62 = vld [vmem:[#allocation2 + $0x20] ss:$2 sm:$0xff] }
 0x17b   :  { %v1187_v25 = vsel %vm1059_vm10, %v995_v56, %v1123_v14  ;;  %v1188_v12 = vsel %vm1060_vm11, %v996_v6, %v1124_v60  ;;  %v930_v40 = vmul.f32 %v8332_v13, %v10185_v39  ;;  %v931_v9 = vmul.f32 %v8332_v13, %v10186_v49  ;;  %v1266_v43 = vld [vmem:[#allocation2 + $0x40] ss:$2 sm:$0xff] }
 0x17c   :  { %vm1058_vm3 = vcmp.ge.f32.partialorder %v994_v37, 0.0  ;;  %v1122_v0 = vmul.f32 0.01, %v994_v37  ;;  %1255 = vst.msk [vmem:[#allocation2 + $0xc8] sm:$0xff] %vm10183_vm9, %v1223_v53  ;;  %v1189_v2 = vsel %vm1061_vm12, %v997_v57, %v1125_v38  ;;  %v998_v1 = vadd.f32 %v8387_v28, %v928_v44  ;;  %v10194_v57 = vld [vmem:[#allocation19_spill] sm:$0xff]  ;;  %v10197_v38 = vld [vmem:[#allocation20_spill] sm:$0xff] }
 0x17d   :  { %v999_v11 = vadd.f32 %v8387_v28, %v929_v4  ;;  %vm1009_vm13 = vcmp.ge.f32.partialorder %v10187_v63, 0.0  ;;  %v1225_v50 = vadd.f32 %v1189_v2, %v1187_v25  ;;  %v1000_v18 = vadd.f32 %v8387_v28, %v930_v40  ;;  %v1280_v44 = vld [vmem:[#allocation2 + $0x21] ss:$2 sm:$0xff]  ;;  %v8848_v39 = vld [vmem:[#allocation2] ss:$2 sm:$0xff] }
 0x17e   :  { %v1186_v55 = vsel %vm1058_vm3, %v994_v37, %v1122_v0  ;;  %v1001_v30 = vadd.f32 %v8387_v28, %v931_v9  ;;  %v932_v34 = vmul.f32 %v8332_v13, %v10188_v54  ;;  %vm1062_vm6 = vcmp.ge.f32.partialorder %v998_v1, 0.0  ;;  %vm10196_vm3 = vmmov %vm10195_vm2  ;;  %v1282_v4 = vld [vmem:[#allocation2 + $0x41] ss:$2 sm:$0xff]  ;;  %v1267_v2 = vld [vmem:[#allocation2 + $0x50] ss:$2 sm:$0xff] }
 0x17f   :  { %v1224_v61 = vadd.f32 %v1188_v12, %v1186_v55  ;;  %vm1063_vm7 = vcmp.ge.f32.partialorder %v999_v11, 0.0  ;;  %v1126_v35 = vmul.f32 0.01, %v998_v1  ;;  %v1127_v58 = vmul.f32 0.01, %v999_v11  ;;  %1257 = vst.msk [vmem:[#allocation2 + $0xd8] sm:$0xff] %vm10190_vm8, %v1225_v50  ;;  %vm10207_vm8 = vmmov %vm10195_vm2 }
 0x180   :  { %vm1064_vm0 = vcmp.ge.f32.partialorder %v1000_v18, 0.0  ;;  %vm1065_vm1 = vcmp.ge.f32.partialorder %v1001_v30, 0.0  ;;  %v1128_v29 = vmul.f32 0.01, %v1000_v18  ;;  %v1129_v8 = vmul.f32 0.01, %v1001_v30 }
 0x181   :  { %1256 = vst.msk [vmem:[#allocation2 + $0xd0] sm:$0xff] %vm10189_vm5, %v1224_v61  ;;  %v1190_v47 = vsel %vm1062_vm6, %v998_v1, %v1126_v35  ;;  %v1191_v52 = vsel %vm1063_vm7, %v999_v11, %v1127_v58  ;;  %v933_v59 = vmul.f32 %v8332_v13, %v10191_v20  ;;  %v934_v22 = vmul.f32 %v8332_v13, %v10192_v7  ;;  %v1281_v55 = vld [vmem:[#allocation2 + $0x31] ss:$2 sm:$0xff]  ;;  %v8850_v40 = vld [vmem:[#allocation2 + $0x1] ss:$2 sm:$0xff]  ;;  %vm10202_vm6 = vmmov %vm10195_vm2 }
 0x182   :  { %v1192_v23 = vsel %vm1064_vm0, %v1000_v18, %v1128_v29  ;;  %v1193_v32 = vsel %vm1065_vm1, %v1001_v30, %v1129_v8  ;;  %v935_v42 = vmul.f32 %v8332_v13, %v10193_v41  ;;  %v1002_v48 = vadd.f32 %v8387_v28, %v932_v34  ;;  %v10198_v49 = vld [vmem:[#allocation21_spill] sm:$0xff]  ;;  %v1283_v61 = vld [vmem:[#allocation2 + $0x51] ss:$2 sm:$0xff]  ;;  %v1271_v35 = vld [vmem:[#allocation2 + $0x90] ss:$2 sm:$0xff] }
 0x183   :  { %v1226_v24 = vadd.f32 %v1192_v23, %v1190_v47  ;;  %v1227_v37 = vadd.f32 %v1193_v32, %v1191_v52  ;;  %v1003_v19 = vadd.f32 %v8387_v28, %v933_v59  ;;  %v1004_v53 = vadd.f32 %v8387_v28, %v934_v22  ;;  %v1268_v1 = vld [vmem:[#allocation2 + $0x60] ss:$2 sm:$0xff]  ;;  %v1284_v11 = vld [vmem:[#allocation2 + $0x61] ss:$2 sm:$0xff]  ;;  %v10199_v54 = vld [vmem:[#allocation24_spill] sm:$0xff] }
 0x184   :  { %v1005_v56 = vadd.f32 %v8387_v28, %v935_v42  ;;  %vm1066_vm14 = vcmp.ge.f32.partialorder %v1002_v48, 0.0  ;;  %v1130_v6 = vmul.f32 0.01, %v1002_v48  ;;  %vm1006_vm15 = vcmp.ge.f32.partialorder %v10194_v57, 0.0  ;;  %v1265_v28 = vld [vmem:[#allocation2 + $0x30] ss:$2 sm:$0xff]  ;;  %vm10204_vm7 = vmmov %vm10195_vm2 }
 0x185   :  { %1258 = vst.msk [vmem:[#allocation2 + $0xe0] sm:$0xff] %vm10195_vm2, %v1226_v24  ;;  %vm1067_vm4 = vcmp.ge.f32.partialorder %v1003_v19, 0.0  ;;  %vm1068_vm9 = vcmp.ge.f32.partialorder %v1004_v53, 0.0  ;;  %v1131_v13 = vmul.f32 0.01, %v1003_v19  ;;  %vm1007_vm11 = vcmp.ge.f32.partialorder %v10197_v38, 0.0  ;;  %vm10208_vm0 = vmmov %vm10195_vm2 }
 0x186   :  { %1259 = vst.msk [vmem:[#allocation2 + $0xe8] sm:$0xff] %vm10196_vm3, %v1227_v37  ;;  %v1132_v0 = vmul.f32 0.01, %v1004_v53  ;;  %vm1069_vm10 = vcmp.ge.f32.partialorder %v1005_v56, 0.0  ;;  %v1133_v14 = vmul.f32 0.01, %v1005_v56  ;;  %v1194_v60 = vsel %vm1066_vm14, %v1002_v48, %v1130_v6  ;;  %vm10209_vm1 = vmmov %vm10208_vm0 }
 0x187   :  { %v1195_v25 = vsel %vm1067_vm4, %v1003_v19, %v1131_v13  ;;  %vm1008_vm12 = vcmp.ge.f32.partialorder %v10198_v49, 0.0  ;;  %v1070_v9 = vmul.f32 0.01, %v10194_v57  ;;  %v1071_v30 = vmul.f32 0.01, %v10197_v38  ;;  %v10200_v47 = vld [vmem:[#allocation25_spill] sm:$0xff]  ;;  %vm10210_vm14 = vmmov %vm10208_vm0 }
 0x188   :  { %v1196_v12 = vsel %vm1068_vm9, %v1004_v53, %v1132_v0  ;;  %v1197_v50 = vsel %vm1069_vm10, %v1005_v56, %v1133_v14  ;;  %v1136_v34 = vsel %vm1008_vm12, %v10198_v49, %v10199_v54  ;;  %v1287_v58 = vld [vmem:[#allocation2 + $0x91] ss:$2 sm:$0xff]  ;;  %v1137_v52 = vsel %vm1009_vm13, %v10187_v63, %v10200_v47  ;;  %v1272_v59 = vld [vmem:[#allocation2 + $0xa0] ss:$2 sm:$0xff]  ;;  %v1288_v7 = vld [vmem:[#allocation2 + $0xa1] ss:$2 sm:$0xff] }
 0x189   :  { %v1228_v18 = vadd.f32 %v1196_v12, %v1194_v60  ;;  %v1229_v29 = vadd.f32 %v1197_v50, %v1195_v25  ;;  %v1134_v8 = vsel %vm1006_vm15, %v10194_v57, %v1070_v9  ;;  %v10201_v20 = vld [vmem:[#allocation23_spill] sm:$0xff]  ;;  %v1135_v22 = vsel %vm1007_vm11, %v10197_v38, %v1071_v30  ;;  %v10203_v32 = vld [vmem:[#allocation26_spill] sm:$0xff]  ;;  %vm10206_vm13 = vmmov %vm10195_vm2 }
 0x18a   :  { %vm1010_vm5 = vcmp.ge.f32.partialorder %v10201_v20, 0.0  ;;  %v1198_v23 = vadd.f32 %v1136_v34, %v1134_v8  ;;  %v1296_v42 = vadd.f32 %v1280_v44, %v1264_v62  ;;  %v1273_v48 = vld [vmem:[#allocation2 + $0xb0] ss:$2 sm:$0xff]  ;;  %v1289_v24 = vld [vmem:[#allocation2 + $0xb1] ss:$2 sm:$0xff]  ;;  %v1199_v63 = vadd.f32 %v1137_v52, %v1135_v22  ;;  %vm10211_vm15 = vmmov %vm10208_vm0 }
 0x18b   :  { %1260 = vst.msk [vmem:[#allocation2 + $0xf0] sm:$0xff] %vm10202_vm6, %v1228_v18  ;;  %v1138_v41 = vsel %vm1010_vm5, %v10201_v20, %v10203_v32  ;;  %v1274_v37 = vld [vmem:[#allocation2 + $0xc0] ss:$2 sm:$0xff]  ;;  %v10205_v19 = vld [vmem:[#allocation27_spill] sm:$0xff]  ;;  %v1297_v56 = vadd.f32 %v1281_v55, %v1265_v28  ;;  %v1298_v6 = vadd.f32 %v1282_v4, %v1266_v43  ;;  %v1290_v57 = vld [vmem:[#allocation2 + $0xc1] ss:$2 sm:$0xff]  ;;  %v1299_v60 = vadd.f32 %v1283_v61, %v1267_v2 }
 0x18c   :  { %1261 = vst.msk [vmem:[#allocation2 + $0xf8] sm:$0xff] %vm10204_vm7, %v1229_v29  ;;  %v1200_v53 = vadd.f32 %v10205_v19, %v1138_v41  ;;  %v1275_v13 = vld [vmem:[#allocation2 + $0xd0] ss:$2 sm:$0xff]  ;;  %v1291_v0 = vld [vmem:[#allocation2 + $0xd1] ss:$2 sm:$0xff]  ;;  %v1312_v14 = vmul.f32 0.25, %v1296_v42  ;;  %v1300_v38 = vadd.f32 %v1284_v11, %v1268_v1  ;;  %v1303_v28 = vadd.f32 %v1287_v58, %v1271_v35  ;;  %vm10212_vm2 = vmmov %vm10208_vm0 }
 0x18d   :  { %1230 = vst.msk [vmem:[#allocation2] sm:$0xff] %vm10206_vm13, %v1198_v23  ;;  %v1318_v62 = vmul.f32 0.25, %v8774_v33  ;;  %v1276_v44 = vld [vmem:[#allocation2 + $0xe0] ss:$2 sm:$0xff]  ;;  %v1292_v25 = vld [vmem:[#allocation2 + $0xe1] ss:$2 sm:$0xff]  ;;  %v1304_v55 = vadd.f32 %v1288_v7, %v1272_v59  ;;  %v1305_v2 = vadd.f32 %v1289_v24, %v1273_v48  ;;  %v1306_v33 = vadd.f32 %v1290_v57, %v1274_v37  ;;  %vm10213_vm3 = vmmov %vm10208_vm0 }
 0x18e   :  { %1231 = vst.msk [vmem:[#allocation2 + $0x8] sm:$0xff] %vm10207_vm8, %v1199_v63  ;;  %v1313_v12 = vmul.f32 0.25, %v1297_v56  ;;  %v1314_v49 = vmul.f32 0.25, %v1298_v6  ;;  %v1269_v43 = vld [vmem:[#allocation2 + $0x70] ss:$2 sm:$0xff]  ;;  %v1315_v9 = vmul.f32 0.25, %v1299_v60  ;;  %v1307_v11 = vadd.f32 %v1291_v0, %v1275_v13  ;;  %vm10214_vm4 = vmmov %vm10208_vm0 }
 0x18f   :  { %1232 = vst.msk [vmem:[#allocation2 + $0x10] sm:$0xff] %vm10208_vm0, %v1200_v53  ;;  %v1285_v4 = vld [vmem:[#allocation2 + $0x71] ss:$2 sm:$0xff]  ;;  %v1316_v50 = vmul.f32 0.25, %v1300_v38  ;;  %v1319_v61 = vmul.f32 0.25, %v1303_v28  ;;  %v1320_v1 = vmul.f32 0.25, %v1304_v55  ;;  %v1308_v18 = vadd.f32 %v1292_v25, %v1276_v44  ;;  %vm10215_vm9 = vmmov %vm10208_vm0 }
 0x190   :  { %1370 = vst.msk [vmem:[#allocation3 + $0x31] sm:$0xff] %vm10209_vm1, %v1312_v14  ;;  %v1321_v30 = vmul.f32 0.25, %v1305_v2  ;;  %v1322_v54 = vmul.f32 0.25, %v1306_v33  ;;  %v1301_v34 = vadd.f32 %v1285_v4, %v1269_v43  ;;  %vm10216_vm10 = vmmov %vm10208_vm0  ;;  %v1323_v35 = vmul.f32 0.25, %v1307_v11  ;;  %v1386_v37 = vld [vmem:[%s9957_s3 + $0x8] sm:$0xf] }
 0x191   :  { %1376 = vst.msk [vmem:[#allocation3 + $0xb1] sm:$0xff] %vm10210_vm14, %v1318_v62  ;;  %v1324_v58 = vmul.f32 0.25, %v1308_v18  ;;  %vm10217_vm11 = vmmov %vm10208_vm0  ;;  %v10225_v19 = vld [vmem:[#allocation41_spill] sm:$0xff]  ;;  %vm10226_vm14 = vcmask 1043456   ;;  %v1387_v43 = vld [vmem:[%s9957_s3 + $0xc] sm:$0xf] }
 0x192   :  { %1371 = vst.msk [vmem:[#allocation3 + $0x41] sm:$0xff] %vm10211_vm15, %v1313_v12  ;;  %vm10218_vm12 = vmmov %vm10208_vm0  ;;  %v1317_v29 = vmul.f32 0.25, %v1301_v34  ;;  %v1417_v0 = vld [vmem:[#allocation3 + $0xa1] sm:$0xff] }
 0x193   :  { %1372 = vst.msk [vmem:[#allocation3 + $0x51] sm:$0xff] %vm10212_vm2, %v1314_v49  ;;  %v1277_v8 = vld [vmem:[#allocation2 + $0xf0] ss:$2 sm:$0xff]  ;;  %v1293_v47 = vld [vmem:[#allocation2 + $0xf1] ss:$2 sm:$0xff]  ;;  %vm10219_vm5 = vmmov %vm10208_vm0 }
 0x194   :  { %1373 = vst.msk [vmem:[#allocation3 + $0x61] sm:$0xff] %vm10213_vm3, %v1315_v9  ;;  %vm10220_vm6 = vmmov %vm10208_vm0  ;;  %v1309_v52 = vadd.f32 %v1293_v47, %v1277_v8  ;;  %v1393_v49 = vld [vmem:[#allocation3] sm:$0xff]  ;;  %v1388_v47 = vld [vmem:[%s9957_s3 + $0x10] sm:$0xf] }
 0x195   :  { %1374 = vst.msk [vmem:[#allocation3 + $0x71] sm:$0xff] %vm10214_vm4, %v1316_v50  ;;  %v1262_v20 = vld [vmem:[#allocation2] ss:$2 sm:$0xff]  ;;  %v1278_v59 = vld [vmem:[#allocation2 + $0x1] ss:$2 sm:$0xff]  ;;  %vm10221_vm7 = vmmov %vm10208_vm0 }
 0x196   :  { %1377 = vst.msk [vmem:[#allocation3 + $0xc1] sm:$0xff] %vm10215_vm9, %v1319_v61  ;;  %v1263_v7 = vld [vmem:[#allocation2 + $0x10] ss:$2 sm:$0xff]  ;;  %v1294_v22 = vadd.f32 %v1278_v59, %v1262_v20  ;;  %v1279_v23 = vld [vmem:[#allocation2 + $0x11] ss:$2 sm:$0xff]  ;;  %v1325_v32 = vmul.f32 0.25, %v1309_v52  ;;  %vm10222_vm13 = vmmov %vm10208_vm0 }
 0x197   :  { %1378 = vst.msk [vmem:[#allocation3 + $0xd1] sm:$0xff] %vm10216_vm10, %v1320_v1  ;;  %v1295_v41 = vadd.f32 %v1279_v23, %v1263_v7  ;;  %vm10223_vm8 = vmmov %vm10208_vm0  ;;  %v8907_v53 = vld [vmem:[#allocation3 + $0x31] sm:$0xff]  ;;  %v1401_v61 = vld [vmem:[#allocation3 + $0xa0] sm:$0xff] }
 0x198   :  { %1379 = vst.msk [vmem:[#allocation3 + $0xe1] sm:$0xff] %vm10217_vm11, %v1321_v30  ;;  %v1310_v42 = vmul.f32 0.25, %v1294_v22  ;;  %vm10224_vm1 = vmmov %vm10208_vm0  ;;  %v8929_v14 = vld [vmem:[#allocation3 + $0xb1] sm:$0xff] }
 0x199   :  { %1380 = vst.msk [vmem:[#allocation3 + $0xf1] sm:$0xff] %vm10218_vm12, %v1322_v54  ;;  %v1311_v48 = vmul.f32 0.25, %v1295_v41  ;;  %vm10227_vm15 = vmmov %vm10208_vm0  ;;  %v8909_v56 = vld [vmem:[#allocation3 + $0x41] sm:$0xff]  ;;  %v8970_v4 = vld [vmem:[#allocation3 + $0x30] sm:$0xff] }
 0x19a   :  { %1381 = vst.msk [vmem:[#allocation3 + $0x101] sm:$0xff] %vm10219_vm5, %v1323_v35  ;;  %vm10228_vm2 = vmmov %vm10226_vm14  ;;  %v8916_v6 = vld [vmem:[#allocation3 + $0x51] sm:$0xff]  ;;  %v8972_v9 = vld [vmem:[#allocation3 + $0x40] sm:$0xff] }
 0x19b   :  { %1382 = vst.msk [vmem:[#allocation3 + $0x111] sm:$0xff] %vm10220_vm6, %v1324_v58  ;;  %vm10229_vm3 = vmmov %vm10208_vm0  ;;  %v8918_v57 = vld [vmem:[#allocation3 + $0x61] sm:$0xff]  ;;  %v8979_v50 = vld [vmem:[#allocation3 + $0x50] sm:$0xff] }
 0x19c   :  { %1375 = vst.msk [vmem:[#allocation3 + $0x81] sm:$0xff] %vm10221_vm7, %v1317_v29  ;;  %vm10230_vm4 = vmmov %vm10208_vm0  ;;  %v8924_v13 = vld [vmem:[#allocation3 + $0x71] sm:$0xff]  ;;  %v8981_v2 = vld [vmem:[#allocation3 + $0x60] sm:$0xff] }
 0x19d   :  { %1383 = vst.msk [vmem:[#allocation3 + $0x121] sm:$0xff] %vm10222_vm13, %v1325_v32  ;;  %vm10231_vm9 = vmmov %vm10208_vm0  ;;  %v8931_v60 = vld [vmem:[#allocation3 + $0xc1] sm:$0xff]  ;;  %v8987_v33 = vld [vmem:[#allocation3 + $0x70] sm:$0xff] }
 0x19e   :  { %1368 = vst.msk [vmem:[#allocation3 + $0x11] sm:$0xff] %vm10223_vm8, %v1310_v42  ;;  %vm10232_vm10 = vmmov %vm10208_vm0  ;;  %v8937_v38 = vld [vmem:[#allocation3 + $0xd1] sm:$0xff]  ;;  %v8994_v11 = vld [vmem:[#allocation3 + $0xc0] sm:$0xff] }
 0x19f   :  { %1369 = vst.msk [vmem:[#allocation3 + $0x21] sm:$0xff] %vm10208_vm0, %v1311_v48  ;;  %vm10233_vm11 = vmmov %vm10208_vm0  ;;  %v8939_v62 = vld [vmem:[#allocation3 + $0xe1] sm:$0xff]  ;;  %v8992_v1 = vld [vmem:[#allocation3 + $0xb0] sm:$0xff] }
 0x1a0   :  { %vm10234_vm12 = vmmov %vm10208_vm0  ;;  %v8945_v44 = vld [vmem:[#allocation3 + $0xf1] sm:$0xff]  ;;  %v9002_v30 = vld [vmem:[#allocation3 + $0xe0] sm:$0xff] }
 0x1a1   :  { %vm10235_vm5 = vmmov %vm10208_vm0  ;;  %v8947_v25 = vld [vmem:[#allocation3 + $0x101] sm:$0xff]  ;;  %v9000_v18 = vld [vmem:[#allocation3 + $0xd0] sm:$0xff] }
 0x1a2   :  { %vm10236_vm6 = vmmov %vm10208_vm0  ;;  %v8953_v12 = vld [vmem:[#allocation3 + $0x111] sm:$0xff]  ;;  %v9010_v34 = vld [vmem:[#allocation3 + $0x100] sm:$0xff] }
 0x1a3   :  { %vm10237_vm7 = vmmov %vm10208_vm0  ;;  %v9008_v54 = vld [vmem:[#allocation3 + $0xf0] sm:$0xff]  ;;  %v1817_v58 = vld [vmem:[#allocation3 + $0x2] sm:$0xff] }
 0x1a4   :  { %vm10238_vm13 = vmmov %vm10208_vm0  ;;  %v9016_v35 = vld [vmem:[#allocation3 + $0x110] sm:$0xff]  ;;  %v9037_v59 = vld [vmem:[#allocation3 + $0x42] sm:$0xff] }
 0x1a5   :  { %v8894_v24 = vld [vmem:[#allocation3 + $0x11] sm:$0xff]  ;;  %vm10239_vm8 = vmmov %vm10208_vm0  ;;  %v9052_v41 = vld [vmem:[#allocation3 + $0x62] sm:$0xff] }
 0x1a6   :  { %6388 = vmatmul.mubr.msk.f32.vlgmr.msra.gmra.mrb[8].mxu1 %vm10224_vm1, %v8894_v24  ;;  %v8901_v63 = vld [vmem:[#allocation3 + $0x21] sm:$0xff]  ;;  %vm10240_vm1 = vmmov %vm10208_vm0  ;;  %v8958_v28 = vld [vmem:[#allocation3 + $0x10] sm:$0xff] }
 0x1a7   :  { %6412 = vmatpush3.msk.msra.mxu1 %vm10226_vm14, %v10225_v19  ;;  %6390 = vmatprep.mubr.msk.f32.mxu1 %vm10227_vm15, %v8901_v63  ;;  %vm10241_vm14 = vmmov %vm10208_vm0  ;;  %v8960_v55 = vld [vmem:[#allocation3 + $0x20] sm:$0xff]  ;;  %v9021_v29 = vld [vmem:[#allocation3 + $0x12] sm:$0xff] }
 0x1a8   :  { %6437 = vmatprep.subr.msk.mxu1 %vm10228_vm2, %v1386_v37  ;;  %vm10242_vm15 = vmmov %vm10208_vm0  ;;  %v9023_v8 = vld [vmem:[#allocation3 + $0x22] sm:$0xff]  ;;  %v9033_v52 = vld [vmem:[#allocation3 + $0x32] sm:$0xff] }
 0x1a9   :  { %v9048_v23 = vld [vmem:[#allocation3 + $0x52] sm:$0xff]  ;;  %v1825_v19 = vld [vmem:[#allocation3 + $0xa2] sm:$0xff] }
 0x1aa   :  { %6391 = vmatmul.mubr.msk.f32.gmra.mrb[10].mxu1 %vm10229_vm3, %v8907_v53  ;;  %vm10243_vm3 = vmmov %vm10208_vm0  ;;  %v9060_v48 = vld [vmem:[#allocation3 + $0x72] sm:$0xff] }
 0x1ab   :  { %6393 = vmatprep.mubr.msk.f32.mxu1 %vm10230_vm4, %v8909_v56  ;;  %vm10244_vm4 = vmmov %vm10228_vm2 }
 0x1ae   :  { %6394 = vmatmul.mubr.msk.f32.gmra.mrb[12].mxu1 %vm10231_vm9, %v8916_v6  ;;  %vm10245_vm9 = vmmov %vm10208_vm0 }
 0x1af   :  { %6396 = vmatprep.mubr.msk.f32.mxu1 %vm10232_vm10, %v8918_v57  ;;  %vm10246_vm10 = vmmov %vm10208_vm0 }
 0x1b0   :  { %v9035_v20 = vpop.f32.mrb[0].mxu1 }
 0x1b1   :  { %v9040_v7 = vpop.f32.mrb[1].mxu1 }
 0x1b2   :  { %6397 = vmatmul.mubr.msk.f32.gmra.mrb[14].mxu1 %vm10233_vm11, %v8924_v13  ;;  %vm10247_vm11 = vmmov %vm10208_vm0 }
 0x1b3   :  { %6399 = vmatprep.mubr.msk.f32.mxu1 %vm10234_vm12, %v1417_v0  ;;  %vm10248_vm12 = vmmov %vm10208_vm0 }
 0x1b4   :  { %v9044_v22 = vpop.f32.mrb[2].mxu1 }
 0x1b5   :  { %v9050_v32 = vpop.f32.mrb[3].mxu1 }
 0x1b6   :  { %6400 = vmatmul.mubr.msk.f32.gmra.mrb[16].mxu1 %vm10235_vm5, %v8929_v14  ;;  %vm10249_vm5 = vmmov %vm10208_vm0 }
 0x1b7   :  { %6402 = vmatprep.mubr.msk.f32.mxu1 %vm10236_vm6, %v8931_v60  ;;  %vm10250_vm6 = vmmov %vm10208_vm0 }
 0x1ba   :  { %6403 = vmatmul.mubr.msk.f32.gmra.mrb[18].mxu1 %vm10237_vm7, %v8937_v38  ;;  %vm10251_vm7 = vmmov %vm10208_vm0 }
 0x1bb   :  { %6405 = vmatprep.mubr.msk.f32.mxu1 %vm10238_vm13, %v8939_v62  ;;  %vm10252_vm13 = vmmov %vm10208_vm0 }
 0x1bc   :  { %v9056_v42 = vpop.f32.mrb[4].mxu1 }
 0x1bd   :  { %10264 = vst [vmem:[#allocation28_spill] sm:$0xff] %v9056_v42  ;;  %v1389_v42 = vld [vmem:[%s9957_s3 + $0x14] sm:$0xf] }
 0x1be   :  { %6406 = vmatmul.mubr.msk.f32.gmra.mrb[20].mxu1 %vm10239_vm8, %v8945_v44  ;;  %vm10253_vm8 = vmmov %vm10208_vm0 }
 0x1bf   :  { %6408 = vmatprep.mubr.msk.f32.mxu1 %vm10208_vm0, %v8947_v25 }
 0x1c2   :  { %6409 = vmatmul.mubr.msk.f32.gmra.mrb[22].mxu1 %vm10240_vm1, %v8953_v12  ;;  %vm10254_vm1 = vmmov %vm10208_vm0 }
 0x1c3   :  { %6413 = vmatprep.mubr.msk.f32.mxu1 %vm10241_vm14, %v1393_v49  ;;  %vm10255_vm14 = vmmov %vm10208_vm0  ;;  %v9069_v49 = vld [vmem:[#allocation3 + $0xb2] sm:$0xff] }
 0x1c6   :  { %6414 = vmatmul.mubr.msk.f32.vlgmr.msra.gmra.mrb[8].mxu1 %vm10242_vm15, %v8958_v28  ;;  %vm10256_vm15 = vmmov %vm10208_vm0 }
 0x1c7   :  { %6438 = vmatpush3.msk.msra.mxu1 %vm10228_vm2, %v1386_v37  ;;  %6416 = vmatprep.mubr.msk.f32.mxu1 %vm10243_vm3, %v8960_v55  ;;  %vm10257_vm2 = vmmov %vm10208_vm0  ;;  %v9062_v37 = vpop.f32.mrb[5].mxu1 }
 0x1c8   :  { %6463 = vmatprep.subr.msk.mxu1 %vm10244_vm4, %v1387_v43  ;;  %vm10258_vm3 = vmmov %vm10208_vm0  ;;  %10266 = vst [vmem:[#allocation29_spill] sm:$0xff] %v9062_v37  ;;  %v9081_v37 = vld [vmem:[#allocation3 + $0xe2] sm:$0xff] }
 0x1c9   :  { %v9066_v0 = vpop.f32.mrb[6].mxu1 }
 0x1ca   :  { %6417 = vmatmul.mubr.msk.f32.gmra.mrb[10].mxu1 %vm10245_vm9, %v8970_v4  ;;  %vm10259_vm9 = vmmov %vm10208_vm0  ;;  %10268 = vst [vmem:[#allocation30_spill] sm:$0xff] %v9066_v0  ;;  %v9095_v0 = vld [vmem:[#allocation3 + $0x112] sm:$0xff] }
 0x1cb   :  { %6419 = vmatprep.mubr.msk.f32.mxu1 %vm10246_vm10, %v8972_v9  ;;  %vm10260_vm10 = vmmov %vm10244_vm4 }
 0x1ce   :  { %6420 = vmatmul.mubr.msk.f32.gmra.mrb[12].mxu1 %vm10247_vm11, %v8979_v50  ;;  %vm10261_vm11 = vmmov %vm10208_vm0 }
 0x1cf   :  { %6422 = vmatprep.mubr.msk.f32.mxu1 %vm10248_vm12, %v8981_v2  ;;  %vm10262_vm12 = vmmov %vm10208_vm0 }
 0x1d2   :  { %6423 = vmatmul.mubr.msk.f32.gmra.mrb[14].mxu1 %vm10249_vm5, %v8987_v33  ;;  %vm10263_vm5 = vmmov %vm10208_vm0 }
 0x1d3   :  { %6425 = vmatprep.mubr.msk.f32.mxu1 %vm10250_vm6, %v1401_v61  ;;  %vm10265_vm6 = vmmov %vm10208_vm0  ;;  %v9073_v61 = vld [vmem:[#allocation3 + $0xc2] sm:$0xff] }
 0x1d6   :  { %6426 = vmatmul.mubr.msk.f32.gmra.mrb[16].mxu1 %vm10251_vm7, %v8992_v1  ;;  %vm10267_vm7 = vmmov %vm10208_vm0 }
 0x1d7   :  { %6428 = vmatprep.mubr.msk.f32.mxu1 %vm10252_vm13, %v8994_v11  ;;  %vm10269_vm13 = vmmov %vm10208_vm0 }
 0x1da   :  { %6429 = vmatmul.mubr.msk.f32.gmra.mrb[18].mxu1 %vm10253_vm8, %v9000_v18  ;;  %vm10271_vm8 = vmmov %vm10208_vm0 }
 0x1db   :  { %6431 = vmatprep.mubr.msk.f32.mxu1 %vm10208_vm0, %v9002_v30 }
 0x1de   :  { %6432 = vmatmul.mubr.msk.f32.gmra.mrb[20].mxu1 %vm10254_vm1, %v9008_v54  ;;  %vm10272_vm1 = vmmov %vm10208_vm0 }
 0x1df   :  { %6434 = vmatprep.mubr.msk.f32.mxu1 %vm10255_vm14, %v9010_v34  ;;  %vm10273_vm14 = vmmov %vm10208_vm0 }
 0x1e2   :  { %6435 = vmatmul.mubr.msk.f32.gmra.mrb[22].mxu1 %vm10256_vm15, %v9016_v35  ;;  %vm10274_vm15 = vmmov %vm10208_vm0 }
 0x1e3   :  { %6439 = vmatprep.mubr.msk.f32.mxu1 %vm10257_vm2, %v1817_v58  ;;  %v9079_v58 = vld [vmem:[#allocation3 + $0xd2] sm:$0xff]  ;;  %vm10275_vm2 = vmmov %vm10208_vm0 }
 0x1e6   :  { %6440 = vmatmul.mubr.msk.f32.vlgmr.msra.gmra.mrb[8].mxu1 %vm10258_vm3, %v9021_v29  ;;  %vm10276_vm3 = vmmov %vm10208_vm0 }
 0x1e7   :  { %6464 = vmatpush3.msk.msra.mxu1 %vm10244_vm4, %v1387_v43  ;;  %6442 = vmatprep.mubr.msk.f32.mxu1 %vm10259_vm9, %v9023_v8  ;;  %v9071_v43 = vpop.f32.mrb[7].mxu1  ;;  %vm10277_vm4 = vmmov %vm10208_vm0 }
 0x1e8   :  { %6489 = vmatprep.subr.msk.mxu1 %vm10260_vm10, %v1388_v47  ;;  %10270 = vst [vmem:[#allocation31_spill] sm:$0xff] %v9071_v43  ;;  %v9089_v43 = vld [vmem:[#allocation3 + $0x102] sm:$0xff]  ;;  %vm10278_vm9 = vmmov %vm10208_vm0 }
 0x1ea   :  { %6443 = vmatmul.mubr.msk.f32.gmra.mrb[10].mxu1 %vm10261_vm11, %v9033_v52  ;;  %vm10279_vm11 = vmmov %vm10208_vm0 }
 0x1eb   :  { %6445 = vmatprep.mubr.msk.f32.mxu1 %vm10262_vm12, %v9037_v59  ;;  %vm10280_vm12 = vmmov %vm10260_vm10 }
 0x1ee   :  { %6446 = vmatmul.mubr.msk.f32.gmra.mrb[12].mxu1 %vm10263_vm5, %v9048_v23  ;;  %vm10281_vm5 = vmmov %vm10208_vm0 }
 0x1ef   :  { %6448 = vmatprep.mubr.msk.f32.mxu1 %vm10265_vm6, %v9052_v41  ;;  %vm10282_vm6 = vmmov %vm10208_vm0 }
 0x1f2   :  { %6449 = vmatmul.mubr.msk.f32.gmra.mrb[14].mxu1 %vm10267_vm7, %v9060_v48  ;;  %vm10283_vm7 = vmmov %vm10208_vm0 }
 0x1f3   :  { %6451 = vmatprep.mubr.msk.f32.mxu1 %vm10269_vm13, %v1825_v19  ;;  %v9087_v19 = vld [vmem:[#allocation3 + $0xf2] sm:$0xff]  ;;  %vm10284_vm13 = vmmov %vm10208_vm0 }
 0x1f6   :  { %6452 = vmatmul.mubr.msk.f32.gmra.mrb[16].mxu1 %vm10271_vm8, %v9069_v49  ;;  %vm10285_vm8 = vmmov %vm10208_vm0 }
 0x1f7   :  { %6454 = vmatprep.mubr.msk.f32.mxu1 %vm10208_vm0, %v9073_v61 }
 0x1fa   :  { %6455 = vmatmul.mubr.msk.f32.gmra.mrb[18].mxu1 %vm10272_vm1, %v9079_v58  ;;  %vm10286_vm1 = vmmov %vm10208_vm0 }
 0x1fb   :  { %6457 = vmatprep.mubr.msk.f32.mxu1 %vm10273_vm14, %v9081_v37  ;;  %vm10287_vm14 = vmmov %vm10208_vm0 }
 0x1fe   :  { %6458 = vmatmul.mubr.msk.f32.gmra.mrb[20].mxu1 %vm10274_vm15, %v9087_v19  ;;  %vm10288_vm15 = vmmov %vm10208_vm0 }
 0x1ff   :  { %6460 = vmatprep.mubr.msk.f32.mxu1 %vm10275_vm2, %v9089_v43  ;;  %vm10289_vm2 = vmmov %vm10208_vm0 }
 0x202   :  { %6461 = vmatmul.mubr.msk.f32.gmra.mrb[22].mxu1 %vm10276_vm3, %v9095_v0  ;;  %vm10290_vm3 = vmmov %vm10208_vm0 }
 0x203   :  { %6465 = vmatprep.mubr.msk.f32.mxu1 %vm10277_vm4, %v8958_v28  ;;  %v2052_v28 = vld [vmem:[#allocation3 + $0x80] sm:$0xff]  ;;  %vm10291_vm4 = vmmov %vm10208_vm0 }
 0x206   :  { %6466 = vmatmul.mubr.msk.f32.vlgmr.msra.gmra.mrb[8].mxu1 %vm10278_vm9, %v8960_v55  ;;  %vm10292_vm9 = vmmov %vm10208_vm0 }
 0x207   :  { %6490 = vmatpush3.msk.msra.mxu1 %vm10260_vm10, %v1388_v47  ;;  %6468 = vmatprep.mubr.msk.f32.mxu1 %vm10279_vm11, %v8970_v4  ;;  %v2060_v47 = vld [vmem:[#allocation3 + $0x120] sm:$0xff]  ;;  %vm10293_vm10 = vmmov %vm10208_vm0 }
 0x208   :  { %6515 = vmatprep.subr.msk.mxu1 %vm10280_vm12, %v1389_v42  ;;  %vm10294_vm11 = vmmov %vm10208_vm0 }
 0x20a   :  { %6469 = vmatmul.mubr.msk.f32.gmra.mrb[10].mxu1 %vm10281_vm5, %v8972_v9  ;;  %vm10295_vm5 = vmmov %vm10208_vm0 }
 0x20b   :  { %6471 = vmatprep.mubr.msk.f32.mxu1 %vm10282_vm6, %v8979_v50  ;;  %vm10296_vm6 = vmmov %vm10280_vm12 }
 0x20e   :  { %6472 = vmatmul.mubr.msk.f32.gmra.mrb[12].mxu1 %vm10283_vm7, %v8981_v2  ;;  %vm10297_vm7 = vmmov %vm10208_vm0 }
 0x20f   :  { %6474 = vmatprep.mubr.msk.f32.mxu1 %vm10284_vm13, %v8987_v33  ;;  %vm10298_vm13 = vmmov %vm10208_vm0 }
 0x212   :  { %6475 = vmatmul.mubr.msk.f32.gmra.mrb[14].mxu1 %vm10285_vm8, %v2052_v28  ;;  %vm10299_vm8 = vmmov %vm10208_vm0 }
 0x213   :  { %6477 = vmatprep.mubr.msk.f32.mxu1 %vm10208_vm0, %v8992_v1  ;;  %v1390_v1 = vld [vmem:[%s9957_s3 + $0x18] sm:$0xf] }
 0x216   :  { %6478 = vmatmul.mubr.msk.f32.gmra.mrb[16].mxu1 %vm10286_vm1, %v8994_v11  ;;  %vm10300_vm1 = vmmov %vm10208_vm0 }
 0x217   :  { %6480 = vmatprep.mubr.msk.f32.mxu1 %vm10287_vm14, %v9000_v18  ;;  %vm10301_vm14 = vmmov %vm10208_vm0 }
 0x21a   :  { %6481 = vmatmul.mubr.msk.f32.gmra.mrb[18].mxu1 %vm10288_vm15, %v9002_v30  ;;  %vm10302_vm15 = vmmov %vm10208_vm0 }
 0x21b   :  { %6483 = vmatprep.mubr.msk.f32.mxu1 %vm10289_vm2, %v9008_v54  ;;  %vm10303_vm2 = vmmov %vm10208_vm0 }
 0x21e   :  { %6484 = vmatmul.mubr.msk.f32.gmra.mrb[20].mxu1 %vm10290_vm3, %v9010_v34  ;;  %vm10304_vm3 = vmmov %vm10208_vm0 }
 0x21f   :  { %6486 = vmatprep.mubr.msk.f32.mxu1 %vm10291_vm4, %v9016_v35  ;;  %vm10305_vm4 = vmmov %vm10208_vm0 }
 0x222   :  { %6487 = vmatmul.mubr.msk.f32.gmra.mrb[22].mxu1 %vm10292_vm9, %v2060_v47  ;;  %vm10306_vm9 = vmmov %vm10208_vm0 }
 0x223   :  { %6491 = vmatprep.mubr.msk.f32.mxu1 %vm10293_vm10, %v8894_v24  ;;  %v2280_v24 = vld [vmem:[#allocation3 + $0x81] sm:$0xff]  ;;  %vm10307_vm10 = vmmov %vm10208_vm0 }
 0x226   :  { %6492 = vmatmul.mubr.msk.f32.vlgmr.msra.gmra.mrb[8].mxu1 %vm10294_vm11, %v8901_v63  ;;  %vm10308_vm11 = vmmov %vm10208_vm0 }
 0x227   :  { %6516 = vmatpush3.msk.msra.mxu1 %vm10280_vm12, %v1389_v42  ;;  %6494 = vmatprep.mubr.msk.f32.mxu1 %vm10295_vm5, %v8907_v53  ;;  %v2288_v42 = vld [vmem:[#allocation3 + $0x121] sm:$0xff]  ;;  %vm10309_vm12 = vmmov %vm10208_vm0 }
 0x228   :  { %6541 = vmatprep.subr.msk.mxu1 %vm10296_vm6, %v1390_v1  ;;  %vm10310_vm5 = vmmov %vm10208_vm0 }
 0x22a   :  { %6495 = vmatmul.mubr.msk.f32.gmra.mrb[10].mxu1 %vm10297_vm7, %v8909_v56  ;;  %vm10311_vm7 = vmmov %vm10208_vm0 }
 0x22b   :  { %6497 = vmatprep.mubr.msk.f32.mxu1 %vm10298_vm13, %v8916_v6  ;;  %vm10312_vm13 = vmmov %vm10296_vm6 }
 0x22e   :  { %6498 = vmatmul.mubr.msk.f32.gmra.mrb[12].mxu1 %vm10299_vm8, %v8918_v57  ;;  %vm10313_vm8 = vmmov %vm10208_vm0 }
 0x22f   :  { %6500 = vmatprep.mubr.msk.f32.mxu1 %vm10208_vm0, %v8924_v13 }
 0x232   :  { %6501 = vmatmul.mubr.msk.f32.gmra.mrb[14].mxu1 %vm10300_vm1, %v2280_v24  ;;  %vm10314_vm1 = vmmov %vm10208_vm0 }
 0x233   :  { %6503 = vmatprep.mubr.msk.f32.mxu1 %vm10301_vm14, %v8929_v14  ;;  %v1391_v14 = vld [vmem:[%s9957_s3 + $0x1c] sm:$0xf]  ;;  %vm10315_vm14 = vmmov %vm10208_vm0 }
 0x236   :  { %6504 = vmatmul.mubr.msk.f32.gmra.mrb[16].mxu1 %vm10302_vm15, %v8931_v60  ;;  %vm10316_vm15 = vmmov %vm10208_vm0 }
 0x237   :  { %6506 = vmatprep.mubr.msk.f32.mxu1 %vm10303_vm2, %v8937_v38  ;;  %vm10317_vm2 = vmmov %vm10208_vm0 }
 0x23a   :  { %6507 = vmatmul.mubr.msk.f32.gmra.mrb[18].mxu1 %vm10304_vm3, %v8939_v62  ;;  %vm10318_vm3 = vmmov %vm10208_vm0 }
 0x23b   :  { %6509 = vmatprep.mubr.msk.f32.mxu1 %vm10305_vm4, %v8945_v44  ;;  %vm10319_vm4 = vmmov %vm10208_vm0 }
 0x23e   :  { %6510 = vmatmul.mubr.msk.f32.gmra.mrb[20].mxu1 %vm10306_vm9, %v8947_v25  ;;  %vm10320_vm9 = vmmov %vm10208_vm0 }
 0x23f   :  { %6512 = vmatprep.mubr.msk.f32.mxu1 %vm10307_vm10, %v8953_v12  ;;  %vm10321_vm10 = vmmov %vm10208_vm0 }
 0x242   :  { %6513 = vmatmul.mubr.msk.f32.gmra.mrb[22].mxu1 %vm10308_vm11, %v2288_v42  ;;  %vm10322_vm11 = vmmov %vm10208_vm0 }
 0x243   :  { %6517 = vmatprep.mubr.msk.f32.mxu1 %vm10309_vm12, %v9021_v29  ;;  %v2508_v29 = vld [vmem:[#allocation3 + $0x82] sm:$0xff]  ;;  %vm10323_vm12 = vmmov %vm10208_vm0 }
 0x246   :  { %6518 = vmatmul.mubr.msk.f32.vlgmr.msra.gmra.mrb[8].mxu1 %vm10310_vm5, %v9023_v8  ;;  %vm10324_vm5 = vmmov %vm10208_vm0 }
 0x247   :  { %6542 = vmatpush3.msk.msra.mxu1 %vm10296_vm6, %v1390_v1  ;;  %6520 = vmatprep.mubr.msk.f32.mxu1 %vm10311_vm7, %v9033_v52  ;;  %v2516_v1 = vld [vmem:[#allocation3 + $0x122] sm:$0xff]  ;;  %vm10325_vm6 = vmmov %vm10208_vm0 }
 0x248   :  { %6567 = vmatprep.subr.msk.mxu1 %vm10312_vm13, %v1391_v14  ;;  %vm10326_vm7 = vmmov %vm10208_vm0 }
 0x24a   :  { %6521 = vmatmul.mubr.msk.f32.gmra.mrb[10].mxu1 %vm10313_vm8, %v9037_v59  ;;  %vm10327_vm8 = vmmov %vm10208_vm0 }
 0x24b   :  { %6523 = vmatprep.mubr.msk.f32.mxu1 %vm10208_vm0, %v9048_v23  ;;  %vm10328_vm0 = vmmov %vm10312_vm13 }
 0x24e   :  { %6524 = vmatmul.mubr.msk.f32.gmra.mrb[12].mxu1 %vm10314_vm1, %v9052_v41 }
 0x24f   :  { %6526 = vmatprep.mubr.msk.f32.mxu1 %vm10315_vm14, %v9060_v48  ;;  %vm10329_vm14 = vmmov %vm10314_vm1 }
 0x252   :  { %6527 = vmatmul.mubr.msk.f32.gmra.mrb[14].mxu1 %vm10316_vm15, %v2508_v29  ;;  %vm10330_vm15 = vmmov %vm10314_vm1 }
 0x253   :  { %6529 = vmatprep.mubr.msk.f32.mxu1 %vm10317_vm2, %v9069_v49  ;;  %v1392_v49 = vld [vmem:[%s9957_s3 + $0x20] sm:$0xf]  ;;  %vm10331_vm2 = vmmov %vm10314_vm1 }
 0x256   :  { %6530 = vmatmul.mubr.msk.f32.gmra.mrb[16].mxu1 %vm10318_vm3, %v9073_v61  ;;  %vm10332_vm3 = vmmov %vm10314_vm1 }
 0x257   :  { %6532 = vmatprep.mubr.msk.f32.mxu1 %vm10319_vm4, %v9079_v58  ;;  %vm10333_vm4 = vmmov %vm10314_vm1 }
 0x25a   :  { %6533 = vmatmul.mubr.msk.f32.gmra.mrb[18].mxu1 %vm10320_vm9, %v9081_v37  ;;  %vm10334_vm9 = vmmov %vm10314_vm1 }
 0x25b   :  { %6535 = vmatprep.mubr.msk.f32.mxu1 %vm10321_vm10, %v9087_v19  ;;  %vm10335_vm10 = vmmov %vm10314_vm1 }
 0x25e   :  { %6536 = vmatmul.mubr.msk.f32.gmra.mrb[20].mxu1 %vm10322_vm11, %v9089_v43  ;;  %vm10336_vm11 = vmmov %vm10314_vm1 }
 0x25f   :  { %6538 = vmatprep.mubr.msk.f32.mxu1 %vm10323_vm12, %v9095_v0  ;;  %vm10337_vm12 = vmmov %vm10314_vm1 }
 0x262   :  { %6539 = vmatmul.mubr.msk.f32.gmra.mrb[22].mxu1 %vm10324_vm5, %v2516_v1  ;;  %vm10338_vm5 = vmmov %vm10314_vm1 }
 0x263   :  { %6543 = vmatprep.mubr.msk.f32.mxu1 %vm10325_vm6, %v8960_v55  ;;  %v2737_v55 = vld [vmem:[#allocation3 + $0x90] sm:$0xff]  ;;  %vm10339_vm6 = vmmov %vm10314_vm1 }
 0x266   :  { %6544 = vmatmul.mubr.msk.f32.vlgmr.msra.gmra.mrb[8].mxu1 %vm10326_vm7, %v8970_v4  ;;  %v2745_v4 = vld [vmem:[#allocation3 + $0x130] sm:$0xff]  ;;  %vm10340_vm7 = vmmov %vm10314_vm1 }
 0x267   :  { %6568 = vmatpush3.msk.msra.mxu1 %vm10312_vm13, %v1391_v14  ;;  %6546 = vmatprep.mubr.msk.f32.mxu1 %vm10327_vm8, %v8972_v9  ;;  %vm10341_vm13 = vmmov %vm10314_vm1 }
 0x268   :  { %6593 = vmatprep.subr.msk.mxu1 %vm10328_vm0, %v1392_v49  ;;  %vm10342_vm8 = vmmov %vm10314_vm1 }
 0x26a   :  { %6547 = vmatmul.mubr.msk.f32.gmra.mrb[10].mxu1 %vm10314_vm1, %v8979_v50 }
 0x26b   :  { %6549 = vmatprep.mubr.msk.f32.mxu1 %vm10329_vm14, %v8981_v2  ;;  %vm10343_vm14 = vmmov %vm10314_vm1 }
 0x26e   :  { %6550 = vmatmul.mubr.msk.f32.gmra.mrb[12].mxu1 %vm10330_vm15, %v8987_v33  ;;  %vm10344_vm15 = vmmov %vm10314_vm1 }
 0x26f   :  { %6552 = vmatprep.mubr.msk.f32.mxu1 %vm10331_vm2, %v2052_v28  ;;  %vm10345_vm2 = vmmov %vm10314_vm1 }
 0x272   :  { %6553 = vmatmul.mubr.msk.f32.gmra.mrb[14].mxu1 %vm10332_vm3, %v2737_v55  ;;  %vm10346_vm3 = vmmov %vm10314_vm1 }
 0x273   :  { %6555 = vmatprep.mubr.msk.f32.mxu1 %vm10333_vm4, %v8994_v11  ;;  %vm10347_vm4 = vmmov %vm10314_vm1 }
 0x276   :  { %6556 = vmatmul.mubr.msk.f32.gmra.mrb[16].mxu1 %vm10334_vm9, %v9000_v18  ;;  %vm10348_vm9 = vmmov %vm10314_vm1 }
 0x277   :  { %6558 = vmatprep.mubr.msk.f32.mxu1 %vm10335_vm10, %v9002_v30  ;;  %vm10349_vm10 = vmmov %vm10314_vm1 }
 0x27a   :  { %6559 = vmatmul.mubr.msk.f32.gmra.mrb[18].mxu1 %vm10336_vm11, %v9008_v54  ;;  %vm10350_vm11 = vmmov %vm10314_vm1 }
 0x27b   :  { %6561 = vmatprep.mubr.msk.f32.mxu1 %vm10337_vm12, %v9010_v34  ;;  %vm10351_vm12 = vmmov %vm10314_vm1 }
 0x27e   :  { %6562 = vmatmul.mubr.msk.f32.gmra.mrb[20].mxu1 %vm10338_vm5, %v9016_v35  ;;  %vm10352_vm5 = vmmov %vm10314_vm1 }
 0x27f   :  { %6564 = vmatprep.mubr.msk.f32.mxu1 %vm10339_vm6, %v2060_v47  ;;  %vm10353_vm6 = vmmov %vm10314_vm1 }
 0x282   :  { %6565 = vmatmul.mubr.msk.f32.gmra.mrb[22].mxu1 %vm10340_vm7, %v2745_v4  ;;  %vm10354_vm7 = vmmov %vm10314_vm1 }
 0x283   :  { %6569 = vmatprep.mubr.msk.f32.mxu1 %vm10341_vm13, %v8901_v63  ;;  %v2965_v63 = vld [vmem:[#allocation3 + $0x91] sm:$0xff]  ;;  %vm10355_vm13 = vmmov %vm10314_vm1 }
 0x286   :  { %6570 = vmatmul.mubr.msk.f32.vlgmr.msra.gmra.mrb[8].mxu1 %vm10342_vm8, %v8907_v53  ;;  %v2973_v53 = vld [vmem:[#allocation3 + $0x131] sm:$0xff]  ;;  %vm10356_vm8 = vmmov %vm10314_vm1 }
 0x287   :  { %6594 = vmatpush3.msk.msra.mxu1 %vm10328_vm0, %v1392_v49  ;;  %6572 = vmatprep.mubr.msk.f32.mxu1 %vm10314_vm1, %v8909_v56  ;;  %vm10357_vm0 = vmmov %vm10314_vm1  ;;  %v3193_v56 = vld [vmem:[#allocation3 + $0x92] sm:$0xff] }
 0x288   :  { %vm10358_vm1 = vmmov %vm10357_vm0 }
 0x28a   :  { %6573 = vmatmul.mubr.msk.f32.gmra.mrb[10].mxu1 %vm10343_vm14, %v8916_v6  ;;  %vm10359_vm14 = vmmov %vm10357_vm0  ;;  %v3201_v6 = vld [vmem:[#allocation3 + $0x132] sm:$0xff] }
 0x28b   :  { %6575 = vmatprep.mubr.msk.f32.mxu1 %vm10344_vm15, %v8918_v57  ;;  %vm10360_vm15 = vmmov %vm10357_vm0  ;;  %v10372_v57 = vmov 0.0  }
 0x28e   :  { %6576 = vmatmul.mubr.msk.f32.gmra.mrb[12].mxu1 %vm10345_vm2, %v8924_v13  ;;  %vm10361_vm2 = vmmov %vm10357_vm0  ;;  %v227_v13 = vadd.f32 %v8850_v40, %v8848_v39  ;;  %v231_v39 = vadd.f32 %v8716_v21, %v8678_v3  ;;  %v3632_v21 = vld [vmem:[%s9960_s6 + $0x8] sm:$0xff] }
 0x28f   :  { %6578 = vmatprep.mubr.msk.f32.mxu1 %vm10346_vm3, %v2280_v24  ;;  %vm10362_vm3 = vmmov %vm10357_vm0  ;;  %6619 = vmatprep.subr.mxu0 %v3632_v21 }
 0x292   :  { %6579 = vmatmul.mubr.msk.f32.gmra.mrb[14].mxu1 %vm10347_vm4, %v2965_v63  ;;  %vm10363_vm4 = vmmov %vm10357_vm0 }
 0x293   :  { %6581 = vmatprep.mubr.msk.f32.mxu1 %vm10348_vm9, %v8931_v60  ;;  %vm10364_vm9 = vmmov %vm10357_vm0  ;;  %v228_v60 = vadd.f32 %v8706_v10, %v8692_v5  ;;  %v232_v5 = vadd.f32 %v8724_v27, %v8712_v16  ;;  %v247_v10 = vmul.f32 0.25, %v231_v39 }
 0x296   :  { %6582 = vmatmul.mubr.msk.f32.gmra.mrb[16].mxu1 %vm10349_vm10, %v8937_v38  ;;  %vm10365_vm10 = vmmov %vm10357_vm0  ;;  %v243_v38 = vmul.f32 0.25, %v227_v13 }
 0x297   :  { %6584 = vmatprep.mubr.msk.f32.mxu1 %vm10350_vm11, %v8939_v62  ;;  %vm10366_vm11 = vmmov %vm10357_vm0  ;;  %v244_v62 = vmul.f32 0.25, %v228_v60 }
 0x298   :  { %6361 = vmatprep.mubr.msk.f32.mxu0 %vm10357_vm0, %v243_v38 }
 0x29a   :  { %6585 = vmatmul.mubr.msk.f32.gmra.mrb[18].mxu1 %vm10351_vm12, %v8945_v44  ;;  %vm10367_vm12 = vmmov %vm10357_vm0  ;;  %v229_v44 = vadd.f32 %v8710_v15, %v8708_v36  ;;  %v248_v36 = vmul.f32 0.25, %v232_v5  ;;  %v234_v15 = vadd.f32 %v8730_v51, %v8728_v45 }
 0x29b   :  { %6587 = vmatprep.mubr.msk.f32.mxu1 %vm10352_vm5, %v8947_v25  ;;  %vm10368_vm5 = vmmov %vm10357_vm0  ;;  %v230_v25 = vadd.f32 %v8714_v17, %v8676_v46  ;;  %v233_v46 = vadd.f32 %v8726_v31, %v8722_v26  ;;  %v9408_v26 = vld [vmem:[%s9960_s6] sm:$0xff] }
 0x29c   :  { %v250_v45 = vmul.f32 0.25, %v234_v15 }
 0x29d   :  { %v246_v9 = vmul.f32 0.25, %v230_v25  ;;  %v249_v27 = vmul.f32 0.25, %v233_v46 }
 0x29e   :  { %6588 = vmatmul.mubr.msk.f32.gmra.mrb[20].mxu1 %vm10353_vm6, %v8953_v12  ;;  %vm10369_vm6 = vmmov %vm10357_vm0  ;;  %v245_v12 = vmul.f32 0.25, %v229_v44 }
 0x29f   :  { %6590 = vmatprep.mubr.msk.f32.mxu1 %vm10354_vm7, %v2288_v42  ;;  %vm10370_vm7 = vmmov %vm10357_vm0 }
 0x2a2   :  { %6591 = vmatmul.mubr.msk.f32.gmra.mrb[22].mxu1 %vm10355_vm13, %v2973_v53  ;;  %vm10371_vm13 = vmmov %vm10357_vm0 }
 0x2a3   :  { %6595 = vmatprep.mubr.msk.f32.mxu1 %vm10356_vm8, %v9023_v8  ;;  %vm3416_vm8 = vcmask 64512  }
 0x2a4   :  { %3573 = vst.msk [vmem:[#allocation4] sm:$0xff] %vm3416_vm8, %v10372_v57  ;;  %3576 = vst.msk [vmem:[#allocation4 + $0x10] sm:$0xff] %vm3416_vm8, %v10372_v57 }
 0x2a5   :  { %3578 = vst.msk [vmem:[#allocation4 + $0x20] sm:$0xff] %vm3416_vm8, %v10372_v57  ;;  %3580 = vst.msk [vmem:[#allocation4 + $0x30] sm:$0xff] %vm3416_vm8, %v10372_v57 }
 0x2a6   :  { %6596 = vmatmul.mubr.msk.f32.vlgmr.msra.gmra.mrb[8].mxu1 %vm10357_vm0, %v9033_v52  ;;  %3582 = vst.msk [vmem:[#allocation4 + $0x40] sm:$0xff] %vm3416_vm8, %v10372_v57  ;;  %3584 = vst.msk [vmem:[#allocation4 + $0x50] sm:$0xff] %vm3416_vm8, %v10372_v57 }
 0x2a7   :  { %6598 = vmatprep.mubr.msk.f32.mxu1 %vm10358_vm1, %v9037_v59  ;;  %3586 = vst.msk [vmem:[#allocation4 + $0x60] sm:$0xff] %vm3416_vm8, %v10372_v57  ;;  %3588 = vst.msk [vmem:[#allocation4 + $0x70] sm:$0xff] %vm3416_vm8, %v10372_v57 }
 0x2a8   :  { %3590 = vst.msk [vmem:[#allocation4 + $0x80] sm:$0xff] %vm3416_vm8, %v10372_v57  ;;  %3592 = vst.msk [vmem:[#allocation4 + $0x90] sm:$0xff] %vm3416_vm8, %v10372_v57 }
 0x2a9   :  { %3594 = vst.msk [vmem:[#allocation4 + $0xa0] sm:$0xff] %vm3416_vm8, %v10372_v57  ;;  %3596 = vst.msk [vmem:[#allocation4 + $0xb0] sm:$0xff] %vm3416_vm8, %v10372_v57 }
 0x2aa   :  { %6599 = vmatmul.mubr.msk.f32.gmra.mrb[10].mxu1 %vm10359_vm14, %v9048_v23  ;;  %3598 = vst.msk [vmem:[#allocation4 + $0xc0] sm:$0xff] %vm3416_vm8, %v10372_v57  ;;  %3600 = vst.msk [vmem:[#allocation4 + $0xd0] sm:$0xff] %vm3416_vm8, %v10372_v57 }
 0x2ab   :  { %6601 = vmatprep.mubr.msk.f32.mxu1 %vm10360_vm15, %v9052_v41  ;;  %3602 = vst.msk [vmem:[#allocation4 + $0xe0] sm:$0xff] %vm3416_vm8, %v10372_v57  ;;  %3604 = vst.msk [vmem:[#allocation4 + $0xf0] sm:$0xff] %vm3416_vm8, %v10372_v57 }
 0x2ac   :  { %3606 = vst.msk [vmem:[#allocation4 + $0x100] sm:$0xff] %vm3416_vm8, %v10372_v57  ;;  %3608 = vst.msk [vmem:[#allocation4 + $0x110] sm:$0xff] %vm3416_vm8, %v10372_v57 }
 0x2ad   :  { %3610 = vst.msk [vmem:[#allocation4 + $0x120] sm:$0xff] %vm3416_vm8, %v10372_v57  ;;  %3612 = vst.msk [vmem:[#allocation4 + $0x130] sm:$0xff] %vm3416_vm8, %v10372_v57 }
 0x2ae   :  { %6602 = vmatmul.mubr.msk.f32.gmra.mrb[12].mxu1 %vm10361_vm2, %v9060_v48  ;;  %vm10373_vm1 = vmmov %vm10357_vm0  ;;  %vm3574_vm2 = vcmask 58368  }
 0x2af   :  { %6604 = vmatprep.mubr.msk.f32.mxu1 %vm10362_vm3, %v2508_v29  ;;  %6362 = vmatmul.mubr.msk.f32.vlgmr.msra.gmra.mrb[0].mxu0 %vm10373_vm1, %v244_v62  ;;  %vm10374_vm14 = vmmov %vm10357_vm0  ;;  %3597 = vst.msk [vmem:[#allocation4 + $0xb8] sm:$0x3] %vm3574_vm2, %v10372_v57 }
 0x2b0   :  { %6364 = vmatprep.mubr.msk.f32.mxu0 %vm10374_vm14, %v245_v12  ;;  %vm10375_vm15 = vmmov %vm10357_vm0  ;;  %3599 = vst.msk [vmem:[#allocation4 + $0xc8] sm:$0x3] %vm3574_vm2, %v10372_v57  ;;  %6620 = vmatpush3.msra.mxu0 %v3632_v21 }
 0x2b1   :  { %3601 = vst.msk [vmem:[#allocation4 + $0xd8] sm:$0x3] %vm3574_vm2, %v10372_v57  ;;  %3603 = vst.msk [vmem:[#allocation4 + $0xe8] sm:$0x3] %vm3574_vm2, %v10372_v57  ;;  %6645 = vmatprep.subr.mxu0 %v9408_v26 }
 0x2b2   :  { %6605 = vmatmul.mubr.msk.f32.gmra.mrb[14].mxu1 %vm10363_vm4, %v3193_v56  ;;  %3605 = vst.msk [vmem:[#allocation4 + $0xf8] sm:$0x3] %vm3574_vm2, %v10372_v57  ;;  %3607 = vst.msk [vmem:[#allocation4 + $0x108] sm:$0x3] %vm3574_vm2, %v10372_v57 }
 0x2b3   :  { %6607 = vmatprep.mubr.msk.f32.mxu1 %vm10364_vm9, %v9073_v61  ;;  %6365 = vmatmul.mubr.msk.f32.gmra.mrb[2].mxu0 %vm10375_vm15, %v246_v9  ;;  %3609 = vst.msk [vmem:[#allocation4 + $0x118] sm:$0x3] %vm3574_vm2, %v10372_v57  ;;  %3611 = vst.msk [vmem:[#allocation4 + $0x128] sm:$0x3] %vm3574_vm2, %v10372_v57 }
 0x2b4   :  { %3575 = vst.msk [vmem:[#allocation4 + $0x8] sm:$0x3] %vm3574_vm2, %v10372_v57  ;;  %3577 = vst.msk [vmem:[#allocation4 + $0x18] sm:$0x3] %vm3574_vm2, %v10372_v57 }
 0x2b5   :  { %3579 = vst.msk [vmem:[#allocation4 + $0x28] sm:$0x3] %vm3574_vm2, %v10372_v57  ;;  %3581 = vst.msk [vmem:[#allocation4 + $0x38] sm:$0x3] %vm3574_vm2, %v10372_v57 }
 0x2b6   :  { %6608 = vmatmul.mubr.msk.f32.gmra.mrb[16].mxu1 %vm10365_vm10, %v9079_v58  ;;  %3583 = vst.msk [vmem:[#allocation4 + $0x48] sm:$0x3] %vm3574_vm2, %v10372_v57  ;;  %3585 = vst.msk [vmem:[#allocation4 + $0x58] sm:$0x3] %vm3574_vm2, %v10372_v57 }
 0x2b7   :  { %6610 = vmatprep.mubr.msk.f32.mxu1 %vm10366_vm11, %v9081_v37  ;;  %3587 = vst.msk [vmem:[#allocation4 + $0x68] sm:$0x3] %vm3574_vm2, %v10372_v57  ;;  %3589 = vst.msk [vmem:[#allocation4 + $0x78] sm:$0x3] %vm3574_vm2, %v10372_v57  ;;  %vm5705_vm11 = vcmask 523264  }
 0x2b8   :  { %3591 = vst.msk [vmem:[#allocation4 + $0x88] sm:$0x3] %vm3574_vm2, %v10372_v57  ;;  %3593 = vst.msk [vmem:[#allocation4 + $0x98] sm:$0x3] %vm3574_vm2, %v10372_v57 }
 0x2b9   :  { %3595 = vst.msk [vmem:[#allocation4 + $0xa8] sm:$0x3] %vm3574_vm2, %v10372_v57  ;;  %3613 = vst.msk [vmem:[#allocation4 + $0x138] sm:$0x3] %vm3574_vm2, %v10372_v57 }
 0x2ba   :  { %6611 = vmatmul.mubr.msk.f32.gmra.mrb[18].mxu1 %vm10367_vm12, %v9087_v19  ;;  %vm10376_vm3 = vmmov %vm10357_vm0 }
 0x2bb   :  { %6613 = vmatprep.mubr.msk.f32.mxu1 %vm10368_vm5, %v9089_v43  ;;  %6367 = vmatprep.mubr.msk.f32.mxu0 %vm10376_vm3, %v247_v10  ;;  %vm10377_vm4 = vmmov %vm10357_vm0  ;;  %v3656_v33 = vld [vmem:[#allocation4 + $0x1] sm:$0xff] }
 0x2bc   :  { %6368 = vmatmul.mubr.msk.f32.gmra.mrb[4].mxu0 %vm10377_vm4, %v248_v36  ;;  %vm10378_vm9 = vmmov %vm10357_vm0 }
 0x2bd   :  { %6370 = vmatprep.mubr.msk.f32.mxu0 %vm10378_vm9, %v249_v27  ;;  %vm10379_vm10 = vmmov %vm10357_vm0 }
 0x2be   :  { %6614 = vmatmul.mubr.msk.f32.gmra.mrb[20].mxu1 %vm10369_vm6, %v9095_v0 }
 0x2bf   :  { %6616 = vmatprep.mubr.msk.f32.mxu1 %vm10370_vm7, %v2516_v1 }
 0x2c0   :  { %6371 = vmatmul.mubr.msk.f32.gmra.mrb[6].mxu0 %vm10379_vm10, %v250_v45 }
 0x2c1   :  { %6621 = vmatprep.mubr.msk.f32.mxu0 %vm3416_vm8, %v3656_v33 }
 0x2c2   :  { %6617 = vmatmul.mubr.msk.f32.gmra.mrb[22].mxu1 %vm10371_vm13, %v3201_v6 }
 0x379   :  { %v9393_v3 = vpop.f32.mrb[8].mxu1 }
 0x37a   :  { %v3418_v16 = vsel %vm3416_vm8, %v9393_v3, 0.0  ;;  %v9400_v17 = vpop.f32.mrb[9].mxu1 }
 0x37b   :  { %v3417_v31 = vsel %vm3416_vm8, %v9400_v17, 0.0 }
 0x37c   :  { %v3419_v51 = vadd.f32 %v3418_v16, %v3417_v31 }
 0x37d   :  { %v6600_v40 = vpop.f32.mrb[10].mxu1 }
 0x37e   :  { %v3329_v50 = vpop.f32.mrb[11].mxu1  ;;  %v3422_v18 = vsel %vm3416_vm8, %v6600_v40, 0.0 }
 0x37f   :  { %v3420_v2 = vsel %vm3416_vm8, %v3329_v50, 0.0 }
 0x380   :  { %v3421_v11 = vadd.f32 %v3420_v2, %v3419_v51 }
 0x381   :  { %v6603_v30 = vpop.f32.mrb[12].mxu1 }
 0x382   :  { %v3339_v54 = vpop.f32.mrb[13].mxu1  ;;  %v3423_v34 = vadd.f32 %v3422_v18, %v3421_v11  ;;  %v3426_v52 = vsel %vm3416_vm8, %v6603_v30, 0.0 }
 0x383   :  { %v3424_v35 = vsel %vm3416_vm8, %v3339_v54, 0.0 }
 0x384   :  { %v3425_v8 = vadd.f32 %v3424_v35, %v3423_v34 }
 0x385   :  { %v6606_v59 = vpop.f32.mrb[14].mxu1 }
 0x386   :  { %v3349_v23 = vpop.f32.mrb[15].mxu1  ;;  %v3427_v41 = vadd.f32 %v3426_v52, %v3425_v8  ;;  %v3430_v0 = vsel %vm3416_vm8, %v6606_v59, 0.0 }
 0x387   :  { %v3428_v48 = vsel %vm3416_vm8, %v3349_v23, 0.0 }
 0x388   :  { %v3429_v37 = vadd.f32 %v3428_v48, %v3427_v41 }
 0x389   :  { %v6609_v43 = vpop.f32.mrb[16].mxu1 }
 0x38a   :  { %v3359_v61 = vpop.f32.mrb[17].mxu1  ;;  %v3431_v58 = vadd.f32 %v3430_v0, %v3429_v37  ;;  %v3434_v47 = vsel %vm3416_vm8, %v6609_v43, 0.0 }
 0x38b   :  { %v3432_v19 = vsel %vm3416_vm8, %v3359_v61, 0.0 }
 0x38c   :  { %v3433_v28 = vadd.f32 %v3432_v19, %v3431_v58 }
 0x38d   :  { %v6612_v24 = vpop.f32.mrb[18].mxu1 }
 0x38e   :  { %v3369_v42 = vpop.f32.mrb[19].mxu1  ;;  %v3435_v14 = vadd.f32 %v3434_v47, %v3433_v28  ;;  %v3438_v49 = vsel %vm3416_vm8, %v6612_v24, 0.0 }
 0x38f   :  { %v3436_v29 = vsel %vm3416_vm8, %v3369_v42, 0.0 }
 0x390   :  { %v3437_v1 = vadd.f32 %v3436_v29, %v3435_v14 }
 0x391   :  { %v6615_v55 = vpop.f32.mrb[20].mxu1 }
 0x392   :  { %v3379_v4 = vpop.f32.mrb[21].mxu1  ;;  %v3439_v63 = vadd.f32 %v3438_v49, %v3437_v1  ;;  %v3442_v6 = vsel %vm3416_vm8, %v6615_v55, 0.0 }
 0x393   :  { %v3440_v53 = vsel %vm3416_vm8, %v3379_v4, 0.0 }
 0x394   :  { %v3441_v56 = vadd.f32 %v3440_v53, %v3439_v63 }
 0x395   :  { %v6618_v57 = vpop.f32.mrb[22].mxu1 }
 0x396   :  { %v3389_v13 = vpop.f32.mrb[23].mxu1  ;;  %v3443_v60 = vadd.f32 %v3442_v6, %v3441_v56  ;;  %v3446_v44 = vsel %vm3416_vm8, %v6618_v57, 0.0 }
 0x397   :  { %v3444_v38 = vsel %vm3416_vm8, %v3389_v13, 0.0 }
 0x398   :  { %v3445_v62 = vadd.f32 %v3444_v38, %v3443_v60 }
 0x39a   :  { %v3447_v25 = vadd.f32 %v3446_v44, %v3445_v62 }
 0x39c   :  { %v3448_v12 = vrot.slane %v3447_v25, 4 }
 0x39e   :  { %v3449_v9 = vadd.f32 %v3448_v12, %v3447_v25 }
 0x3a0   :  { %v3450_v39 = vrot.slane %v3449_v9, 2 }
 0x3a2   :  { %v3451_v5 = vadd.f32 %v3450_v39, %v3449_v9 }
 0x3a4   :  { %v3452_v10 = vrot.slane %v3451_v5, 1 }
 0x3a6   :  { %v3453_v36 = vadd.f32 %v3452_v10, %v3451_v5 }
 0x3a8   :  { %v3455_v46 = vmul.f32 0.0078125, %v3453_v36 }
 0x3aa   :  { %v9431_v15 = vsub.f32 %v9400_v17, %v3455_v46  ;;  %v9434_v16 = vsub.f32 %v9393_v3, %v3455_v46  ;;  %v9436_v21 = vsub.f32 %v3329_v50, %v3455_v46  ;;  %v9438_v27 = vsub.f32 %v6600_v40, %v3455_v46 }
 0x3ab   :  { %v9440_v31 = vsub.f32 %v3339_v54, %v3455_v46  ;;  %v9442_v45 = vsub.f32 %v6603_v30, %v3455_v46  ;;  %v9444_v51 = vsub.f32 %v3349_v23, %v3455_v46  ;;  %v9446_v2 = vsub.f32 %v6606_v59, %v3455_v46 }
 0x3ac   :  { %v9448_v33 = vsub.f32 %v3359_v61, %v3455_v46  ;;  %v9450_v11 = vsub.f32 %v6609_v43, %v3455_v46  ;;  %v9452_v17 = vsub.f32 %v3369_v42, %v3455_v46  ;;  %v9454_v3 = vsub.f32 %v6612_v24, %v3455_v46 }
 0x3ad   :  { %v9456_v50 = vsub.f32 %v3379_v4, %v3455_v46  ;;  %v9458_v40 = vsub.f32 %v6615_v55, %v3455_v46  ;;  %v9460_v18 = vsub.f32 %v3389_v13, %v3455_v46  ;;  %v9462_v30 = vsub.f32 %v6618_v57, %v3455_v46 }
 0x3ae   :  { %v3472_v54 = vmul.f32 %v9431_v15, %v9431_v15  ;;  %v3473_v34 = vmul.f32 %v9434_v16, %v9434_v16  ;;  %v3474_v35 = vmul.f32 %v9436_v21, %v9436_v21  ;;  %v3475_v8 = vmul.f32 %v9438_v27, %v9438_v27 }
 0x3af   :  { %v3476_v41 = vmul.f32 %v9440_v31, %v9440_v31  ;;  %v3477_v0 = vmul.f32 %v9442_v45, %v9442_v45  ;;  %v3478_v58 = vmul.f32 %v9444_v51, %v9444_v51  ;;  %v3479_v47 = vmul.f32 %v9446_v2, %v9446_v2 }
 0x3b0   :  { %v3488_v52 = vsel %vm3416_vm8, %v3472_v54, 0.0  ;;  %v3489_v59 = vsel %vm3416_vm8, %v3473_v34, 0.0  ;;  %v3491_v48 = vsel %vm3416_vm8, %v3474_v35, 0.0  ;;  %v3493_v43 = vsel %vm3416_vm8, %v3475_v8, 0.0 }
 0x3b1   :  { %v3490_v23 = vadd.f32 %v3489_v59, %v3488_v52  ;;  %v3495_v19 = vsel %vm3416_vm8, %v3476_v41, 0.0  ;;  %v3497_v24 = vsel %vm3416_vm8, %v3477_v0, 0.0  ;;  %v3480_v14 = vmul.f32 %v9448_v33, %v9448_v33 }
 0x3b2   :  { %v3499_v29 = vsel %vm3416_vm8, %v3478_v58, 0.0  ;;  %v3481_v49 = vmul.f32 %v9450_v11, %v9450_v11  ;;  %v3501_v55 = vsel %vm3416_vm8, %v3479_v47, 0.0  ;;  %v3482_v63 = vmul.f32 %v9452_v17, %v9452_v17 }
 0x3b3   :  { %v3492_v37 = vadd.f32 %v3491_v48, %v3490_v23  ;;  %v3503_v53 = vsel %vm3416_vm8, %v3480_v14, 0.0  ;;  %v3483_v6 = vmul.f32 %v9454_v3, %v9454_v3  ;;  %v3484_v60 = vmul.f32 %v9456_v50, %v9456_v50 }
 0x3b4   :  { %v3505_v57 = vsel %vm3416_vm8, %v3481_v49, 0.0  ;;  %v3507_v38 = vsel %vm3416_vm8, %v3482_v63, 0.0  ;;  %v3485_v44 = vmul.f32 %v9458_v40, %v9458_v40  ;;  %v3486_v9 = vmul.f32 %v9460_v18, %v9460_v18  ;;  %v5889_v49 = vld [vmem:[%s9962_s5] ss:$0 sm:$0xff] }
 0x3b5   :  { %v3494_v61 = vadd.f32 %v3493_v43, %v3492_v37  ;;  %v3509_v25 = vsel %vm3416_vm8, %v3483_v6, 0.0  ;;  %v3511_v39 = vsel %vm3416_vm8, %v3484_v60, 0.0  ;;  %v3487_v10 = vmul.f32 %v9462_v30, %v9462_v30 }
 0x3b6   :  { %v3513_v36 = vsel %vm3416_vm8, %v3485_v44, 0.0  ;;  %v3515_v54 = vsel %vm3416_vm8, %v3486_v9, 0.0  ;;  %v3633_v9 = vld [vmem:[%s9960_s6 + $0x10] sm:$0xff] }
 0x3b7   :  { %v3496_v28 = vadd.f32 %v3495_v19, %v3494_v61  ;;  %v3517_v35 = vsel %vm3416_vm8, %v3487_v10, 0.0  ;;  %v3414_v61 = vld [vmem:[%s9961_s4] sm:$0x1] }
 0x3b9   :  { %v3498_v42 = vadd.f32 %v3497_v24, %v3496_v28  ;;  %v10380_v28 = vld [vmem:[#allocation42_spill] sm:$0xff] }
 0x3ba   :  { %v10381_v47 = vsub.s32 0, %v10380_v28  ;;  %v3648_v28 = vld [vmem:[#allocation4 + $0xa0] sm:$0xff] }
 0x3bb   :  { %v3500_v1 = vadd.f32 %v3499_v29, %v3498_v42 }
 0x3bd   :  { %v3502_v4 = vadd.f32 %v3501_v55, %v3500_v1 }
 0x3bf   :  { %v3504_v56 = vadd.f32 %v3503_v53, %v3502_v4 }
 0x3c1   :  { %v3506_v13 = vadd.f32 %v3505_v57, %v3504_v56 }
 0x3c3   :  { %v3508_v62 = vadd.f32 %v3507_v38, %v3506_v13 }
 0x3c5   :  { %v3510_v12 = vadd.f32 %v3509_v25, %v3508_v62 }
 0x3c7   :  { %v3512_v5 = vadd.f32 %v3511_v39, %v3510_v12 }
 0x3c9   :  { %v3514_v46 = vadd.f32 %v3513_v36, %v3512_v5  ;;  %v3664_v36 = vld [vmem:[#allocation4 + $0xa1] sm:$0xff] }
 0x3cb   :  { %v3516_v34 = vadd.f32 %v3515_v54, %v3514_v46 }
 0x3cd   :  { %v3518_v8 = vadd.f32 %v3517_v35, %v3516_v34 }
 0x3cf   :  { %v3519_v52 = vrot.slane %v3518_v8, 4 }
 0x3d1   :  { %v3520_v59 = vadd.f32 %v3519_v52, %v3518_v8 }
 0x3d3   :  { %v3521_v23 = vrot.slane %v3520_v59, 2 }
 0x3d5   :  { %v3522_v41 = vadd.f32 %v3521_v23, %v3520_v59  ;;  %v3640_v23 = vld [vmem:[#allocation4] sm:$0xff] }
 0x3d7   :  { %v3523_v48 = vrot.slane %v3522_v41, 1 }
 0x3d9   :  { %v3524_v37 = vadd.f32 %v3523_v48, %v3522_v41 }
 0x3db   :  { %v3525_v0 = vmul.f32 0.0078125, %v3524_v37  ;;  %v3634_v37 = vld [vmem:[%s9960_s6 + $0x18] sm:$0xff] }
 0x3dd   :  { %v3526_v43 = vadd.f32 1e-05, %v3525_v0 }
 0x3df   :  { %7163 = vrsqrt.f32 %v3526_v43 }
 0x3e9   :  { %v7164_v58 = vpop.eup %7163 }
 0x3ea   :  { %v3528_v19 = vmul.f32 %v7164_v58, %v3414_v61 }
 0x3ec   :  { %v3533_v24 = vrot.slane %v3528_v19, %v10381_v47 }
 0x3ee   :  { %v3535_v42 = vmul.f32 %v3533_v24, %v9431_v15  ;;  %v3536_v14 = vmul.f32 %v3533_v24, %v9434_v16  ;;  %v3537_v29 = vmul.f32 %v3533_v24, %v9436_v21  ;;  %v3538_v1 = vmul.f32 %v3533_v24, %v9438_v27 }
 0x3ef   :  { %v3539_v55 = vmul.f32 %v3533_v24, %v9440_v31  ;;  %v3540_v4 = vmul.f32 %v3533_v24, %v9442_v45  ;;  %v3541_v63 = vmul.f32 %v3533_v24, %v9444_v51  ;;  %v3542_v53 = vmul.f32 %v3533_v24, %v9446_v2 }
 0x3f0   :  { %v3543_v15 = vmul.f32 %v3533_v24, %v9448_v33  ;;  %v3544_v16 = vmul.f32 %v3533_v24, %v9450_v11  ;;  %v3545_v21 = vmul.f32 %v3533_v24, %v9452_v17  ;;  %v3546_v27 = vmul.f32 %v3533_v24, %v9454_v3 }
 0x3f1   :  { %v3547_v56 = vmul.f32 %v3533_v24, %v9456_v50  ;;  %v3548_v6 = vmul.f32 %v3533_v24, %v9458_v40  ;;  %v3549_v31 = vmul.f32 %v3533_v24, %v9460_v18  ;;  %v3550_v45 = vmul.f32 %v3533_v24, %v9462_v30 }
 0x3f2   :  { %v3557_v57 = vadd.f32 %v5889_v49, %v3535_v42  ;;  %v3558_v51 = vadd.f32 %v5889_v49, %v3536_v14  ;;  %v3559_v13 = vadd.f32 %v5889_v49, %v3537_v29  ;;  %v3560_v2 = vadd.f32 %v5889_v49, %v3538_v1 }
 0x3f3   :  { %v3561_v60 = vadd.f32 %v5889_v49, %v3539_v55  ;;  %v3562_v33 = vadd.f32 %v5889_v49, %v3540_v4  ;;  %v3563_v38 = vadd.f32 %v5889_v49, %v3541_v63  ;;  %v3564_v11 = vadd.f32 %v5889_v49, %v3542_v53  ;;  %v4058_v55 = vld [vmem:[#allocation4 + $0x2] sm:$0xff] }
 0x3f4   :  { %v3565_v62 = vadd.f32 %v5889_v49, %v3543_v15  ;;  %v3566_v17 = vadd.f32 %v5889_v49, %v3544_v16  ;;  %v3567_v44 = vadd.f32 %v5889_v49, %v3545_v21  ;;  %v3568_v3 = vadd.f32 %v5889_v49, %v3546_v27  ;;  %3615 = vst.msk [vmem:[#allocation4 + $0x11] sm:$0xff] %vm3416_vm8, %v3557_v57  ;;  %v3635_v53 = vld [vmem:[%s9960_s6 + $0x20] sm:$0xff] }
 0x3f5   :  { %3616 = vst.msk [vmem:[#allocation4 + $0x21] sm:$0xff] %vm3416_vm8, %v3558_v51  ;;  %3617 = vst.msk [vmem:[#allocation4 + $0x31] sm:$0xff] %vm3416_vm8, %v3559_v13  ;;  %v3569_v50 = vadd.f32 %v5889_v49, %v3547_v56  ;;  %v3570_v40 = vadd.f32 %v5889_v49, %v3548_v6  ;;  %v3571_v18 = vadd.f32 %v5889_v49, %v3549_v31  ;;  %v4066_v6 = vld [vmem:[#allocation4 + $0xa2] sm:$0xff] }
 0x3f6   :  { %3618 = vst.msk [vmem:[#allocation4 + $0x41] sm:$0xff] %vm3416_vm8, %v3560_v2  ;;  %v3572_v30 = vadd.f32 %v5889_v49, %v3550_v45  ;;  %3619 = vst.msk [vmem:[#allocation4 + $0x51] sm:$0xff] %vm3416_vm8, %v3561_v60 }
 0x3f7   :  { %3620 = vst.msk [vmem:[#allocation4 + $0x61] sm:$0xff] %vm3416_vm8, %v3562_v33  ;;  %3621 = vst.msk [vmem:[#allocation4 + $0x71] sm:$0xff] %vm3416_vm8, %v3563_v38  ;;  %v3636_v38 = vld [vmem:[%s9960_s6 + $0x28] sm:$0xff] }
 0x3f8   :  { %3622 = vst.msk [vmem:[#allocation4 + $0x81] sm:$0xff] %vm3416_vm8, %v3564_v11  ;;  %3623 = vst.msk [vmem:[#allocation4 + $0xb1] sm:$0xff] %vm3416_vm8, %v3565_v62 }
 0x3f9   :  { %3624 = vst.msk [vmem:[#allocation4 + $0xc1] sm:$0xff] %vm3416_vm8, %v3566_v17  ;;  %3625 = vst.msk [vmem:[#allocation4 + $0xd1] sm:$0xff] %vm3416_vm8, %v3567_v44  ;;  %v3637_v17 = vld [vmem:[%s9960_s6 + $0x30] sm:$0xff] }
 0x3fa   :  { %3626 = vst.msk [vmem:[#allocation4 + $0xe1] sm:$0xff] %vm3416_vm8, %v3568_v3  ;;  %3627 = vst.msk [vmem:[#allocation4 + $0xf1] sm:$0xff] %vm3416_vm8, %v3569_v50  ;;  %v3638_v50 = vld [vmem:[%s9960_s6 + $0x38] sm:$0xff] }
 0x3fb   :  { %3628 = vst.msk [vmem:[#allocation4 + $0x101] sm:$0xff] %vm3416_vm8, %v3570_v40  ;;  %3629 = vst.msk [vmem:[#allocation4 + $0x111] sm:$0xff] %vm3416_vm8, %v3571_v18  ;;  %v9552_v25 = vld [vmem:[#allocation4 + $0x11] sm:$0xff] }
 0x3fc   :  { %3630 = vst.msk [vmem:[#allocation4 + $0x121] sm:$0xff] %vm3416_vm8, %v3572_v30  ;;  %v9554_v12 = vld [vmem:[#allocation4 + $0x21] sm:$0xff]  ;;  %6622 = vmatmul.mubr.msk.f32.vlgmr.msra.gmra.mrb[0].mxu0 %vm3416_vm8, %v9552_v25  ;;  %v9564_v39 = vld [vmem:[#allocation4 + $0x31] sm:$0xff] }
 0x3fd   :  { %6646 = vmatpush3.msra.mxu0 %v9408_v26  ;;  %6624 = vmatprep.mubr.msk.f32.mxu0 %vm3416_vm8, %v9554_v12  ;;  %v9568_v5 = vld [vmem:[#allocation4 + $0x41] sm:$0xff]  ;;  %v9572_v10 = vld [vmem:[#allocation4 + $0x51] sm:$0xff] }
 0x3fe   :  { %6671 = vmatprep.subr.mxu0 %v3633_v9  ;;  %v9576_v26 = vld [vmem:[#allocation4 + $0x61] sm:$0xff]  ;;  %v9580_v46 = vld [vmem:[#allocation4 + $0x71] sm:$0xff] }
 0x3ff   :  { %v9585_v54 = vld [vmem:[#allocation4 + $0xb1] sm:$0xff]  ;;  %v9621_v0 = vld [vmem:[#allocation4 + $0x20] sm:$0xff] }
 0x400   :  { %6625 = vmatmul.mubr.msk.f32.gmra.mrb[2].mxu0 %vm3416_vm8, %v9564_v39  ;;  %v9589_v34 = vld [vmem:[#allocation4 + $0xc1] sm:$0xff]  ;;  %v9593_v35 = vld [vmem:[#allocation4 + $0xd1] sm:$0xff] }
 0x401   :  { %6627 = vmatprep.mubr.msk.f32.mxu0 %vm3416_vm8, %v9568_v5  ;;  %v9597_v8 = vld [vmem:[#allocation4 + $0xe1] sm:$0xff]  ;;  %v9601_v52 = vld [vmem:[#allocation4 + $0xf1] sm:$0xff] }
 0x402   :  { %v9605_v59 = vld [vmem:[#allocation4 + $0x101] sm:$0xff]  ;;  %v9609_v41 = vld [vmem:[#allocation4 + $0x111] sm:$0xff] }
 0x403   :  { %v9614_v48 = vld [vmem:[#allocation4 + $0x10] sm:$0xff]  ;;  %v9629_v61 = vld [vmem:[#allocation4 + $0x40] sm:$0xff] }
 0x404   :  { %6628 = vmatmul.mubr.msk.f32.gmra.mrb[4].mxu0 %vm3416_vm8, %v9572_v10  ;;  %v9625_v43 = vld [vmem:[#allocation4 + $0x30] sm:$0xff]  ;;  %v9637_v19 = vld [vmem:[#allocation4 + $0x60] sm:$0xff] }
 0x405   :  { %6630 = vmatprep.mubr.msk.f32.mxu0 %vm3416_vm8, %v9576_v26  ;;  %v9633_v58 = vld [vmem:[#allocation4 + $0x50] sm:$0xff]  ;;  %v9647_v42 = vld [vmem:[#allocation4 + $0xc0] sm:$0xff] }
 0x406   :  { %v9641_v47 = vld [vmem:[#allocation4 + $0x70] sm:$0xff]  ;;  %v9655_v29 = vld [vmem:[#allocation4 + $0xe0] sm:$0xff] }
 0x407   :  { %v3649_v24 = vld [vmem:[#allocation4 + $0xb0] sm:$0xff]  ;;  %v9663_v49 = vld [vmem:[#allocation4 + $0x100] sm:$0xff] }
 0x408   :  { %6631 = vmatmul.mubr.msk.f32.gmra.mrb[6].mxu0 %vm3416_vm8, %v9580_v46  ;;  %v9651_v14 = vld [vmem:[#allocation4 + $0xd0] sm:$0xff]  ;;  %v9679_v15 = vld [vmem:[#allocation4 + $0x22] sm:$0xff] }
 0x409   :  { %6633 = vmatprep.mubr.msk.f32.mxu0 %vm3416_vm8, %v3664_v36  ;;  %v9659_v1 = vld [vmem:[#allocation4 + $0xf0] sm:$0xff]  ;;  %v9687_v21 = vld [vmem:[#allocation4 + $0x42] sm:$0xff] }
 0x40a   :  { %v9667_v4 = vld [vmem:[#allocation4 + $0x110] sm:$0xff]  ;;  %v9695_v56 = vld [vmem:[#allocation4 + $0x62] sm:$0xff] }
 0x40b   :  { %v9672_v63 = vld [vmem:[#allocation4 + $0x12] sm:$0xff]  ;;  %v9708_v57 = vld [vmem:[#allocation4 + $0xc2] sm:$0xff] }
 0x40c   :  { %6634 = vmatmul.mubr.msk.f32.gmra.mrb[8].mxu0 %vm3416_vm8, %v9585_v54  ;;  %v9683_v16 = vld [vmem:[#allocation4 + $0x32] sm:$0xff]  ;;  %v9716_v13 = vld [vmem:[#allocation4 + $0xe2] sm:$0xff] }
 0x40d   :  { %6636 = vmatprep.mubr.msk.f32.mxu0 %vm3416_vm8, %v9589_v34  ;;  %v9691_v27 = vld [vmem:[#allocation4 + $0x52] sm:$0xff]  ;;  %v9724_v60 = vld [vmem:[#allocation4 + $0x102] sm:$0xff] }
 0x40e   :  { %v9699_v31 = vld [vmem:[#allocation4 + $0x72] sm:$0xff]  ;;  %v4290_v11 = vld [vmem:[#allocation4 + $0x80] sm:$0xff] }
 0x40f   :  { %v9704_v45 = vld [vmem:[#allocation4 + $0xb2] sm:$0xff]  ;;  %v4298_v62 = vld [vmem:[#allocation4 + $0x120] sm:$0xff] }
 0x410   :  { %6637 = vmatmul.mubr.msk.f32.gmra.mrb[10].mxu0 %vm3416_vm8, %v9593_v35  ;;  %v9712_v51 = vld [vmem:[#allocation4 + $0xd2] sm:$0xff]  ;;  %v4515_v44 = vld [vmem:[#allocation4 + $0x81] sm:$0xff] }
 0x411   :  { %6639 = vmatprep.mubr.msk.f32.mxu0 %vm3416_vm8, %v9597_v8  ;;  %v9720_v2 = vld [vmem:[#allocation4 + $0xf2] sm:$0xff]  ;;  %v4523_v3 = vld [vmem:[#allocation4 + $0x121] sm:$0xff] }
 0x412   :  { %v9728_v33 = vld [vmem:[#allocation4 + $0x112] sm:$0xff]  ;;  %v4740_v40 = vld [vmem:[#allocation4 + $0x82] sm:$0xff] }
 0x413   :  { %v4748_v18 = vld [vmem:[#allocation4 + $0x122] sm:$0xff]  ;;  %v5191_v36 = vld [vmem:[#allocation4 + $0x91] sm:$0xff] }
 0x414   :  { %6640 = vmatmul.mubr.msk.f32.gmra.mrb[12].mxu0 %vm3416_vm8, %v9601_v52  ;;  %v3639_v30 = vld [vmem:[%s9960_s6 + $0x40] sm:$0xff] }
 0x415   :  { %6642 = vmatprep.mubr.msk.f32.mxu0 %vm3416_vm8, %v9605_v59 }
 0x418   :  { %6643 = vmatmul.mubr.msk.f32.gmra.mrb[14].mxu0 %vm3416_vm8, %v9609_v41 }
 0x419   :  { %6647 = vmatprep.mubr.msk.f32.mxu0 %vm3416_vm8, %v3640_v23 }
 0x41c   :  { %6648 = vmatmul.mubr.msk.f32.vlgmr.msra.gmra.mrb[0].mxu0 %vm3416_vm8, %v9614_v48 }
 0x41d   :  { %6672 = vmatpush3.msra.mxu0 %v3633_v9  ;;  %6650 = vmatprep.mubr.msk.f32.mxu0 %vm3416_vm8, %v9621_v0  ;;  %v4974_v9 = vld [vmem:[#allocation4 + $0x130] sm:$0xff] }
 0x41e   :  { %6697 = vmatprep.subr.mxu0 %v3634_v37 }
 0x420   :  { %6651 = vmatmul.mubr.msk.f32.gmra.mrb[2].mxu0 %vm3416_vm8, %v9625_v43 }
 0x421   :  { %6653 = vmatprep.mubr.msk.f32.mxu0 %vm3416_vm8, %v9629_v61 }
 0x424   :  { %6654 = vmatmul.mubr.msk.f32.gmra.mrb[4].mxu0 %vm3416_vm8, %v9633_v58 }
 0x425   :  { %6656 = vmatprep.mubr.msk.f32.mxu0 %vm3416_vm8, %v9637_v19 }
 0x428   :  { %6657 = vmatmul.mubr.msk.f32.gmra.mrb[6].mxu0 %vm3416_vm8, %v9641_v47 }
 0x429   :  { %6659 = vmatprep.mubr.msk.f32.mxu0 %vm3416_vm8, %v3648_v28 }
 0x42c   :  { %6660 = vmatmul.mubr.msk.f32.gmra.mrb[8].mxu0 %vm3416_vm8, %v3649_v24 }
 0x42d   :  { %6662 = vmatprep.mubr.msk.f32.mxu0 %vm3416_vm8, %v9647_v42 }
 0x430   :  { %6663 = vmatmul.mubr.msk.f32.gmra.mrb[10].mxu0 %vm3416_vm8, %v9651_v14 }
 0x431   :  { %6665 = vmatprep.mubr.msk.f32.mxu0 %vm3416_vm8, %v9655_v29 }
 0x434   :  { %6666 = vmatmul.mubr.msk.f32.gmra.mrb[12].mxu0 %vm3416_vm8, %v9659_v1 }
 0x435   :  { %6668 = vmatprep.mubr.msk.f32.mxu0 %vm3416_vm8, %v9663_v49 }
 0x438   :  { %6669 = vmatmul.mubr.msk.f32.gmra.mrb[14].mxu0 %vm3416_vm8, %v9667_v4 }
 0x439   :  { %6673 = vmatprep.mubr.msk.f32.mxu0 %vm3416_vm8, %v4058_v55 }
 0x43c   :  { %6674 = vmatmul.mubr.msk.f32.vlgmr.msra.gmra.mrb[0].mxu0 %vm3416_vm8, %v9672_v63 }
 0x43d   :  { %6698 = vmatpush3.msra.mxu0 %v3634_v37  ;;  %6676 = vmatprep.mubr.msk.f32.mxu0 %vm3416_vm8, %v9679_v15 }
 0x43e   :  { %6723 = vmatprep.subr.mxu0 %v3635_v53 }
 0x440   :  { %6677 = vmatmul.mubr.msk.f32.gmra.mrb[2].mxu0 %vm3416_vm8, %v9683_v16 }
 0x441   :  { %6679 = vmatprep.mubr.msk.f32.mxu0 %vm3416_vm8, %v9687_v21 }
 0x444   :  { %6680 = vmatmul.mubr.msk.f32.gmra.mrb[4].mxu0 %vm3416_vm8, %v9691_v27 }
 0x445   :  { %6682 = vmatprep.mubr.msk.f32.mxu0 %vm3416_vm8, %v9695_v56 }
 0x448   :  { %6683 = vmatmul.mubr.msk.f32.gmra.mrb[6].mxu0 %vm3416_vm8, %v9699_v31 }
 0x449   :  { %6685 = vmatprep.mubr.msk.f32.mxu0 %vm3416_vm8, %v4066_v6 }
 0x44c   :  { %6686 = vmatmul.mubr.msk.f32.gmra.mrb[8].mxu0 %vm3416_vm8, %v9704_v45 }
 0x44d   :  { %6688 = vmatprep.mubr.msk.f32.mxu0 %vm3416_vm8, %v9708_v57 }
 0x450   :  { %6689 = vmatmul.mubr.msk.f32.gmra.mrb[10].mxu0 %vm3416_vm8, %v9712_v51 }
 0x451   :  { %6691 = vmatprep.mubr.msk.f32.mxu0 %vm3416_vm8, %v9716_v13 }
 0x454   :  { %6692 = vmatmul.mubr.msk.f32.gmra.mrb[12].mxu0 %vm3416_vm8, %v9720_v2 }
 0x455   :  { %6694 = vmatprep.mubr.msk.f32.mxu0 %vm3416_vm8, %v9724_v60 }
 0x458   :  { %6695 = vmatmul.mubr.msk.f32.gmra.mrb[14].mxu0 %vm3416_vm8, %v9728_v33 }
 0x459   :  { %6699 = vmatprep.mubr.msk.f32.mxu0 %vm3416_vm8, %v9614_v48 }
 0x45c   :  { %6700 = vmatmul.mubr.msk.f32.vlgmr.msra.gmra.mrb[0].mxu0 %vm3416_vm8, %v9621_v0 }
 0x45d   :  { %6724 = vmatpush3.msra.mxu0 %v3635_v53  ;;  %6702 = vmatprep.mubr.msk.f32.mxu0 %vm3416_vm8, %v9625_v43 }
 0x45e   :  { %6749 = vmatprep.subr.mxu0 %v3636_v38 }
 0x460   :  { %6703 = vmatmul.mubr.msk.f32.gmra.mrb[2].mxu0 %vm3416_vm8, %v9629_v61 }
 0x461   :  { %6705 = vmatprep.mubr.msk.f32.mxu0 %vm3416_vm8, %v9633_v58 }
 0x464   :  { %6706 = vmatmul.mubr.msk.f32.gmra.mrb[4].mxu0 %vm3416_vm8, %v9637_v19 }
 0x465   :  { %6708 = vmatprep.mubr.msk.f32.mxu0 %vm3416_vm8, %v9641_v47 }
 0x468   :  { %6709 = vmatmul.mubr.msk.f32.gmra.mrb[6].mxu0 %vm3416_vm8, %v4290_v11 }
 0x469   :  { %6711 = vmatprep.mubr.msk.f32.mxu0 %vm3416_vm8, %v3649_v24 }
 0x46c   :  { %6712 = vmatmul.mubr.msk.f32.gmra.mrb[8].mxu0 %vm3416_vm8, %v9647_v42 }
 0x46d   :  { %6714 = vmatprep.mubr.msk.f32.mxu0 %vm3416_vm8, %v9651_v14 }
 0x470   :  { %6715 = vmatmul.mubr.msk.f32.gmra.mrb[10].mxu0 %vm3416_vm8, %v9655_v29 }
 0x471   :  { %6717 = vmatprep.mubr.msk.f32.mxu0 %vm3416_vm8, %v9659_v1 }
 0x474   :  { %6718 = vmatmul.mubr.msk.f32.gmra.mrb[12].mxu0 %vm3416_vm8, %v9663_v49 }
 0x475   :  { %6720 = vmatprep.mubr.msk.f32.mxu0 %vm3416_vm8, %v9667_v4 }
 0x478   :  { %6721 = vmatmul.mubr.msk.f32.gmra.mrb[14].mxu0 %vm3416_vm8, %v4298_v62 }
 0x479   :  { %6725 = vmatprep.mubr.msk.f32.mxu0 %vm3416_vm8, %v9552_v25  ;;  %v4966_v25 = vld [vmem:[#allocation4 + $0x90] sm:$0xff] }
 0x47c   :  { %6726 = vmatmul.mubr.msk.f32.vlgmr.msra.gmra.mrb[0].mxu0 %vm3416_vm8, %v9554_v12 }
 0x47d   :  { %6750 = vmatpush3.msra.mxu0 %v3636_v38  ;;  %6728 = vmatprep.mubr.msk.f32.mxu0 %vm3416_vm8, %v9564_v39 }
 0x47e   :  { %6775 = vmatprep.subr.mxu0 %v3637_v17 }
 0x480   :  { %6729 = vmatmul.mubr.msk.f32.gmra.mrb[2].mxu0 %vm3416_vm8, %v9568_v5 }
 0x481   :  { %6731 = vmatprep.mubr.msk.f32.mxu0 %vm3416_vm8, %v9572_v10 }
 0x484   :  { %6732 = vmatmul.mubr.msk.f32.gmra.mrb[4].mxu0 %vm3416_vm8, %v9576_v26 }
 0x485   :  { %6734 = vmatprep.mubr.msk.f32.mxu0 %vm3416_vm8, %v9580_v46 }
 0x488   :  { %6735 = vmatmul.mubr.msk.f32.gmra.mrb[6].mxu0 %vm3416_vm8, %v4515_v44 }
 0x489   :  { %6737 = vmatprep.mubr.msk.f32.mxu0 %vm3416_vm8, %v9585_v54  ;;  %v9923_v54 = vld [vmem:[%s9964_s7] ss:$0 sm:$0xff] }
 0x48c   :  { %6738 = vmatmul.mubr.msk.f32.gmra.mrb[8].mxu0 %vm3416_vm8, %v9589_v34 }
 0x48d   :  { %6740 = vmatprep.mubr.msk.f32.mxu0 %vm3416_vm8, %v9593_v35 }
 0x490   :  { %6741 = vmatmul.mubr.msk.f32.gmra.mrb[10].mxu0 %vm3416_vm8, %v9597_v8 }
 0x491   :  { %6743 = vmatprep.mubr.msk.f32.mxu0 %vm3416_vm8, %v9601_v52 }
 0x494   :  { %6744 = vmatmul.mubr.msk.f32.gmra.mrb[12].mxu0 %vm3416_vm8, %v9605_v59 }
 0x495   :  { %6746 = vmatprep.mubr.msk.f32.mxu0 %vm3416_vm8, %v9609_v41 }
 0x498   :  { %6747 = vmatmul.mubr.msk.f32.gmra.mrb[14].mxu0 %vm3416_vm8, %v4523_v3 }
 0x499   :  { %6751 = vmatprep.mubr.msk.f32.mxu0 %vm3416_vm8, %v9672_v63 }
 0x49c   :  { %6752 = vmatmul.mubr.msk.f32.vlgmr.msra.gmra.mrb[0].mxu0 %vm3416_vm8, %v9679_v15 }
 0x49d   :  { %6776 = vmatpush3.msra.mxu0 %v3637_v17  ;;  %6754 = vmatprep.mubr.msk.f32.mxu0 %vm3416_vm8, %v9683_v16 }
 0x49e   :  { %6801 = vmatprep.subr.mxu0 %v3638_v50 }
 0x4a0   :  { %6755 = vmatmul.mubr.msk.f32.gmra.mrb[2].mxu0 %vm3416_vm8, %v9687_v21 }
 0x4a1   :  { %6757 = vmatprep.mubr.msk.f32.mxu0 %vm3416_vm8, %v9691_v27 }
 0x4a4   :  { %6758 = vmatmul.mubr.msk.f32.gmra.mrb[4].mxu0 %vm3416_vm8, %v9695_v56 }
 0x4a5   :  { %6760 = vmatprep.mubr.msk.f32.mxu0 %vm3416_vm8, %v9699_v31 }
 0x4a8   :  { %6761 = vmatmul.mubr.msk.f32.gmra.mrb[6].mxu0 %vm3416_vm8, %v4740_v40 }
 0x4a9   :  { %6763 = vmatprep.mubr.msk.f32.mxu0 %vm3416_vm8, %v9704_v45 }
 0x4ac   :  { %6764 = vmatmul.mubr.msk.f32.gmra.mrb[8].mxu0 %vm3416_vm8, %v9708_v57 }
 0x4ad   :  { %6766 = vmatprep.mubr.msk.f32.mxu0 %vm3416_vm8, %v9712_v51 }
 0x4b0   :  { %6767 = vmatmul.mubr.msk.f32.gmra.mrb[10].mxu0 %vm3416_vm8, %v9716_v13 }
 0x4b1   :  { %6769 = vmatprep.mubr.msk.f32.mxu0 %vm3416_vm8, %v9720_v2 }
 0x4b4   :  { %6770 = vmatmul.mubr.msk.f32.gmra.mrb[12].mxu0 %vm3416_vm8, %v9724_v60 }
 0x4b5   :  { %6772 = vmatprep.mubr.msk.f32.mxu0 %vm3416_vm8, %v9728_v33 }
 0x4b8   :  { %6773 = vmatmul.mubr.msk.f32.gmra.mrb[14].mxu0 %vm3416_vm8, %v4748_v18 }
 0x4b9   :  { %6777 = vmatprep.mubr.msk.f32.mxu0 %vm3416_vm8, %v9621_v0 }
 0x4bc   :  { %6778 = vmatmul.mubr.msk.f32.vlgmr.msra.gmra.mrb[0].mxu0 %vm3416_vm8, %v9625_v43 }
 0x4bd   :  { %6802 = vmatpush3.msra.mxu0 %v3638_v50  ;;  %6780 = vmatprep.mubr.msk.f32.mxu0 %vm3416_vm8, %v9629_v61 }
 0x4be   :  { %6827 = vmatprep.subr.mxu0 %v3639_v30 }
 0x4c0   :  { %6781 = vmatmul.mubr.msk.f32.gmra.mrb[2].mxu0 %vm3416_vm8, %v9633_v58 }
 0x4c1   :  { %6783 = vmatprep.mubr.msk.f32.mxu0 %vm3416_vm8, %v9637_v19 }
 0x4c4   :  { %6784 = vmatmul.mubr.msk.f32.gmra.mrb[4].mxu0 %vm3416_vm8, %v9641_v47 }
 0x4c5   :  { %6786 = vmatprep.mubr.msk.f32.mxu0 %vm3416_vm8, %v4290_v11 }
 0x4c8   :  { %6787 = vmatmul.mubr.msk.f32.gmra.mrb[6].mxu0 %vm3416_vm8, %v4966_v25 }
 0x4c9   :  { %6789 = vmatprep.mubr.msk.f32.mxu0 %vm3416_vm8, %v9647_v42 }
 0x4cc   :  { %6790 = vmatmul.mubr.msk.f32.gmra.mrb[8].mxu0 %vm3416_vm8, %v9651_v14 }
 0x4cd   :  { %6792 = vmatprep.mubr.msk.f32.mxu0 %vm3416_vm8, %v9655_v29 }
 0x4d0   :  { %6793 = vmatmul.mubr.msk.f32.gmra.mrb[10].mxu0 %vm3416_vm8, %v9659_v1 }
 0x4d1   :  { %6795 = vmatprep.mubr.msk.f32.mxu0 %vm3416_vm8, %v9663_v49 }
 0x4d4   :  { %6796 = vmatmul.mubr.msk.f32.gmra.mrb[12].mxu0 %vm3416_vm8, %v9667_v4 }
 0x4d5   :  { %6798 = vmatprep.mubr.msk.f32.mxu0 %vm3416_vm8, %v4298_v62 }
 0x4d8   :  { %6799 = vmatmul.mubr.msk.f32.gmra.mrb[14].mxu0 %vm3416_vm8, %v4974_v9 }
 0x4d9   :  { %6803 = vmatprep.mubr.msk.f32.mxu0 %vm3416_vm8, %v9554_v12  ;;  %v5199_v12 = vld [vmem:[#allocation4 + $0x131] sm:$0xff] }
 0x4dc   :  { %6804 = vmatmul.mubr.msk.f32.vlgmr.msra.gmra.mrb[0].mxu0 %vm3416_vm8, %v9564_v39  ;;  %v5416_v39 = vld [vmem:[#allocation4 + $0x92] sm:$0xff] }
 0x4dd   :  { %6828 = vmatpush3.msra.mxu0 %v3639_v30  ;;  %6806 = vmatprep.mubr.msk.f32.mxu0 %vm3416_vm8, %v9568_v5  ;;  %v5424_v5 = vld [vmem:[#allocation4 + $0x132] sm:$0xff] }
 0x4e0   :  { %6807 = vmatmul.mubr.msk.f32.gmra.mrb[2].mxu0 %vm3416_vm8, %v9572_v10 }
 0x4e1   :  { %6809 = vmatprep.mubr.msk.f32.mxu0 %vm3416_vm8, %v9576_v26  ;;  %v5717_v26 = vld [vmem:[%s9963_s9] ss:$0 sm:$0xff] }
 0x4e2   :  { %v431_v19 = vadd.f32 %v9035_v20, %v5717_v26  ;;  %v426_v28 = vadd.f32 %v5717_v26, %v9040_v7  ;;  %v441_v49 = vadd.f32 %v9044_v22, %v5717_v26  ;;  %v436_v55 = vadd.f32 %v5717_v26, %v9050_v32  ;;  %v10382_v7 = vld [vmem:[#allocation28_spill] sm:$0xff]  ;;  %v10384_v32 = vld [vmem:[#allocation30_spill] sm:$0xff] }
 0x4e4   :  { %6810 = vmatmul.mubr.msk.f32.gmra.mrb[4].mxu0 %vm3416_vm8, %v9580_v46 }
 0x4e5   :  { %6812 = vmatprep.mubr.msk.f32.mxu0 %vm3416_vm8, %v4515_v44 }
 0x4e8   :  { %6813 = vmatmul.mubr.msk.f32.gmra.mrb[6].mxu0 %vm3416_vm8, %v5191_v36 }
 0x4e9   :  { %6815 = vmatprep.mubr.msk.f32.mxu0 %vm3416_vm8, %v9589_v34 }
 0x4ec   :  { %6816 = vmatmul.mubr.msk.f32.gmra.mrb[8].mxu0 %vm3416_vm8, %v9593_v35 }
 0x4ed   :  { %6818 = vmatprep.mubr.msk.f32.mxu0 %vm3416_vm8, %v9597_v8 }
 0x4f0   :  { %6819 = vmatmul.mubr.msk.f32.gmra.mrb[10].mxu0 %vm3416_vm8, %v9601_v52 }
 0x4f1   :  { %6821 = vmatprep.mubr.msk.f32.mxu0 %vm3416_vm8, %v9605_v59 }
 0x4f4   :  { %6822 = vmatmul.mubr.msk.f32.gmra.mrb[12].mxu0 %vm3416_vm8, %v9609_v41 }
 0x4f5   :  { %6824 = vmatprep.mubr.msk.f32.mxu0 %vm3416_vm8, %v4523_v3 }
 0x4f8   :  { %6825 = vmatmul.mubr.msk.f32.gmra.mrb[14].mxu0 %vm3416_vm8, %v5199_v12 }
 0x4f9   :  { %6829 = vmatprep.mubr.msk.f32.mxu0 %vm3416_vm8, %v9679_v15 }
 0x4fc   :  { %6830 = vmatmul.mubr.msk.f32.vlgmr.msra.gmra.mrb[0].mxu0 %vm3416_vm8, %v9683_v16 }
 0x4fd   :  { %6832 = vmatprep.mubr.msk.f32.mxu0 %vm3416_vm8, %v9687_v21  ;;  %v451_v21 = vadd.f32 %v10382_v7, %v5717_v26 }
 0x500   :  { %6833 = vmatmul.mubr.msk.f32.gmra.mrb[2].mxu0 %vm3416_vm8, %v9691_v27  ;;  %v10383_v27 = vld [vmem:[#allocation29_spill] sm:$0xff] }
 0x501   :  { %6835 = vmatprep.mubr.msk.f32.mxu0 %vm3416_vm8, %v9695_v56  ;;  %v446_v56 = vadd.f32 %v5717_v26, %v10383_v27 }
 0x504   :  { %6836 = vmatmul.mubr.msk.f32.gmra.mrb[4].mxu0 %vm3416_vm8, %v9699_v31 }
 0x505   :  { %6838 = vmatprep.mubr.msk.f32.mxu0 %vm3416_vm8, %v4740_v40 }
 0x508   :  { %6839 = vmatmul.mubr.msk.f32.gmra.mrb[6].mxu0 %vm3416_vm8, %v5416_v39 }
 0x509   :  { %6841 = vmatprep.mubr.msk.f32.mxu0 %vm3416_vm8, %v9708_v57 }
 0x50c   :  { %6842 = vmatmul.mubr.msk.f32.gmra.mrb[8].mxu0 %vm3416_vm8, %v9712_v51 }
 0x50d   :  { %6844 = vmatprep.mubr.msk.f32.mxu0 %vm3416_vm8, %v9716_v13  ;;  %v461_v13 = vadd.f32 %v10384_v32, %v5717_v26 }
 0x510   :  { %6845 = vmatmul.mubr.msk.f32.gmra.mrb[10].mxu0 %vm3416_vm8, %v9720_v2  ;;  %v10385_v2 = vld [vmem:[#allocation31_spill] sm:$0xff] }
 0x511   :  { %6847 = vmatprep.mubr.msk.f32.mxu0 %vm3416_vm8, %v9724_v60  ;;  %v456_v60 = vadd.f32 %v5717_v26, %v10385_v2 }
 0x514   :  { %6848 = vmatmul.mubr.msk.f32.gmra.mrb[12].mxu0 %vm3416_vm8, %v9728_v33 }
 0x515   :  { %6850 = vmatprep.mubr.msk.f32.mxu0 %vm3416_vm8, %v4748_v18 }
 0x518   :  { %6851 = vmatmul.mubr.msk.f32.gmra.mrb[14].mxu0 %vm3416_vm8, %v5424_v5 }
 0x5cf   :  { %v6831_v10 = vpop.f32.mrb[0].mxu0 }
 0x5d0   :  { %v5539_v46 = vpop.f32.mrb[1].mxu0  ;;  %v6855_v35 = vadd.f32 %v6831_v10, %v5717_v26 }
 0x5d1   :  { %v6857_v34 = vadd.f32 %v5717_v26, %v5539_v46 }
 0x5d2   :  { %v6856_v48 = vadd.f32 %v6855_v35, %v9923_v54 }
 0x5d3   :  { %v6834_v8 = vpop.f32.mrb[2].mxu0  ;;  %v6858_v52 = vadd.f32 %v6857_v34, %v9923_v54 }
 0x5d4   :  { %v5549_v59 = vpop.f32.mrb[3].mxu0  ;;  %v6859_v0 = vadd.f32 %v6834_v8, %v5717_v26 }
 0x5d5   :  { %5673 = vxpose.xlu0.b32.start [1/16] (narrow) %v6858_v52, 8  ;;  %v6861_v23 = vadd.f32 %v5717_v26, %v5549_v59 }
 0x5d6   :  { %v6860_v42 = vadd.f32 %v6859_v0, %v9923_v54 }
 0x5d7   :  { %v6837_v41 = vpop.f32.mrb[4].mxu0  ;;  %v6862_v61 = vadd.f32 %v6861_v23, %v9923_v54 }
 0x5d8   :  { %v5559_v37 = vpop.f32.mrb[5].mxu0  ;;  %v6863_v4 = vadd.f32 %v6837_v41, %v5717_v26 }
 0x5d9   :  { %5674 = vxpose.xlu0.b32.cont [2/16] (narrow) %v6856_v48, 8  ;;  %v6865_v47 = vadd.f32 %v5717_v26, %v5559_v37 }
 0x5da   :  { %v6864_v45 = vadd.f32 %v6863_v4, %v9923_v54 }
 0x5db   :  { %v6840_v43 = vpop.f32.mrb[6].mxu0  ;;  %v6866_v53 = vadd.f32 %v6865_v47, %v9923_v54 }
 0x5dc   :  { %v5569_v58 = vpop.f32.mrb[7].mxu0  ;;  %v6867_v33 = vadd.f32 %v6840_v43, %v5717_v26 }
 0x5dd   :  { %5675 = vxpose.xlu0.b32.cont [3/16] (narrow) %v6862_v61, 8  ;;  %v6869_v6 = vadd.f32 %v5717_v26, %v5569_v58 }
 0x5de   :  { %v6868_v3 = vadd.f32 %v6867_v33, %v9923_v54 }
 0x5df   :  { %v6843_v24 = vpop.f32.mrb[8].mxu0  ;;  %v6870_v11 = vadd.f32 %v6869_v6, %v9923_v54 }
 0x5e0   :  { %v6872_v14 = vadd.f32 %v6843_v24, %v431_v19  ;;  %v5579_v29 = vpop.f32.mrb[9].mxu0 }
 0x5e1   :  { %v6875_v1 = vadd.f32 %v5579_v29, %v426_v28  ;;  %5676 = vxpose.xlu0.b32.cont [4/16] (narrow) %v6860_v42, 8 }
 0x5e2   :  { %v6873_v40 = vadd.f32 %v6872_v14, %v9923_v54 }
 0x5e3   :  { %v6846_v63 = vpop.f32.mrb[10].mxu0  ;;  %v6876_v50 = vadd.f32 %v6875_v1, %v9923_v54 }
 0x5e4   :  { %v6878_v15 = vadd.f32 %v6846_v63, %v441_v49  ;;  %v5589_v20 = vpop.f32.mrb[11].mxu0 }
 0x5e5   :  { %v6881_v16 = vadd.f32 %v5589_v20, %v436_v55  ;;  %5677 = vxpose.xlu0.b32.cont [5/16] (narrow) %v6866_v53, 8 }
 0x5e6   :  { %v6879_v30 = vadd.f32 %v6878_v15, %v9923_v54 }
 0x5e7   :  { %v6849_v31 = vpop.f32.mrb[12].mxu0  ;;  %v6882_v18 = vadd.f32 %v6881_v16, %v9923_v54 }
 0x5e8   :  { %v6884_v57 = vadd.f32 %v6849_v31, %v451_v21  ;;  %v5599_v22 = vpop.f32.mrb[13].mxu0 }
 0x5e9   :  { %v6887_v51 = vadd.f32 %v5599_v22, %v446_v56  ;;  %5678 = vxpose.xlu0.b32.cont [6/16] (narrow) %v6864_v45, 8 }
 0x5ea   :  { %v6885_v9 = vadd.f32 %v6884_v57, %v9923_v54 }
 0x5eb   :  { %v6852_v38 = vpop.f32.mrb[14].mxu0  ;;  %v6888_v25 = vadd.f32 %v6887_v51, %v9923_v54 }
 0x5ec   :  { %v6890_v62 = vadd.f32 %v6852_v38, %v461_v13  ;;  %v5609_v17 = vpop.f32.mrb[15].mxu0 }
 0x5ed   :  { %v6893_v44 = vadd.f32 %v5609_v17, %v456_v60  ;;  %5679 = vxpose.xlu0.b32.cont [7/16] (narrow) %v6870_v11, 8 }
 0x5ee   :  { %v6891_v12 = vadd.f32 %v6890_v62, %v9923_v54 }
 0x5ef   :  { %v6894_v36 = vadd.f32 %v6893_v44, %v9923_v54 }
 0x5f1   :  { %5680 = vxpose.xlu0.b32.cont [8/16] (narrow) %v6868_v3, 8 }
 0x5f5   :  { %5681 = vxpose.xlu0.b32.cont [9/16] (narrow) %v6876_v50, 8 }
 0x5f9   :  { %5682 = vxpose.xlu0.b32.cont [10/16] (narrow) %v6873_v40, 8 }
 0x5fd   :  { %5683 = vxpose.xlu0.b32.cont [11/16] (narrow) %v6882_v18, 8 }
 0x601   :  { %5684 = vxpose.xlu0.b32.cont [12/16] (narrow) %v6879_v30, 8 }
 0x605   :  { %5685 = vxpose.xlu0.b32.cont [13/16] (narrow) %v6888_v25, 8 }
 0x609   :  { %5686 = vxpose.xlu0.b32.cont [14/16] (narrow) %v6885_v9, 8 }
 0x60d   :  { %5687 = vxpose.xlu0.b32.cont [15/16] (narrow) %v6894_v36, 8 }
 0x611   :  { %5688 = vxpose.xlu0.b32.end [16/16] (narrow) %v6891_v12, 8 }
 0x655   :  { %v5689_v39 = vpop.trf.xlu0 }
 0x656   :  { %5706 = vst.msk [vmem:[%s9965_s10] sm:$0xff] %vm5705_vm11, %v5689_v39  ;;  %5708 = vrot.lane.b32.xlu1 %v5689_v39, %s7166_s13 }
 0x6c8   :  { %v5709_v5 = vpop.permute.xlu1 %5708 }
 0x6c9   :  { %6035 = vst.msk [vmem:[%s9965_s10 + $0x8] sm:$0xff] %vm5705_vm11, %v5709_v5 }

</bundles_post_ra>
